<compile_context>
chip_gen: v6e
topology: v6e:2x2x1
jax: 0.10.0
libtpu: 0.0.40
codegen_flags: <defaults>
</compile_context>

<pallas_src>
import functools
import math

import jax
import jax.numpy as jnp
from jax.experimental import pallas as pl
from jax.experimental.pallas import tpu as pltpu

# bf16 into the MXU with f32 accumulation / bias / LeakyReLU.
# Set to jnp.float32 for bit-closer parity with PyTorch.
_COMPUTE_DTYPE = jnp.bfloat16
_LANE = 128
_FIRST_CIN_PAD = 8        # concat(3,3)=6 channels padded to 8 -> K = 4*4*8 = 128


def _round_up(x, m):
    return ((x + m - 1) // m) * m


@functools.lru_cache(maxsize=1)
def _device_vmem_bytes():
    """Physical VMEM capacity (v5e/v6e: 128 MiB, v7x: 64 MiB per core)."""
    try:
        return int(pltpu.get_tpu_info().vmem_capacity_bytes)
    except Exception:
        return 64 << 20   # conservative (v7x-sized) fallback


def _conv_matmul_kernel(a_ref, w_ref, b_ref, o_ref, acc_ref, *, tk, leaky_slope):
    """One (tm, Np) output tile; K-reduction over grid axis 1.

    a_ref: (tm, tk) bf16 patch tile     w_ref: (Kp, Np) bf16, VMEM-resident
    b_ref: (1, Np)  f32 bias            o_ref: (tm, Np) output tile
    acc_ref: (tm, Np) f32 accumulator scratch (persists across K steps)
    """
    k = pl.program_id(1)

    @pl.when(k == 0)
    def _():
        acc_ref[...] = jnp.zeros_like(acc_ref)

    k0 = pl.multiple_of(k * tk, tk)
    acc_ref[...] += jnp.dot(a_ref[...], w_ref[pl.ds(k0, tk), :],
                            preferred_element_type=jnp.float32)

    @pl.when(k == pl.num_programs(1) - 1)
    def _():
        out = acc_ref[...] + b_ref[...]                     # bias add in f32
        if leaky_slope is not None:
            out = jnp.where(out >= 0, out, leaky_slope * out)   # LeakyReLU(0.2)
        o_ref[...] = out.astype(o_ref.dtype)


def _matmul_bias_act(a, w, b, leaky_slope, out_dtype):
    """(M,K)@(K,N) + bias (+LeakyReLU).  M parallel / K reduction, W resident."""
    M, K = a.shape
    Kp, Np = w.shape
    assert K == Kp and Kp % _LANE == 0 and Np % _LANE == 0

    big_vmem = _device_vmem_bytes() >= (100 << 20)   # v5e/v6e (128 MiB) vs v7x
    tm_cap = 2048 if big_vmem else 1024
    vmem_cap = (96 << 20) if big_vmem else (48 << 20)

    tm = min(tm_cap, _round_up(M, 16))               # bf16-safe sublane tile
    Mp = _round_up(M, tm)
    if Mp != M:                                      # no-op for pow2 resolutions
        a = jnp.pad(a, ((0, Mp - M), (0, 0)))
    tk = math.gcd(Kp, 1024)                          # multiple of 128 by constr.

    grid = (Mp // tm, Kp // tk)

    in_b = jnp.dtype(_COMPUTE_DTYPE).itemsize
    out_b = jnp.dtype(out_dtype).itemsize
    footprint = (2 * tm * tk * in_b        # A tiles, double-buffered
                 + 2 * Kp * Np * in_b      # resident W (counted x2 to be safe)
                 + 2 * tm * Np * out_b     # output tile, double-buffered
                 + tm * Np * 4             # f32 accumulator scratch
                 + 2 * Np * 4)             # bias
    vmem_bytes = int(min(vmem_cap, footprint + (8 << 20)))

    cost = pl.CostEstimate(
        flops=int(2 * Mp * Kp * Np),
        transcendentals=0,
        bytes_accessed=int(Mp * Kp * in_b + Kp * Np * in_b + Np * 4
                           + Mp * Np * out_b))

    kernel = functools.partial(_conv_matmul_kernel, tk=tk, leaky_slope=leaky_slope)
    out_p = pl.pallas_call(
        kernel,
        out_shape=jax.ShapeDtypeStruct((Mp, Np), out_dtype),
        grid_spec=pltpu.PrefetchScalarGridSpec(
            num_scalar_prefetch=0,
            grid=grid,
            in_specs=[
                pl.BlockSpec((tm, tk), lambda i, k: (i, k)),   # A: streamed
                pl.BlockSpec((Kp, Np), lambda i, k: (0, 0)),   # W: VMEM-resident
                pl.BlockSpec((1, Np), lambda i, k: (0, 0)),    # bias: resident
            ],
            out_specs=pl.BlockSpec((tm, Np), lambda i, k: (i, 0)),
            scratch_shapes=[pltpu.VMEM((tm, Np), jnp.float32)],
        ),
        compiler_params=pltpu.CompilerParams(
            dimension_semantics=("parallel", "arbitrary"),
            vmem_limit_bytes=vmem_bytes),
        cost_estimate=cost,
    )(a, w, b)
    return out_p if Mp == M else out_p[:M]


def _im2col_nhwc(x_nhwc, k, stride, pad):
    """Patch extraction (plain-JAX glue, no FLOPs); (kh, kw, c) column order."""
    N, H, W, C = x_nhwc.shape
    xp = jnp.pad(x_nhwc, ((0, 0), (pad, pad), (pad, pad), (0, 0)))
    OH = (H + 2 * pad - k) // stride + 1
    OW = (W + 2 * pad - k) // stride + 1
    cols = []
    for i in range(k):
        for j in range(k):
            cols.append(xp[:, i:i + stride * OH:stride,
                           j:j + stride * OW:stride, :])
    patches = jnp.stack(cols, axis=3)                 # (N, OH, OW, k*k, C)
    return patches.reshape(N * OH * OW, k * k * C), OH, OW


def conv2d_nhwc_pallas(x_nhwc, w2d, b2d, *, ksize, stride, pad,
                       leaky_slope, out_dtype):
    """NHWC conv via im2col + Pallas matmul.  Channel dims stay lane-padded."""
    N, H, W, Cp = x_nhwc.shape
    Kp, Np = w2d.shape
    assert Kp == ksize * ksize * Cp
    a, OH, OW = _im2col_nhwc(x_nhwc, ksize, stride, pad)     # (M, Kp) bf16
    out = _matmul_bias_act(a, w2d, b2d, leaky_slope, out_dtype)
    return out.reshape(N, OH, OW, Np)


def init_discriminator_params(key):
    """Conv stack of the Discriminator: 6->64->128->256->512->1, k=4."""
    chans = [(6, 64), (64, 128), (128, 256), (256, 512), (512, 1)]
    params = []
    for cin, cout in chans:
        key, kw, kb = jax.random.split(key, 3)
        w = 0.05 * jax.random.normal(kw, (cout, cin, 4, 4), jnp.float32)
        b = 0.05 * jax.random.normal(kb, (cout,), jnp.float32)
        params.append((w, b))
    return params


def pack_discriminator_params(params):
    """One-time weight packing into the padded bf16 (K, Np) matmul layout.

    Padded Cin rows and padded Cout cols are zero, so lane padding carried on
    the activations across layers is bit-exact (0 * 0 contributions).
    """
    packed = []
    cin_pad = _FIRST_CIN_PAD
    for w, b in params:
        cout, cin, kh, kw = w.shape
        np_ = _round_up(cout, _LANE)
        w_p = jnp.pad(w, ((0, np_ - cout), (0, cin_pad - cin), (0, 0), (0, 0)))
        # (kh, kw, cin, cout) ordering matches the im2col column order.
        w2d = jnp.transpose(w_p, (2, 3, 1, 0)).reshape(kh * kw * cin_pad, np_)
        b2d = jnp.pad(b, (0, np_ - cout)).astype(jnp.float32).reshape(1, np_)
        packed.append((w2d.astype(_COMPUTE_DTYPE), b2d))
        cin_pad = np_
    return packed


def discriminator_forward(packed_params, x, y):
    """Equivalent of Discriminator.forward(x, y) on NCHW f32 inputs."""
    h = jnp.concatenate([x, y], axis=1)               # torch.cat([x, y], dim=1)
    h = jnp.transpose(h, (0, 2, 3, 1))                # NCHW -> NHWC (once)
    c = h.shape[-1]
    h = jnp.pad(h, ((0, 0), (0, 0), (0, 0), (0, _FIRST_CIN_PAD - c)))
    h = h.astype(_COMPUTE_DTYPE)
    n_layers = len(packed_params)
    for li, (w2d, b2d) in enumerate(packed_params):
        last = li == n_layers - 1
        h = conv2d_nhwc_pallas(
            h, w2d, b2d, ksize=4,
            stride=1 if last else 2, pad=1,
            leaky_slope=None if last else 0.2,        # LeakyReLU(0.2) on 1-4
            out_dtype=jnp.float32 if last else _COMPUTE_DTYPE)
    h = h[..., :1]                                    # drop padded Cout lanes
    return jnp.transpose(h, (0, 3, 1, 2))             # NHWC -> NCHW (once)


def _reference_forward(params, x, y):
    """Plain-XLA f32 reference for validation."""
    h = jnp.concatenate([x, y], axis=1)
    for i, (w, b) in enumerate(params):
        stride = 1 if i == len(params) - 1 else 2
        h = jax.lax.conv_general_dilated(
            h, w, window_strides=(stride, stride), padding=((1, 1), (1, 1)),
            dimension_numbers=("NCHW", "OIHW", "NCHW"))
        h = h + b.reshape(1, -1, 1, 1)
        if i < len(params) - 1:
            h = jnp.where(h >= 0, h, 0.2 * h)
    return h


if __name__ == "__main__":
    key = jax.random.PRNGKey(0)
    kp, kx, ky = jax.random.split(key, 3)
    params = init_discriminator_params(kp)
    packed = pack_discriminator_params(params)       # hoisted out of forward

    # Pix2Pix discriminator takes two 3-channel images; 32x32 is the smallest
    # spatial size for which the final 4x4 conv still produces a valid output.
    x = jax.random.normal(kx, (2, 3, 32, 32), jnp.float32)
    y = jax.random.normal(ky, (2, 3, 32, 32), jnp.float32)

    fwd = jax.jit(discriminator_forward)
    out = fwd(packed, x, y)
    jax.block_until_ready(out)
    assert out.shape == (2, 1, 1, 1), out.shape

    ref = _reference_forward(params, x, y)
    rel_err = float(jnp.max(jnp.abs(out - ref)) / (jnp.max(jnp.abs(ref)) + 1e-6))
    assert rel_err < 0.1, f"mismatch vs f32 reference: rel_err={rel_err}"
    print("KERNEL_OK")
</pallas_src>

<mosaic_0001>
module attributes {stable_mosaic.version = 11 : i64} {
  func.func @_conv_matmul_kernel(%arg0: i32, %arg1: i32, %arg2: memref<512x128xbf16, #tpu.memory_space<vmem>>, %arg3: memref<128x128xbf16, #tpu.memory_space<vmem>>, %arg4: memref<1x128xf32, #tpu.memory_space<vmem>>, %arg5: memref<512x128xbf16, #tpu.memory_space<vmem>>, %arg6: memref<512x128xf32, #tpu.memory_space<vmem>>) attributes {dimension_semantics = [#tpu.dimension_semantics<parallel>, #tpu.dimension_semantics<arbitrary>], iteration_bounds = array<i64: 1, 1>, scalar_prefetch = 0 : i64, scratch_operands = 1 : i64, tpu.core_type = #tpu.core_type<tc>, window_params = [{transform_indices = @transform_0, window_bounds = array<i64: 512, 128>}, {pipeline_mode = #tpu.pipeline_mode<synchronous>, transform_indices = @transform_1, window_bounds = array<i64: 128, 128>}, {pipeline_mode = #tpu.pipeline_mode<synchronous>, transform_indices = @transform_2, window_bounds = array<i64: 1, 128>}, {transform_indices = @transform_3, window_bounds = array<i64: 512, 128>}]} {
    %c0_i32 = arith.constant 0 : i32
    %0 = arith.cmpi eq, %arg1, %c0_i32 : i32
    %1 = arith.extui %0 : i1 to i32
    %c0_i32_0 = arith.constant 0 : i32
    %2 = arith.cmpi ne, %1, %c0_i32_0 : i32
    scf.if %2 {
      %cst_9 = arith.constant 0.000000e+00 : f32
      %15 = vector.broadcast %cst_9 : f32 to vector<512x128xf32>
      %c0_10 = arith.constant 0 : index
      %c0_11 = arith.constant 0 : index
      %16 = vector.load %arg6[%c0_10, %c0_11] : memref<512x128xf32, #tpu.memory_space<vmem>>, vector<512x128xf32>
      tpu.vector_store %arg6[%c0_10, %c0_11], %15 {strides = array<i32>} : memref<512x128xf32, #tpu.memory_space<vmem>>, vector<512x128xf32>,
    } else {
    }
    %c128_i32 = arith.constant 128 : i32
    %3 = arith.muli %arg1, %c128_i32 : i32
    %4 = tpu.assume_multiple %3, 128 : i32
    %c0 = arith.constant 0 : index
    %c0_1 = arith.constant 0 : index
    %5 = vector.load %arg6[%c0, %c0_1] : memref<512x128xf32, #tpu.memory_space<vmem>>, vector<512x128xf32>
    %c0_2 = arith.constant 0 : index
    %c0_3 = arith.constant 0 : index
    %6 = vector.load %arg2[%c0_2, %c0_3] : memref<512x128xbf16, #tpu.memory_space<vmem>>, vector<512x128xbf16>
    %7 = arith.index_cast %4 : i32 to index
    %c0_4 = arith.constant 0 : index
    %8 = vector.load %arg3[%7, %c0_4] : memref<128x128xbf16, #tpu.memory_space<vmem>>, vector<128x128xbf16>
    %cst = arith.constant dense<0.000000e+00> : vector<512x128xf32>
    %9 = tpu.matmul %6, %8, %cst {dimension_numbers = #tpu.dot_dimension_numbers<[1], [0], [0], [1], [0, 0, 1, 1], [], []>} : vector<512x128xbf16>, vector<128x128xbf16>, vector<512x128xf32> -> vector<512x128xf32>
    %10 = arith.addf %5, %9 : vector<512x128xf32>
    %c0_5 = arith.constant 0 : index
    %c0_6 = arith.constant 0 : index
    %11 = vector.load %arg6[%c0_5, %c0_6] : memref<512x128xf32, #tpu.memory_space<vmem>>, vector<512x128xf32>
    tpu.vector_store %arg6[%c0_5, %c0_6], %10 {strides = array<i32>} : memref<512x128xf32, #tpu.memory_space<vmem>>, vector<512x128xf32>,
    %c0_i32_7 = arith.constant 0 : i32
    %12 = arith.cmpi eq, %arg1, %c0_i32_7 : i32
    %13 = arith.extui %12 : i1 to i32
    %c0_i32_8 = arith.constant 0 : i32
    %14 = arith.cmpi ne, %13, %c0_i32_8 : i32
    scf.if %14 {
      %c0_9 = arith.constant 0 : index
      %c0_10 = arith.constant 0 : index
      %15 = vector.load %arg6[%c0_9, %c0_10] : memref<512x128xf32, #tpu.memory_space<vmem>>, vector<512x128xf32>
      %c0_11 = arith.constant 0 : index
      %c0_12 = arith.constant 0 : index
      %16 = vector.load %arg4[%c0_11, %c0_12] : memref<1x128xf32, #tpu.memory_space<vmem>>, vector<1x128xf32>
      %17 = vector.broadcast %16 : vector<1x128xf32> to vector<512x128xf32>
      %18 = arith.addf %15, %17 : vector<512x128xf32>
      %cst_13 = arith.constant 0.000000e+00 : f32
      %19 = vector.broadcast %cst_13 : f32 to vector<512x128xf32>
      %20 = arith.cmpf oge, %18, %19 : vector<512x128xf32>
      %cst_14 = arith.constant 2.000000e-01 : f32
      %21 = vector.broadcast %cst_14 : f32 to vector<512x128xf32>
      %22 = arith.mulf %21, %18 : vector<512x128xf32>
      %23 = arith.select %20, %18, %22 : vector<512x128xi1>, vector<512x128xf32>
      %24 = arith.truncf %23 : vector<512x128xf32> to vector<512x128xbf16>
      %c0_15 = arith.constant 0 : index
      %c0_16 = arith.constant 0 : index
      %25 = vector.load %arg5[%c0_15, %c0_16] : memref<512x128xbf16, #tpu.memory_space<vmem>>, vector<512x128xbf16>
      tpu.vector_store %arg5[%c0_15, %c0_16], %24 {strides = array<i32>} : memref<512x128xbf16, #tpu.memory_space<vmem>>, vector<512x128xbf16>,
    } else {
    }
    return
  }
  func.func @transform_0(%arg0: i32, %arg1: i32) -> (i32, i32) {
    %c0_i32 = arith.constant 0 : i32
    return %arg0, %arg1 : i32, i32
  }
  func.func @transform_1(%arg0: i32, %arg1: i32) -> (i32, i32) {
    %c0_i32 = arith.constant 0 : i32
    %c0_i32_0 = arith.constant 0 : i32
    %c0_i32_1 = arith.constant 0 : i32
    return %c0_i32, %c0_i32_0 : i32, i32
  }
  func.func @transform_2(%arg0: i32, %arg1: i32) -> (i32, i32) {
    %c0_i32 = arith.constant 0 : i32
    %c0_i32_0 = arith.constant 0 : i32
    %c0_i32_1 = arith.constant 0 : i32
    return %c0_i32, %c0_i32_0 : i32, i32
  }
  func.func @transform_3(%arg0: i32, %arg1: i32) -> (i32, i32) {
    %c0_i32 = arith.constant 0 : i32
    %c0_i32_0 = arith.constant 0 : i32
    return %arg0, %c0_i32 : i32, i32
  }
}

module attributes {stable_mosaic.version = 11 : i64} {
  func.func @_conv_matmul_kernel(%arg0: i32, %arg1: i32, %arg2: memref<128x1024xbf16, #tpu.memory_space<vmem>>, %arg3: memref<2048x128xbf16, #tpu.memory_space<vmem>>, %arg4: memref<1x128xf32, #tpu.memory_space<vmem>>, %arg5: memref<128x128xbf16, #tpu.memory_space<vmem>>, %arg6: memref<128x128xf32, #tpu.memory_space<vmem>>) attributes {dimension_semantics = [#tpu.dimension_semantics<parallel>, #tpu.dimension_semantics<arbitrary>], iteration_bounds = array<i64: 1, 2>, scalar_prefetch = 0 : i64, scratch_operands = 1 : i64, tpu.core_type = #tpu.core_type<tc>, window_params = [{transform_indices = @transform_0, window_bounds = array<i64: 128, 1024>}, {pipeline_mode = #tpu.pipeline_mode<synchronous>, transform_indices = @transform_1, window_bounds = array<i64: 2048, 128>}, {pipeline_mode = #tpu.pipeline_mode<synchronous>, transform_indices = @transform_2, window_bounds = array<i64: 1, 128>}, {transform_indices = @transform_3, window_bounds = array<i64: 128, 128>}]} {
    %c0_i32 = arith.constant 0 : i32
    %0 = arith.cmpi eq, %arg1, %c0_i32 : i32
    %1 = arith.extui %0 : i1 to i32
    %c0_i32_0 = arith.constant 0 : i32
    %2 = arith.cmpi ne, %1, %c0_i32_0 : i32
    scf.if %2 {
      %cst_8 = arith.constant 0.000000e+00 : f32
      %15 = vector.broadcast %cst_8 : f32 to vector<128x128xf32>
      %c0_9 = arith.constant 0 : index
      %c0_10 = arith.constant 0 : index
      %16 = vector.load %arg6[%c0_9, %c0_10] : memref<128x128xf32, #tpu.memory_space<vmem>>, vector<128x128xf32>
      tpu.vector_store %arg6[%c0_9, %c0_10], %15 {strides = array<i32>} : memref<128x128xf32, #tpu.memory_space<vmem>>, vector<128x128xf32>,
    } else {
    }
    %c1024_i32 = arith.constant 1024 : i32
    %3 = arith.muli %arg1, %c1024_i32 : i32
    %4 = tpu.assume_multiple %3, 1024 : i32
    %c0 = arith.constant 0 : index
    %c0_1 = arith.constant 0 : index
    %5 = vector.load %arg6[%c0, %c0_1] : memref<128x128xf32, #tpu.memory_space<vmem>>, vector<128x128xf32>
    %c0_2 = arith.constant 0 : index
    %c0_3 = arith.constant 0 : index
    %6 = vector.load %arg2[%c0_2, %c0_3] : memref<128x1024xbf16, #tpu.memory_space<vmem>>, vector<128x1024xbf16>
    %7 = arith.index_cast %4 : i32 to index
    %c0_4 = arith.constant 0 : index
    %8 = vector.load %arg3[%7, %c0_4] : memref<2048x128xbf16, #tpu.memory_space<vmem>>, vector<1024x128xbf16>
    %cst = arith.constant dense<0.000000e+00> : vector<128x128xf32>
    %9 = tpu.matmul %6, %8, %cst {dimension_numbers = #tpu.dot_dimension_numbers<[1], [0], [0], [1], [0, 0, 1, 1], [], []>} : vector<128x1024xbf16>, vector<1024x128xbf16>, vector<128x128xf32> -> vector<128x128xf32>
    %10 = arith.addf %5, %9 : vector<128x128xf32>
    %c0_5 = arith.constant 0 : index
    %c0_6 = arith.constant 0 : index
    %11 = vector.load %arg6[%c0_5, %c0_6] : memref<128x128xf32, #tpu.memory_space<vmem>>, vector<128x128xf32>
    tpu.vector_store %arg6[%c0_5, %c0_6], %10 {strides = array<i32>} : memref<128x128xf32, #tpu.memory_space<vmem>>, vector<128x128xf32>,
    %c1_i32 = arith.constant 1 : i32
    %12 = arith.cmpi eq, %arg1, %c1_i32 : i32
    %13 = arith.extui %12 : i1 to i32
    %c0_i32_7 = arith.constant 0 : i32
    %14 = arith.cmpi ne, %13, %c0_i32_7 : i32
    scf.if %14 {
      %c0_8 = arith.constant 0 : index
      %c0_9 = arith.constant 0 : index
      %15 = vector.load %arg6[%c0_8, %c0_9] : memref<128x128xf32, #tpu.memory_space<vmem>>, vector<128x128xf32>
      %c0_10 = arith.constant 0 : index
      %c0_11 = arith.constant 0 : index
      %16 = vector.load %arg4[%c0_10, %c0_11] : memref<1x128xf32, #tpu.memory_space<vmem>>, vector<1x128xf32>
      %17 = vector.broadcast %16 : vector<1x128xf32> to vector<128x128xf32>
      %18 = arith.addf %15, %17 : vector<128x128xf32>
      %cst_12 = arith.constant 0.000000e+00 : f32
      %19 = vector.broadcast %cst_12 : f32 to vector<128x128xf32>
      %20 = arith.cmpf oge, %18, %19 : vector<128x128xf32>
      %cst_13 = arith.constant 2.000000e-01 : f32
      %21 = vector.broadcast %cst_13 : f32 to vector<128x128xf32>
      %22 = arith.mulf %21, %18 : vector<128x128xf32>
      %23 = arith.select %20, %18, %22 : vector<128x128xi1>, vector<128x128xf32>
      %24 = arith.truncf %23 : vector<128x128xf32> to vector<128x128xbf16>
      %c0_14 = arith.constant 0 : index
      %c0_15 = arith.constant 0 : index
      %25 = vector.load %arg5[%c0_14, %c0_15] : memref<128x128xbf16, #tpu.memory_space<vmem>>, vector<128x128xbf16>
      tpu.vector_store %arg5[%c0_14, %c0_15], %24 {strides = array<i32>} : memref<128x128xbf16, #tpu.memory_space<vmem>>, vector<128x128xbf16>,
    } else {
    }
    return
  }
  func.func @transform_0(%arg0: i32, %arg1: i32) -> (i32, i32) {
    %c0_i32 = arith.constant 0 : i32
    return %arg0, %arg1 : i32, i32
  }
  func.func @transform_1(%arg0: i32, %arg1: i32) -> (i32, i32) {
    %c0_i32 = arith.constant 0 : i32
    %c0_i32_0 = arith.constant 0 : i32
    %c0_i32_1 = arith.constant 0 : i32
    return %c0_i32, %c0_i32_0 : i32, i32
  }
  func.func @transform_2(%arg0: i32, %arg1: i32) -> (i32, i32) {
    %c0_i32 = arith.constant 0 : i32
    %c0_i32_0 = arith.constant 0 : i32
    %c0_i32_1 = arith.constant 0 : i32
    return %c0_i32, %c0_i32_0 : i32, i32
  }
  func.func @transform_3(%arg0: i32, %arg1: i32) -> (i32, i32) {
    %c0_i32 = arith.constant 0 : i32
    %c0_i32_0 = arith.constant 0 : i32
    return %arg0, %c0_i32 : i32, i32
  }
}

module attributes {stable_mosaic.version = 11 : i64} {
  func.func @_conv_matmul_kernel(%arg0: i32, %arg1: i32, %arg2: memref<32x1024xbf16, #tpu.memory_space<vmem>>, %arg3: memref<2048x256xbf16, #tpu.memory_space<vmem>>, %arg4: memref<1x256xf32, #tpu.memory_space<vmem>>, %arg5: memref<32x256xbf16, #tpu.memory_space<vmem>>, %arg6: memref<32x256xf32, #tpu.memory_space<vmem>>) attributes {dimension_semantics = [#tpu.dimension_semantics<parallel>, #tpu.dimension_semantics<arbitrary>], iteration_bounds = array<i64: 1, 2>, scalar_prefetch = 0 : i64, scratch_operands = 1 : i64, tpu.core_type = #tpu.core_type<tc>, window_params = [{transform_indices = @transform_0, window_bounds = array<i64: 32, 1024>}, {pipeline_mode = #tpu.pipeline_mode<synchronous>, transform_indices = @transform_1, window_bounds = array<i64: 2048, 256>}, {pipeline_mode = #tpu.pipeline_mode<synchronous>, transform_indices = @transform_2, window_bounds = array<i64: 1, 256>}, {transform_indices = @transform_3, window_bounds = array<i64: 32, 256>}]} {
    %c0_i32 = arith.constant 0 : i32
    %0 = arith.cmpi eq, %arg1, %c0_i32 : i32
    %1 = arith.extui %0 : i1 to i32
    %c0_i32_0 = arith.constant 0 : i32
    %2 = arith.cmpi ne, %1, %c0_i32_0 : i32
    scf.if %2 {
      %cst_8 = arith.constant 0.000000e+00 : f32
      %15 = vector.broadcast %cst_8 : f32 to vector<32x256xf32>
      %c0_9 = arith.constant 0 : index
      %c0_10 = arith.constant 0 : index
      %16 = vector.load %arg6[%c0_9, %c0_10] : memref<32x256xf32, #tpu.memory_space<vmem>>, vector<32x256xf32>
      tpu.vector_store %arg6[%c0_9, %c0_10], %15 {strides = array<i32>} : memref<32x256xf32, #tpu.memory_space<vmem>>, vector<32x256xf32>,
    } else {
    }
    %c1024_i32 = arith.constant 1024 : i32
    %3 = arith.muli %arg1, %c1024_i32 : i32
    %4 = tpu.assume_multiple %3, 1024 : i32
    %c0 = arith.constant 0 : index
    %c0_1 = arith.constant 0 : index
    %5 = vector.load %arg6[%c0, %c0_1] : memref<32x256xf32, #tpu.memory_space<vmem>>, vector<32x256xf32>
    %c0_2 = arith.constant 0 : index
    %c0_3 = arith.constant 0 : index
    %6 = vector.load %arg2[%c0_2, %c0_3] : memref<32x1024xbf16, #tpu.memory_space<vmem>>, vector<32x1024xbf16>
    %7 = arith.index_cast %4 : i32 to index
    %c0_4 = arith.constant 0 : index
    %8 = vector.load %arg3[%7, %c0_4] : memref<2048x256xbf16, #tpu.memory_space<vmem>>, vector<1024x256xbf16>
    %cst = arith.constant dense<0.000000e+00> : vector<32x256xf32>
    %9 = tpu.matmul %6, %8, %cst {dimension_numbers = #tpu.dot_dimension_numbers<[1], [0], [0], [1], [0, 0, 1, 1], [], []>} : vector<32x1024xbf16>, vector<1024x256xbf16>, vector<32x256xf32> -> vector<32x256xf32>
    %10 = arith.addf %5, %9 : vector<32x256xf32>
    %c0_5 = arith.constant 0 : index
    %c0_6 = arith.constant 0 : index
    %11 = vector.load %arg6[%c0_5, %c0_6] : memref<32x256xf32, #tpu.memory_space<vmem>>, vector<32x256xf32>
    tpu.vector_store %arg6[%c0_5, %c0_6], %10 {strides = array<i32>} : memref<32x256xf32, #tpu.memory_space<vmem>>, vector<32x256xf32>,
    %c1_i32 = arith.constant 1 : i32
    %12 = arith.cmpi eq, %arg1, %c1_i32 : i32
    %13 = arith.extui %12 : i1 to i32
    %c0_i32_7 = arith.constant 0 : i32
    %14 = arith.cmpi ne, %13, %c0_i32_7 : i32
    scf.if %14 {
      %c0_8 = arith.constant 0 : index
      %c0_9 = arith.constant 0 : index
      %15 = vector.load %arg6[%c0_8, %c0_9] : memref<32x256xf32, #tpu.memory_space<vmem>>, vector<32x256xf32>
      %c0_10 = arith.constant 0 : index
      %c0_11 = arith.constant 0 : index
      %16 = vector.load %arg4[%c0_10, %c0_11] : memref<1x256xf32, #tpu.memory_space<vmem>>, vector<1x256xf32>
      %17 = vector.broadcast %16 : vector<1x256xf32> to vector<32x256xf32>
      %18 = arith.addf %15, %17 : vector<32x256xf32>
      %cst_12 = arith.constant 0.000000e+00 : f32
      %19 = vector.broadcast %cst_12 : f32 to vector<32x256xf32>
      %20 = arith.cmpf oge, %18, %19 : vector<32x256xf32>
      %cst_13 = arith.constant 2.000000e-01 : f32
      %21 = vector.broadcast %cst_13 : f32 to vector<32x256xf32>
      %22 = arith.mulf %21, %18 : vector<32x256xf32>
      %23 = arith.select %20, %18, %22 : vector<32x256xi1>, vector<32x256xf32>
      %24 = arith.truncf %23 : vector<32x256xf32> to vector<32x256xbf16>
      %c0_14 = arith.constant 0 : index
      %c0_15 = arith.constant 0 : index
      %25 = vector.load %arg5[%c0_14, %c0_15] : memref<32x256xbf16, #tpu.memory_space<vmem>>, vector<32x256xbf16>
      tpu.vector_store %arg5[%c0_14, %c0_15], %24 {strides = array<i32>} : memref<32x256xbf16, #tpu.memory_space<vmem>>, vector<32x256xbf16>,
    } else {
    }
    return
  }
  func.func @transform_0(%arg0: i32, %arg1: i32) -> (i32, i32) {
    %c0_i32 = arith.constant 0 : i32
    return %arg0, %arg1 : i32, i32
  }
  func.func @transform_1(%arg0: i32, %arg1: i32) -> (i32, i32) {
    %c0_i32 = arith.constant 0 : i32
    %c0_i32_0 = arith.constant 0 : i32
    %c0_i32_1 = arith.constant 0 : i32
    return %c0_i32, %c0_i32_0 : i32, i32
  }
  func.func @transform_2(%arg0: i32, %arg1: i32) -> (i32, i32) {
    %c0_i32 = arith.constant 0 : i32
    %c0_i32_0 = arith.constant 0 : i32
    %c0_i32_1 = arith.constant 0 : i32
    return %c0_i32, %c0_i32_0 : i32, i32
  }
  func.func @transform_3(%arg0: i32, %arg1: i32) -> (i32, i32) {
    %c0_i32 = arith.constant 0 : i32
    %c0_i32_0 = arith.constant 0 : i32
    return %arg0, %c0_i32 : i32, i32
  }
}

module attributes {stable_mosaic.version = 11 : i64} {
  func.func @_conv_matmul_kernel(%arg0: i32, %arg1: i32, %arg2: memref<16x1024xbf16, #tpu.memory_space<vmem>>, %arg3: memref<4096x512xbf16, #tpu.memory_space<vmem>>, %arg4: memref<1x512xf32, #tpu.memory_space<vmem>>, %arg5: memref<16x512xbf16, #tpu.memory_space<vmem>>, %arg6: memref<16x512xf32, #tpu.memory_space<vmem>>) attributes {dimension_semantics = [#tpu.dimension_semantics<parallel>, #tpu.dimension_semantics<arbitrary>], iteration_bounds = array<i64: 1, 4>, scalar_prefetch = 0 : i64, scratch_operands = 1 : i64, tpu.core_type = #tpu.core_type<tc>, window_params = [{transform_indices = @transform_0, window_bounds = array<i64: 16, 1024>}, {pipeline_mode = #tpu.pipeline_mode<synchronous>, transform_indices = @transform_1, window_bounds = array<i64: 4096, 512>}, {pipeline_mode = #tpu.pipeline_mode<synchronous>, transform_indices = @transform_2, window_bounds = array<i64: 1, 512>}, {transform_indices = @transform_3, window_bounds = array<i64: 16, 512>}]} {
    %c0_i32 = arith.constant 0 : i32
    %0 = arith.cmpi eq, %arg1, %c0_i32 : i32
    %1 = arith.extui %0 : i1 to i32
    %c0_i32_0 = arith.constant 0 : i32
    %2 = arith.cmpi ne, %1, %c0_i32_0 : i32
    scf.if %2 {
      %cst_8 = arith.constant 0.000000e+00 : f32
      %15 = vector.broadcast %cst_8 : f32 to vector<16x512xf32>
      %c0_9 = arith.constant 0 : index
      %c0_10 = arith.constant 0 : index
      %16 = vector.load %arg6[%c0_9, %c0_10] : memref<16x512xf32, #tpu.memory_space<vmem>>, vector<16x512xf32>
      tpu.vector_store %arg6[%c0_9, %c0_10], %15 {strides = array<i32>} : memref<16x512xf32, #tpu.memory_space<vmem>>, vector<16x512xf32>,
    } else {
    }
    %c1024_i32 = arith.constant 1024 : i32
    %3 = arith.muli %arg1, %c1024_i32 : i32
    %4 = tpu.assume_multiple %3, 1024 : i32
    %c0 = arith.constant 0 : index
    %c0_1 = arith.constant 0 : index
    %5 = vector.load %arg6[%c0, %c0_1] : memref<16x512xf32, #tpu.memory_space<vmem>>, vector<16x512xf32>
    %c0_2 = arith.constant 0 : index
    %c0_3 = arith.constant 0 : index
    %6 = vector.load %arg2[%c0_2, %c0_3] : memref<16x1024xbf16, #tpu.memory_space<vmem>>, vector<16x1024xbf16>
    %7 = arith.index_cast %4 : i32 to index
    %c0_4 = arith.constant 0 : index
    %8 = vector.load %arg3[%7, %c0_4] : memref<4096x512xbf16, #tpu.memory_space<vmem>>, vector<1024x512xbf16>
    %cst = arith.constant dense<0.000000e+00> : vector<16x512xf32>
    %9 = tpu.matmul %6, %8, %cst {dimension_numbers = #tpu.dot_dimension_numbers<[1], [0], [0], [1], [0, 0, 1, 1], [], []>} : vector<16x1024xbf16>, vector<1024x512xbf16>, vector<16x512xf32> -> vector<16x512xf32>
    %10 = arith.addf %5, %9 : vector<16x512xf32>
    %c0_5 = arith.constant 0 : index
    %c0_6 = arith.constant 0 : index
    %11 = vector.load %arg6[%c0_5, %c0_6] : memref<16x512xf32, #tpu.memory_space<vmem>>, vector<16x512xf32>
    tpu.vector_store %arg6[%c0_5, %c0_6], %10 {strides = array<i32>} : memref<16x512xf32, #tpu.memory_space<vmem>>, vector<16x512xf32>,
    %c3_i32 = arith.constant 3 : i32
    %12 = arith.cmpi eq, %arg1, %c3_i32 : i32
    %13 = arith.extui %12 : i1 to i32
    %c0_i32_7 = arith.constant 0 : i32
    %14 = arith.cmpi ne, %13, %c0_i32_7 : i32
    scf.if %14 {
      %c0_8 = arith.constant 0 : index
      %c0_9 = arith.constant 0 : index
      %15 = vector.load %arg6[%c0_8, %c0_9] : memref<16x512xf32, #tpu.memory_space<vmem>>, vector<16x512xf32>
      %c0_10 = arith.constant 0 : index
      %c0_11 = arith.constant 0 : index
      %16 = vector.load %arg4[%c0_10, %c0_11] : memref<1x512xf32, #tpu.memory_space<vmem>>, vector<1x512xf32>
      %17 = vector.broadcast %16 : vector<1x512xf32> to vector<16x512xf32>
      %18 = arith.addf %15, %17 : vector<16x512xf32>
      %cst_12 = arith.constant 0.000000e+00 : f32
      %19 = vector.broadcast %cst_12 : f32 to vector<16x512xf32>
      %20 = arith.cmpf oge, %18, %19 : vector<16x512xf32>
      %cst_13 = arith.constant 2.000000e-01 : f32
      %21 = vector.broadcast %cst_13 : f32 to vector<16x512xf32>
      %22 = arith.mulf %21, %18 : vector<16x512xf32>
      %23 = arith.select %20, %18, %22 : vector<16x512xi1>, vector<16x512xf32>
      %24 = arith.truncf %23 : vector<16x512xf32> to vector<16x512xbf16>
      %c0_14 = arith.constant 0 : index
      %c0_15 = arith.constant 0 : index
      %25 = vector.load %arg5[%c0_14, %c0_15] : memref<16x512xbf16, #tpu.memory_space<vmem>>, vector<16x512xbf16>
      tpu.vector_store %arg5[%c0_14, %c0_15], %24 {strides = array<i32>} : memref<16x512xbf16, #tpu.memory_space<vmem>>, vector<16x512xbf16>,
    } else {
    }
    return
  }
  func.func @transform_0(%arg0: i32, %arg1: i32) -> (i32, i32) {
    %c0_i32 = arith.constant 0 : i32
    return %arg0, %arg1 : i32, i32
  }
  func.func @transform_1(%arg0: i32, %arg1: i32) -> (i32, i32) {
    %c0_i32 = arith.constant 0 : i32
    %c0_i32_0 = arith.constant 0 : i32
    %c0_i32_1 = arith.constant 0 : i32
    return %c0_i32, %c0_i32_0 : i32, i32
  }
  func.func @transform_2(%arg0: i32, %arg1: i32) -> (i32, i32) {
    %c0_i32 = arith.constant 0 : i32
    %c0_i32_0 = arith.constant 0 : i32
    %c0_i32_1 = arith.constant 0 : i32
    return %c0_i32, %c0_i32_0 : i32, i32
  }
  func.func @transform_3(%arg0: i32, %arg1: i32) -> (i32, i32) {
    %c0_i32 = arith.constant 0 : i32
    %c0_i32_0 = arith.constant 0 : i32
    return %arg0, %c0_i32 : i32, i32
  }
}

module attributes {stable_mosaic.version = 11 : i64} {
  func.func @_conv_matmul_kernel(%arg0: i32, %arg1: i32, %arg2: memref<16x1024xbf16, #tpu.memory_space<vmem>>, %arg3: memref<8192x128xbf16, #tpu.memory_space<vmem>>, %arg4: memref<1x128xf32, #tpu.memory_space<vmem>>, %arg5: memref<16x128xf32, #tpu.memory_space<vmem>>, %arg6: memref<16x128xf32, #tpu.memory_space<vmem>>) attributes {dimension_semantics = [#tpu.dimension_semantics<parallel>, #tpu.dimension_semantics<arbitrary>], iteration_bounds = array<i64: 1, 8>, scalar_prefetch = 0 : i64, scratch_operands = 1 : i64, tpu.core_type = #tpu.core_type<tc>, window_params = [{transform_indices = @transform_0, window_bounds = array<i64: 16, 1024>}, {pipeline_mode = #tpu.pipeline_mode<synchronous>, transform_indices = @transform_1, window_bounds = array<i64: 8192, 128>}, {pipeline_mode = #tpu.pipeline_mode<synchronous>, transform_indices = @transform_2, window_bounds = array<i64: 1, 128>}, {transform_indices = @transform_3, window_bounds = array<i64: 16, 128>}]} {
    %c0_i32 = arith.constant 0 : i32
    %0 = arith.cmpi eq, %arg1, %c0_i32 : i32
    %1 = arith.extui %0 : i1 to i32
    %c0_i32_0 = arith.constant 0 : i32
    %2 = arith.cmpi ne, %1, %c0_i32_0 : i32
    scf.if %2 {
      %cst_8 = arith.constant 0.000000e+00 : f32
      %15 = vector.broadcast %cst_8 : f32 to vector<16x128xf32>
      %c0_9 = arith.constant 0 : index
      %c0_10 = arith.constant 0 : index
      %16 = vector.load %arg6[%c0_9, %c0_10] : memref<16x128xf32, #tpu.memory_space<vmem>>, vector<16x128xf32>
      tpu.vector_store %arg6[%c0_9, %c0_10], %15 {strides = array<i32>} : memref<16x128xf32, #tpu.memory_space<vmem>>, vector<16x128xf32>,
    } else {
    }
    %c1024_i32 = arith.constant 1024 : i32
    %3 = arith.muli %arg1, %c1024_i32 : i32
    %4 = tpu.assume_multiple %3, 1024 : i32
    %c0 = arith.constant 0 : index
    %c0_1 = arith.constant 0 : index
    %5 = vector.load %arg6[%c0, %c0_1] : memref<16x128xf32, #tpu.memory_space<vmem>>, vector<16x128xf32>
    %c0_2 = arith.constant 0 : index
    %c0_3 = arith.constant 0 : index
    %6 = vector.load %arg2[%c0_2, %c0_3] : memref<16x1024xbf16, #tpu.memory_space<vmem>>, vector<16x1024xbf16>
    %7 = arith.index_cast %4 : i32 to index
    %c0_4 = arith.constant 0 : index
    %8 = vector.load %arg3[%7, %c0_4] : memref<8192x128xbf16, #tpu.memory_space<vmem>>, vector<1024x128xbf16>
    %cst = arith.constant dense<0.000000e+00> : vector<16x128xf32>
    %9 = tpu.matmul %6, %8, %cst {dimension_numbers = #tpu.dot_dimension_numbers<[1], [0], [0], [1], [0, 0, 1, 1], [], []>} : vector<16x1024xbf16>, vector<1024x128xbf16>, vector<16x128xf32> -> vector<16x128xf32>
    %10 = arith.addf %5, %9 : vector<16x128xf32>
    %c0_5 = arith.constant 0 : index
    %c0_6 = arith.constant 0 : index
    %11 = vector.load %arg6[%c0_5, %c0_6] : memref<16x128xf32, #tpu.memory_space<vmem>>, vector<16x128xf32>
    tpu.vector_store %arg6[%c0_5, %c0_6], %10 {strides = array<i32>} : memref<16x128xf32, #tpu.memory_space<vmem>>, vector<16x128xf32>,
    %c7_i32 = arith.constant 7 : i32
    %12 = arith.cmpi eq, %arg1, %c7_i32 : i32
    %13 = arith.extui %12 : i1 to i32
    %c0_i32_7 = arith.constant 0 : i32
    %14 = arith.cmpi ne, %13, %c0_i32_7 : i32
    scf.if %14 {
      %c0_8 = arith.constant 0 : index
      %c0_9 = arith.constant 0 : index
      %15 = vector.load %arg6[%c0_8, %c0_9] : memref<16x128xf32, #tpu.memory_space<vmem>>, vector<16x128xf32>
      %c0_10 = arith.constant 0 : index
      %c0_11 = arith.constant 0 : index
      %16 = vector.load %arg4[%c0_10, %c0_11] : memref<1x128xf32, #tpu.memory_space<vmem>>, vector<1x128xf32>
      %17 = vector.broadcast %16 : vector<1x128xf32> to vector<16x128xf32>
      %18 = arith.addf %15, %17 : vector<16x128xf32>
      %c0_12 = arith.constant 0 : index
      %c0_13 = arith.constant 0 : index
      %19 = vector.load %arg5[%c0_12, %c0_13] : memref<16x128xf32, #tpu.memory_space<vmem>>, vector<16x128xf32>
      tpu.vector_store %arg5[%c0_12, %c0_13], %18 {strides = array<i32>} : memref<16x128xf32, #tpu.memory_space<vmem>>, vector<16x128xf32>,
    } else {
    }
    return
  }
  func.func @transform_0(%arg0: i32, %arg1: i32) -> (i32, i32) {
    %c0_i32 = arith.constant 0 : i32
    return %arg0, %arg1 : i32, i32
  }
  func.func @transform_1(%arg0: i32, %arg1: i32) -> (i32, i32) {
    %c0_i32 = arith.constant 0 : i32
    %c0_i32_0 = arith.constant 0 : i32
    %c0_i32_1 = arith.constant 0 : i32
    return %c0_i32, %c0_i32_0 : i32, i32
  }
  func.func @transform_2(%arg0: i32, %arg1: i32) -> (i32, i32) {
    %c0_i32 = arith.constant 0 : i32
    %c0_i32_0 = arith.constant 0 : i32
    %c0_i32_1 = arith.constant 0 : i32
    return %c0_i32, %c0_i32_0 : i32, i32
  }
  func.func @transform_3(%arg0: i32, %arg1: i32) -> (i32, i32) {
    %c0_i32 = arith.constant 0 : i32
    %c0_i32_0 = arith.constant 0 : i32
    return %arg0, %c0_i32 : i32, i32
  }
}

</mosaic_0001>

<bundles_post_ra>
// kernel: discriminator_forward.5
= control target key start
LH: loop header
LB: loop body
LE: loop exit
PB: predicated region body
PF: predicated region fallthrough
CT: control target
= control target key end

     0   :  { %s2389_s1 = inlined_call_operand.vmem [shape: bf16[128,128], index: 1, kind: input, shape index: {}]   ;;  %s2390_s0 = inlined_call_operand.vmem [shape: bf16[512,128], index: 0, kind: input, shape index: {}]   ;;  %s2391_s2 = inlined_call_operand.vmem [shape: f32[1,128], index: 2, kind: input, shape index: {}]   ;;  %s2392_s3 = inlined_call_operand.vmem [shape: bf16[512,128], index: 3, kind: output, shape index: {}]  }
   0x1   :  { %v2041_v0 = vld [vmem:[%s2389_s1 + $0x38] sm:$0xff]   ;;  %v2042_v1 = vld [vmem:[%s2389_s1 + $0x30] sm:$0xff]   ;;  %v2043_v2 = vld [vmem:[%s2389_s1 + $0x28] sm:$0xff]  }
   0x2   :  { %1945 = vmatprep.subr.bf16.mxu0 %v2041_v0  ;;  %2025 = vmatprep.subr.bf16.mxu1 %v2041_v0  ;;  %v2044_v3 = vld [vmem:[%s2389_s1 + $0x20] sm:$0xff]   ;;  %v2045_v6 = vld [vmem:[%s2389_s1 + $0x18] sm:$0xff]   ;;  %v2046_v7 = vld [vmem:[%s2389_s1 + $0x10] sm:$0xff]  }
   0x3   :  { %1946 = vmatpush3.bf16.msra.mxu0 %v2041_v0  ;;  %2033 = vmatpush3.bf16.msra.mxu1 %v2041_v0  ;;  %v2049_v4 = vld [vmem:[%s2390_s0] sm:$0xff]   ;;  %v2047_v8 = vld [vmem:[%s2389_s1 + $0x8] sm:$0xff]   ;;  %v2053_v12 = vld [vmem:[%s2390_s0 + $0x10] sm:$0xff]  }
   0x4   :  { %1947 = vmatprep.subr.bf16.mxu0 %v2042_v1  ;;  %2026 = vmatprep.subr.bf16.mxu1 %v2042_v1  ;;  %v2050_v5 = vld [vmem:[%s2390_s0 + $0x80] sm:$0xff]   ;;  %v2051_v10 = vld [vmem:[%s2390_s0 + $0x8] sm:$0xff]   ;;  %v2054_v13 = vld [vmem:[%s2390_s0 + $0x90] sm:$0xff]  }
   0x5   :  { %1961 = vmatprep.mubr.bf16.mxu0 %v2049_v4  ;;  %1993 = vmatprep.mubr.bf16.mxu1 %v2050_v5  ;;  %v2048_v9 = vld [vmem:[%s2389_s1] sm:$0xff]   ;;  %v2052_v11 = vld [vmem:[%s2390_s0 + $0x88] sm:$0xff]   ;;  %v2055_v14 = vld [vmem:[%s2390_s0 + $0x18] sm:$0xff]  }
   0x6   :  { %v2056_v15 = vld [vmem:[%s2390_s0 + $0x98] sm:$0xff]   ;;  %v2057_v16 = vld [vmem:[%s2390_s0 + $0x20] sm:$0xff]   ;;  %v2059_v18 = vld [vmem:[%s2390_s0 + $0x28] sm:$0xff]  }
   0x7   :  { %1948 = vmatpush3.bf16.msra.mxu0 %v2042_v1  ;;  %2034 = vmatpush3.bf16.msra.mxu1 %v2042_v1  ;;  %v2058_v17 = vld [vmem:[%s2390_s0 + $0xa0] sm:$0xff]   ;;  %v2060_v19 = vld [vmem:[%s2390_s0 + $0xa8] sm:$0xff]   ;;  %v2061_v20 = vld [vmem:[%s2390_s0 + $0x30] sm:$0xff]  }
   0x8   :  { %1949 = vmatprep.subr.bf16.mxu0 %v2043_v2  ;;  %2027 = vmatprep.subr.bf16.mxu1 %v2043_v2  ;;  %v2062_v21 = vld [vmem:[%s2390_s0 + $0xb0] sm:$0xff]   ;;  %v2063_v22 = vld [vmem:[%s2390_s0 + $0x38] sm:$0xff]   ;;  %v2065_v24 = vld [vmem:[%s2390_s0 + $0x40] sm:$0xff]  }
   0x9   :  { %v2064_v23 = vld [vmem:[%s2390_s0 + $0xb8] sm:$0xff]   ;;  %v2066_v25 = vld [vmem:[%s2390_s0 + $0xc0] sm:$0xff]   ;;  %v2067_v26 = vld [vmem:[%s2390_s0 + $0x48] sm:$0xff]  }
   0xa   :  { %v2068_v27 = vld [vmem:[%s2390_s0 + $0xc8] sm:$0xff]   ;;  %v2069_v28 = vld [vmem:[%s2390_s0 + $0x50] sm:$0xff]   ;;  %v2071_v30 = vld [vmem:[%s2390_s0 + $0x58] sm:$0xff]  }
   0xb   :  { %1950 = vmatpush3.bf16.msra.mxu0 %v2043_v2  ;;  %2035 = vmatpush3.bf16.msra.mxu1 %v2043_v2  ;;  %v2070_v29 = vld [vmem:[%s2390_s0 + $0xd0] sm:$0xff]   ;;  %v2072_v31 = vld [vmem:[%s2390_s0 + $0xd8] sm:$0xff]   ;;  %v2073_v32 = vld [vmem:[%s2390_s0 + $0x60] sm:$0xff]  }
   0xc   :  { %1951 = vmatprep.subr.bf16.mxu0 %v2044_v3  ;;  %2028 = vmatprep.subr.bf16.mxu1 %v2044_v3  ;;  %v2074_v33 = vld [vmem:[%s2390_s0 + $0xe0] sm:$0xff]   ;;  %v2075_v34 = vld [vmem:[%s2390_s0 + $0x68] sm:$0xff]   ;;  %v2077_v36 = vld [vmem:[%s2390_s0 + $0x70] sm:$0xff]  }
   0xd   :  { %v2076_v35 = vld [vmem:[%s2390_s0 + $0xe8] sm:$0xff]   ;;  %v2078_v37 = vld [vmem:[%s2390_s0 + $0xf0] sm:$0xff]   ;;  %v2079_v38 = vld [vmem:[%s2390_s0 + $0x78] sm:$0xff]  }
   0xe   :  { %v2080_v39 = vld [vmem:[%s2390_s0 + $0xf8] sm:$0xff]   ;;  %v2224_v40 = vld [vmem:[%s2391_s2] ss:$0 sm:$0xff] }
   0xf   :  { %1952 = vmatpush3.bf16.msra.mxu0 %v2044_v3  ;;  %2036 = vmatpush3.bf16.msra.mxu1 %v2044_v3 }
  0x10   :  { %1953 = vmatprep.subr.bf16.mxu0 %v2045_v6  ;;  %2029 = vmatprep.subr.bf16.mxu1 %v2045_v6 }
  0x13   :  { %1954 = vmatpush3.bf16.msra.mxu0 %v2045_v6  ;;  %2037 = vmatpush3.bf16.msra.mxu1 %v2045_v6 }
  0x14   :  { %1955 = vmatprep.subr.bf16.mxu0 %v2046_v7  ;;  %2030 = vmatprep.subr.bf16.mxu1 %v2046_v7 }
  0x17   :  { %1956 = vmatpush3.bf16.msra.mxu0 %v2046_v7  ;;  %2038 = vmatpush3.bf16.msra.mxu1 %v2046_v7 }
  0x18   :  { %1957 = vmatprep.subr.bf16.mxu0 %v2047_v8  ;;  %2031 = vmatprep.subr.bf16.mxu1 %v2047_v8 }
  0x1b   :  { %1958 = vmatpush3.bf16.msra.mxu0 %v2047_v8  ;;  %2039 = vmatpush3.bf16.msra.mxu1 %v2047_v8 }
  0x1c   :  { %1959 = vmatprep.subr.bf16.mxu0 %v2048_v9  ;;  %2032 = vmatprep.subr.bf16.mxu1 %v2048_v9 }
  0x1f   :  { %1960 = vmatpush3.bf16.msra.mxu0 %v2048_v9  ;;  %2040 = vmatpush3.bf16.msra.mxu1 %v2048_v9 }
  0x22   :  { %1962 = vmatmul.mubr.bf16.vlgmr.msra.gmra.mxu0 %v2051_v10  ;;  %1994 = vmatmul.mubr.bf16.vlgmr.msra.gmra.mxu1 %v2052_v11 }
  0x23   :  { %1965 = vmatprep.mubr.bf16.mxu0 %v2053_v12  ;;  %1997 = vmatprep.mubr.bf16.mxu1 %v2054_v13 }
  0x2a   :  { %1966 = vmatmul.mubr.bf16.gmra.mxu0 %v2055_v14  ;;  %1998 = vmatmul.mubr.bf16.gmra.mxu1 %v2056_v15 }
  0x2b   :  { %1969 = vmatprep.mubr.bf16.mxu0 %v2057_v16  ;;  %2001 = vmatprep.mubr.bf16.mxu1 %v2058_v17 }
  0x32   :  { %1970 = vmatmul.mubr.bf16.gmra.mxu0 %v2059_v18  ;;  %2002 = vmatmul.mubr.bf16.gmra.mxu1 %v2060_v19 }
  0x33   :  { %1973 = vmatprep.mubr.bf16.mxu0 %v2061_v20  ;;  %2005 = vmatprep.mubr.bf16.mxu1 %v2062_v21 }
  0x3a   :  { %1974 = vmatmul.mubr.bf16.gmra.mxu0 %v2063_v22  ;;  %2006 = vmatmul.mubr.bf16.gmra.mxu1 %v2064_v23 }
  0x3b   :  { %1977 = vmatprep.mubr.bf16.mxu0 %v2065_v24  ;;  %2009 = vmatprep.mubr.bf16.mxu1 %v2066_v25 }
  0x42   :  { %1978 = vmatmul.mubr.bf16.gmra.mxu0 %v2067_v26  ;;  %2010 = vmatmul.mubr.bf16.gmra.mxu1 %v2068_v27 }
  0x43   :  { %1981 = vmatprep.mubr.bf16.mxu0 %v2069_v28  ;;  %2013 = vmatprep.mubr.bf16.mxu1 %v2070_v29 }
  0x4a   :  { %1982 = vmatmul.mubr.bf16.gmra.mxu0 %v2071_v30  ;;  %2014 = vmatmul.mubr.bf16.gmra.mxu1 %v2072_v31 }
  0x4b   :  { %1985 = vmatprep.mubr.bf16.mxu0 %v2073_v32  ;;  %2017 = vmatprep.mubr.bf16.mxu1 %v2074_v33 }
  0x52   :  { %1986 = vmatmul.mubr.bf16.gmra.mxu0 %v2075_v34  ;;  %2018 = vmatmul.mubr.bf16.gmra.mxu1 %v2076_v35 }
  0x53   :  { %1989 = vmatprep.mubr.bf16.mxu0 %v2077_v36  ;;  %2021 = vmatprep.mubr.bf16.mxu1 %v2078_v37 }
  0x5a   :  { %1990 = vmatmul.mubr.bf16.gmra.mxu0 %v2079_v38  ;;  %2022 = vmatmul.mubr.bf16.gmra.mxu1 %v2080_v39 }
  0xe2   :  { %v1963_v41 = vpop.f32.mrf.mxu0  ;;  %v1995_v42 = vpop.f32.mrf.mxu1 }
  0xe3   :  { %v965_v43 = vadd.f32 %v1963_v41, %v2224_v40  ;;  %v997_v44 = vadd.f32 %v1995_v42, %v2224_v40 }
  0xe4   :  { %v506_v45 = vpop.f32.mrf.mxu0  ;;  %v634_v46 = vpop.f32.mrf.mxu1 }
  0xe5   :  { %vm1029_vm0 = vcmp.ge.f32.partialorder %v965_v43, 0.0  ;;  %v1093_v47 = vmul.f32 0.2, %v965_v43  ;;  %vm1061_vm1 = vcmp.ge.f32.partialorder %v997_v44, 0.0  ;;  %v1125_v48 = vmul.f32 0.2, %v997_v44 }
  0xe6   :  { %v963_v49 = vadd.f32 %v2224_v40, %v506_v45  ;;  %v995_v50 = vadd.f32 %v2224_v40, %v634_v46  ;;  %v1964_v51 = vpop.f32.mrf.mxu0  ;;  %v1996_v52 = vpop.f32.mrf.mxu1 }
  0xe7   :  { %v1157_v53 = vsel %vm1029_vm0, %v965_v43, %v1093_v47  ;;  %v966_v54 = vadd.f32 %v1964_v51, %v2224_v40  ;;  %v998_v55 = vadd.f32 %v1996_v52, %v2224_v40  ;;  %v1189_v56 = vsel %vm1061_vm1, %v997_v44, %v1125_v48 }
  0xe8   :  { %vm1027_vm2 = vcmp.ge.f32.partialorder %v963_v49, 0.0  ;;  %v1091_v57 = vmul.f32 0.2, %v963_v49  ;;  %vm1059_vm3 = vcmp.ge.f32.partialorder %v995_v50, 0.0  ;;  %v509_v58 = vpop.f32.mrf.mxu0  ;;  %v637_v59 = vpop.f32.mrf.mxu1  ;;  %v1123_v63 = vmul.f32 0.2, %v995_v50 }
  0xe9   :  { %vm1030_vm4 = vcmp.ge.f32.partialorder %v966_v54, 0.0  ;;  %v1094_v60 = vmul.f32 0.2, %v966_v54  ;;  %vm1062_vm5 = vcmp.ge.f32.partialorder %v998_v55, 0.0  ;;  %v1126_v61 = vmul.f32 0.2, %v998_v55 }
  0xea   :  { %v1155_v62 = vsel %vm1027_vm2, %v963_v49, %v1091_v57  ;;  %v964_v0 = vadd.f32 %v2224_v40, %v509_v58  ;;  %v996_v1 = vadd.f32 %v2224_v40, %v637_v59  ;;  %v1967_v2 = vpop.f32.mrf.mxu0  ;;  %v1999_v3 = vpop.f32.mrf.mxu1  ;;  %v1187_v15 = vsel %vm1059_vm3, %v995_v50, %v1123_v63 }
  0xeb   :  { %v1158_v4 = vsel %vm1030_vm4, %v966_v54, %v1094_v60  ;;  %v1190_v5 = vsel %vm1062_vm5, %v998_v55, %v1126_v61  ;;  %v969_v6 = vadd.f32 %v1967_v2, %v2224_v40  ;;  %v1001_v7 = vadd.f32 %v1999_v3, %v2224_v40 }
  0xec   :  { %v1722_v8 = vpack.c.bf16 %v1158_v4, %v1157_v53  ;;  %v1802_v9 = vpack.c.bf16 %v1190_v5, %v1189_v56  ;;  %vm1028_vm6 = vcmp.ge.f32.partialorder %v964_v0, 0.0  ;;  %v1092_v10 = vmul.f32 0.2, %v964_v0  ;;  %v522_v11 = vpop.f32.mrf.mxu0  ;;  %v650_v12 = vpop.f32.mrf.mxu1 }
  0xed   :  { %vm1060_vm7 = vcmp.ge.f32.partialorder %v996_v1, 0.0  ;;  %v1124_v13 = vmul.f32 0.2, %v996_v1  ;;  %vm1033_vm8 = vcmp.ge.f32.partialorder %v969_v6, 0.0  ;;  %v1097_v14 = vmul.f32 0.2, %v969_v6 }
  0xee   :  { %1874 = vst [vmem:[%s2392_s3 + $0x8] sm:$0xff] %v1722_v8   ;;  %1890 = vst [vmem:[%s2392_s3 + $0x88] sm:$0xff] %v1802_v9   ;;  %v1156_v16 = vsel %vm1028_vm6, %v964_v0, %v1092_v10  ;;  %v1129_v17 = vmul.f32 0.2, %v1001_v7  ;;  %v967_v18 = vadd.f32 %v2224_v40, %v522_v11  ;;  %v1968_v19 = vpop.f32.mrf.mxu0  ;;  %v2000_v20 = vpop.f32.mrf.mxu1  ;;  %vm1065_vm9 = vcmp.ge.f32.partialorder %v1001_v7, 0.0 }
  0xef   :  { %v1717_v21 = vpack.c.bf16 %v1156_v16, %v1155_v62  ;;  %v1188_v22 = vsel %vm1060_vm7, %v996_v1, %v1124_v13  ;;  %v999_v23 = vadd.f32 %v2224_v40, %v650_v12  ;;  %v1161_v25 = vsel %vm1033_vm8, %v969_v6, %v1097_v14 }
  0xf0   :  { %v1797_v24 = vpack.c.bf16 %v1188_v22, %v1187_v15  ;;  %vm1031_vm10 = vcmp.ge.f32.partialorder %v967_v18, 0.0  ;;  %v1095_v26 = vmul.f32 0.2, %v967_v18  ;;  %v525_v27 = vpop.f32.mrf.mxu0  ;;  %v653_v28 = vpop.f32.mrf.mxu1  ;;  %v970_v30 = vadd.f32 %v1968_v19, %v2224_v40 }
  0xf1   :  { %1718 = vst [vmem:[%s2392_s3] sm:$0xff] %v1717_v21   ;;  %vm1063_vm11 = vcmp.ge.f32.partialorder %v999_v23, 0.0  ;;  %v1127_v29 = vmul.f32 0.2, %v999_v23  ;;  %v1002_v31 = vadd.f32 %v2000_v20, %v2224_v40  ;;  %v1193_v32 = vsel %vm1065_vm9, %v1001_v7, %v1129_v17 }
  0xf2   :  { %1889 = vst [vmem:[%s2392_s3 + $0x80] sm:$0xff] %v1797_v24   ;;  %v1159_v33 = vsel %vm1031_vm10, %v967_v18, %v1095_v26  ;;  %v968_v34 = vadd.f32 %v2224_v40, %v525_v27  ;;  %v1000_v35 = vadd.f32 %v2224_v40, %v653_v28  ;;  %v1971_v36 = vpop.f32.mrf.mxu0  ;;  %v2003_v37 = vpop.f32.mrf.mxu1  ;;  %vm1034_vm12 = vcmp.ge.f32.partialorder %v970_v30, 0.0 }
  0xf3   :  { %v1191_v38 = vsel %vm1063_vm11, %v999_v23, %v1127_v29  ;;  %v1098_v39 = vmul.f32 0.2, %v970_v30  ;;  %vm1066_vm13 = vcmp.ge.f32.partialorder %v1002_v31, 0.0  ;;  %v1130_v41 = vmul.f32 0.2, %v1002_v31 }
  0xf4   :  { %vm1032_vm14 = vcmp.ge.f32.partialorder %v968_v34, 0.0  ;;  %v1096_v42 = vmul.f32 0.2, %v968_v34  ;;  %vm1064_vm15 = vcmp.ge.f32.partialorder %v1000_v35, 0.0  ;;  %v538_v43 = vpop.f32.mrf.mxu0  ;;  %v666_v44 = vpop.f32.mrf.mxu1  ;;  %v1128_v46 = vmul.f32 0.2, %v1000_v35 }
  0xf5   :  { %v1162_v45 = vsel %vm1034_vm12, %v970_v30, %v1098_v39  ;;  %v973_v47 = vadd.f32 %v1971_v36, %v2224_v40  ;;  %v1005_v48 = vadd.f32 %v2003_v37, %v2224_v40  ;;  %v1194_v50 = vsel %vm1066_vm13, %v1002_v31, %v1130_v41 }
  0xf6   :  { %v1732_v49 = vpack.c.bf16 %v1162_v45, %v1161_v25  ;;  %v1160_v51 = vsel %vm1032_vm14, %v968_v34, %v1096_v42  ;;  %v971_v52 = vadd.f32 %v2224_v40, %v538_v43  ;;  %v1972_v53 = vpop.f32.mrf.mxu0  ;;  %v2004_v54 = vpop.f32.mrf.mxu1  ;;  %v1812_v55 = vpack.c.bf16 %v1194_v50, %v1193_v32 }
  0xf7   :  { %v1727_v56 = vpack.c.bf16 %v1160_v51, %v1159_v33  ;;  %v1192_v57 = vsel %vm1064_vm15, %v1000_v35, %v1128_v46  ;;  %vm1037_vm0 = vcmp.ge.f32.partialorder %v973_v47, 0.0  ;;  %v1101_v59 = vmul.f32 0.2, %v973_v47 }
  0xf8   :  { %1876 = vst [vmem:[%s2392_s3 + $0x18] sm:$0xff] %v1732_v49   ;;  %v1807_v58 = vpack.c.bf16 %v1192_v57, %v1191_v38  ;;  %vm1069_vm1 = vcmp.ge.f32.partialorder %v1005_v48, 0.0  ;;  %v1133_v60 = vmul.f32 0.2, %v1005_v48  ;;  %v541_v61 = vpop.f32.mrf.mxu0  ;;  %v669_v62 = vpop.f32.mrf.mxu1  ;;  %1892 = vst [vmem:[%s2392_s3 + $0x98] sm:$0xff] %v1812_v55   ;;  %vm1035_vm2 = vcmp.ge.f32.partialorder %v971_v52, 0.0 }
  0xf9   :  { %1875 = vst [vmem:[%s2392_s3 + $0x10] sm:$0xff] %v1727_v56   ;;  %v1099_v63 = vmul.f32 0.2, %v971_v52  ;;  %v1003_v0 = vadd.f32 %v2224_v40, %v666_v44  ;;  %v974_v1 = vadd.f32 %v1972_v53, %v2224_v40  ;;  %v1165_v2 = vsel %vm1037_vm0, %v973_v47, %v1101_v59 }
  0xfa   :  { %1891 = vst [vmem:[%s2392_s3 + $0x90] sm:$0xff] %v1807_v58   ;;  %v1197_v3 = vsel %vm1069_vm1, %v1005_v48, %v1133_v60  ;;  %v1006_v4 = vadd.f32 %v2004_v54, %v2224_v40  ;;  %v972_v5 = vadd.f32 %v2224_v40, %v541_v61  ;;  %v1975_v6 = vpop.f32.mrf.mxu0  ;;  %v2007_v7 = vpop.f32.mrf.mxu1  ;;  %v1004_v16 = vadd.f32 %v2224_v40, %v669_v62 }
  0xfb   :  { %v1163_v8 = vsel %vm1035_vm2, %v971_v52, %v1099_v63  ;;  %vm1067_vm3 = vcmp.ge.f32.partialorder %v1003_v0, 0.0  ;;  %v1131_v9 = vmul.f32 0.2, %v1003_v0  ;;  %vm1038_vm4 = vcmp.ge.f32.partialorder %v974_v1, 0.0 }
  0xfc   :  { %v1102_v10 = vmul.f32 0.2, %v974_v1  ;;  %vm1070_vm5 = vcmp.ge.f32.partialorder %v1006_v4, 0.0  ;;  %v1134_v11 = vmul.f32 0.2, %v1006_v4  ;;  %vm1036_vm6 = vcmp.ge.f32.partialorder %v972_v5, 0.0  ;;  %v554_v12 = vpop.f32.mrf.mxu0  ;;  %v682_v13 = vpop.f32.mrf.mxu1 }
  0xfd   :  { %v1195_v14 = vsel %vm1067_vm3, %v1003_v0, %v1131_v9  ;;  %v1100_v15 = vmul.f32 0.2, %v972_v5  ;;  %v977_v17 = vadd.f32 %v1975_v6, %v2224_v40  ;;  %v1009_v20 = vadd.f32 %v2007_v7, %v2224_v40 }
  0xfe   :  { %v1166_v18 = vsel %vm1038_vm4, %v974_v1, %v1102_v10  ;;  %v1198_v19 = vsel %vm1070_vm5, %v1006_v4, %v1134_v11  ;;  %v975_v21 = vadd.f32 %v2224_v40, %v554_v12  ;;  %v1976_v22 = vpop.f32.mrf.mxu0  ;;  %v2008_v23 = vpop.f32.mrf.mxu1  ;;  %vm1068_vm7 = vcmp.ge.f32.partialorder %v1004_v16, 0.0 }
  0xff   :  { %v1742_v24 = vpack.c.bf16 %v1166_v18, %v1165_v2  ;;  %v1822_v25 = vpack.c.bf16 %v1198_v19, %v1197_v3  ;;  %v1164_v26 = vsel %vm1036_vm6, %v972_v5, %v1100_v15  ;;  %v1132_v28 = vmul.f32 0.2, %v1004_v16 }
 0x100   :  { %v1737_v27 = vpack.c.bf16 %v1164_v26, %v1163_v8  ;;  %vm1041_vm8 = vcmp.ge.f32.partialorder %v977_v17, 0.0  ;;  %v1105_v29 = vmul.f32 0.2, %v977_v17  ;;  %v557_v30 = vpop.f32.mrf.mxu0  ;;  %v685_v31 = vpop.f32.mrf.mxu1  ;;  %vm1073_vm9 = vcmp.ge.f32.partialorder %v1009_v20, 0.0 }
 0x101   :  { %1878 = vst [vmem:[%s2392_s3 + $0x28] sm:$0xff] %v1742_v24   ;;  %1894 = vst [vmem:[%s2392_s3 + $0xa8] sm:$0xff] %v1822_v25   ;;  %v1137_v32 = vmul.f32 0.2, %v1009_v20  ;;  %vm1039_vm10 = vcmp.ge.f32.partialorder %v975_v21, 0.0  ;;  %v1196_v34 = vsel %vm1068_vm7, %v1004_v16, %v1132_v28  ;;  %v1007_v36 = vadd.f32 %v2224_v40, %v682_v13 }
 0x102   :  { %v1103_v33 = vmul.f32 0.2, %v975_v21  ;;  %1877 = vst [vmem:[%s2392_s3 + $0x20] sm:$0xff] %v1737_v27   ;;  %v1169_v35 = vsel %vm1041_vm8, %v977_v17, %v1105_v29  ;;  %v978_v37 = vadd.f32 %v1976_v22, %v2224_v40  ;;  %v1979_v38 = vpop.f32.mrf.mxu0  ;;  %v2011_v39 = vpop.f32.mrf.mxu1  ;;  %v1817_v41 = vpack.c.bf16 %v1196_v34, %v1195_v14 }
 0x103   :  { %v1201_v42 = vsel %vm1073_vm9, %v1009_v20, %v1137_v32  ;;  %v1010_v44 = vadd.f32 %v2008_v23, %v2224_v40  ;;  %vm1071_vm11 = vcmp.ge.f32.partialorder %v1007_v36, 0.0  ;;  %v1135_v45 = vmul.f32 0.2, %v1007_v36 }
 0x104   :  { %v1167_v43 = vsel %vm1039_vm10, %v975_v21, %v1103_v33  ;;  %vm1042_vm12 = vcmp.ge.f32.partialorder %v978_v37, 0.0  ;;  %v1106_v46 = vmul.f32 0.2, %v978_v37  ;;  %v570_v47 = vpop.f32.mrf.mxu0  ;;  %v698_v48 = vpop.f32.mrf.mxu1  ;;  %1893 = vst [vmem:[%s2392_s3 + $0xa0] sm:$0xff] %v1817_v41   ;;  %v976_v50 = vadd.f32 %v2224_v40, %v557_v30 }
 0x105   :  { %vm1074_vm13 = vcmp.ge.f32.partialorder %v1010_v44, 0.0  ;;  %v1138_v49 = vmul.f32 0.2, %v1010_v44  ;;  %v1008_v51 = vadd.f32 %v2224_v40, %v685_v31  ;;  %v1199_v52 = vsel %vm1071_vm11, %v1007_v36, %v1135_v45 }
 0x106   :  { %v1170_v53 = vsel %vm1042_vm12, %v978_v37, %v1106_v46  ;;  %v981_v54 = vadd.f32 %v1979_v38, %v2224_v40  ;;  %v1013_v55 = vadd.f32 %v2011_v39, %v2224_v40  ;;  %v1980_v56 = vpop.f32.mrf.mxu0  ;;  %v2012_v57 = vpop.f32.mrf.mxu1  ;;  %vm1040_vm14 = vcmp.ge.f32.partialorder %v976_v50, 0.0 }
 0x107   :  { %v1752_v58 = vpack.c.bf16 %v1170_v53, %v1169_v35  ;;  %v1202_v59 = vsel %vm1074_vm13, %v1010_v44, %v1138_v49  ;;  %v1104_v60 = vmul.f32 0.2, %v976_v50  ;;  %vm1072_vm15 = vcmp.ge.f32.partialorder %v1008_v51, 0.0 }
 0x108   :  { %v1832_v61 = vpack.c.bf16 %v1202_v59, %v1201_v42  ;;  %v1136_v62 = vmul.f32 0.2, %v1008_v51  ;;  %vm1045_vm0 = vcmp.ge.f32.partialorder %v981_v54, 0.0  ;;  %v573_v63 = vpop.f32.mrf.mxu0  ;;  %v701_v0 = vpop.f32.mrf.mxu1  ;;  %v1109_v2 = vmul.f32 0.2, %v981_v54 }
 0x109   :  { %1880 = vst [vmem:[%s2392_s3 + $0x38] sm:$0xff] %v1752_v58   ;;  %v1168_v1 = vsel %vm1040_vm14, %v976_v50, %v1104_v60  ;;  %vm1077_vm1 = vcmp.ge.f32.partialorder %v1013_v55, 0.0  ;;  %v1141_v3 = vmul.f32 0.2, %v1013_v55  ;;  %v979_v6 = vadd.f32 %v2224_v40, %v570_v47 }
 0x10a   :  { %1896 = vst [vmem:[%s2392_s3 + $0xb8] sm:$0xff] %v1832_v61   ;;  %v1747_v4 = vpack.c.bf16 %v1168_v1, %v1167_v43  ;;  %v1200_v5 = vsel %vm1072_vm15, %v1008_v51, %v1136_v62  ;;  %v1011_v7 = vadd.f32 %v2224_v40, %v698_v48  ;;  %v1983_v8 = vpop.f32.mrf.mxu0  ;;  %v2015_v9 = vpop.f32.mrf.mxu1  ;;  %v1173_v11 = vsel %vm1045_vm0, %v981_v54, %v1109_v2 }
 0x10b   :  { %v1827_v10 = vpack.c.bf16 %v1200_v5, %v1199_v52  ;;  %v1205_v12 = vsel %vm1077_vm1, %v1013_v55, %v1141_v3  ;;  %v982_v13 = vadd.f32 %v1980_v56, %v2224_v40  ;;  %vm1043_vm2 = vcmp.ge.f32.partialorder %v979_v6, 0.0 }
 0x10c   :  { %1879 = vst [vmem:[%s2392_s3 + $0x30] sm:$0xff] %v1747_v4   ;;  %v1107_v14 = vmul.f32 0.2, %v979_v6  ;;  %vm1075_vm3 = vcmp.ge.f32.partialorder %v1011_v7, 0.0  ;;  %v1139_v15 = vmul.f32 0.2, %v1011_v7  ;;  %v586_v16 = vpop.f32.mrf.mxu0  ;;  %v714_v17 = vpop.f32.mrf.mxu1  ;;  %v1014_v19 = vadd.f32 %v2012_v57, %v2224_v40 }
 0x10d   :  { %1895 = vst [vmem:[%s2392_s3 + $0xb0] sm:$0xff] %v1827_v10   ;;  %vm1046_vm4 = vcmp.ge.f32.partialorder %v982_v13, 0.0  ;;  %v1110_v18 = vmul.f32 0.2, %v982_v13  ;;  %v980_v20 = vadd.f32 %v2224_v40, %v573_v63  ;;  %v1012_v23 = vadd.f32 %v2224_v40, %v701_v0 }
 0x10e   :  { %v1171_v21 = vsel %vm1043_vm2, %v979_v6, %v1107_v14  ;;  %v1203_v22 = vsel %vm1075_vm3, %v1011_v7, %v1139_v15  ;;  %v985_v24 = vadd.f32 %v1983_v8, %v2224_v40  ;;  %v1984_v25 = vpop.f32.mrf.mxu0  ;;  %v2016_v26 = vpop.f32.mrf.mxu1  ;;  %vm1078_vm5 = vcmp.ge.f32.partialorder %v1014_v19, 0.0 }
 0x10f   :  { %v1174_v27 = vsel %vm1046_vm4, %v982_v13, %v1110_v18  ;;  %v1142_v28 = vmul.f32 0.2, %v1014_v19  ;;  %vm1044_vm6 = vcmp.ge.f32.partialorder %v980_v20, 0.0  ;;  %v1108_v30 = vmul.f32 0.2, %v980_v20 }
 0x110   :  { %v1762_v29 = vpack.c.bf16 %v1174_v27, %v1173_v11  ;;  %vm1076_vm7 = vcmp.ge.f32.partialorder %v1012_v23, 0.0  ;;  %v1140_v31 = vmul.f32 0.2, %v1012_v23  ;;  %v589_v32 = vpop.f32.mrf.mxu0  ;;  %v717_v33 = vpop.f32.mrf.mxu1  ;;  %vm1049_vm8 = vcmp.ge.f32.partialorder %v985_v24, 0.0 }
 0x111   :  { %v1206_v34 = vsel %vm1078_vm5, %v1014_v19, %v1142_v28  ;;  %v1113_v35 = vmul.f32 0.2, %v985_v24  ;;  %v1017_v36 = vadd.f32 %v2015_v9, %v2224_v40  ;;  %v1172_v38 = vsel %vm1044_vm6, %v980_v20, %v1108_v30 }
 0x112   :  { %1882 = vst [vmem:[%s2392_s3 + $0x48] sm:$0xff] %v1762_v29   ;;  %v1842_v37 = vpack.c.bf16 %v1206_v34, %v1205_v12  ;;  %v1204_v39 = vsel %vm1076_vm7, %v1012_v23, %v1140_v31  ;;  %v983_v41 = vadd.f32 %v2224_v40, %v586_v16  ;;  %v1987_v42 = vpop.f32.mrf.mxu0  ;;  %v2019_v43 = vpop.f32.mrf.mxu1  ;;  %v1757_v44 = vpack.c.bf16 %v1172_v38, %v1171_v21 }
 0x113   :  { %v1837_v45 = vpack.c.bf16 %v1204_v39, %v1203_v22  ;;  %v1177_v46 = vsel %vm1049_vm8, %v985_v24, %v1113_v35  ;;  %vm1081_vm9 = vcmp.ge.f32.partialorder %v1017_v36, 0.0  ;;  %v1145_v47 = vmul.f32 0.2, %v1017_v36 }
 0x114   :  { %1898 = vst [vmem:[%s2392_s3 + $0xc8] sm:$0xff] %v1842_v37   ;;  %vm1047_vm10 = vcmp.ge.f32.partialorder %v983_v41, 0.0  ;;  %v1111_v48 = vmul.f32 0.2, %v983_v41  ;;  %v1015_v49 = vadd.f32 %v2224_v40, %v714_v17  ;;  %v602_v50 = vpop.f32.mrf.mxu0  ;;  %v730_v51 = vpop.f32.mrf.mxu1  ;;  %1881 = vst [vmem:[%s2392_s3 + $0x40] sm:$0xff] %v1757_v44   ;;  %v986_v52 = vadd.f32 %v1984_v25, %v2224_v40 }
 0x115   :  { %1897 = vst [vmem:[%s2392_s3 + $0xc0] sm:$0xff] %v1837_v45   ;;  %v1018_v53 = vadd.f32 %v2016_v26, %v2224_v40  ;;  %v984_v54 = vadd.f32 %v2224_v40, %v589_v32  ;;  %v1016_v55 = vadd.f32 %v2224_v40, %v717_v33  ;;  %v1209_v56 = vsel %vm1081_vm9, %v1017_v36, %v1145_v47 }
 0x116   :  { %v1175_v57 = vsel %vm1047_vm10, %v983_v41, %v1111_v48  ;;  %vm1079_vm11 = vcmp.ge.f32.partialorder %v1015_v49, 0.0  ;;  %v1143_v58 = vmul.f32 0.2, %v1015_v49  ;;  %v1988_v59 = vpop.f32.mrf.mxu0  ;;  %v2020_v60 = vpop.f32.mrf.mxu1  ;;  %vm1050_vm12 = vcmp.ge.f32.partialorder %v986_v52, 0.0 }
 0x117   :  { %v1114_v61 = vmul.f32 0.2, %v986_v52  ;;  %vm1082_vm13 = vcmp.ge.f32.partialorder %v1018_v53, 0.0  ;;  %v1146_v62 = vmul.f32 0.2, %v1018_v53  ;;  %vm1048_vm14 = vcmp.ge.f32.partialorder %v984_v54, 0.0 }
 0x118   :  { %v1207_v63 = vsel %vm1079_vm11, %v1015_v49, %v1143_v58  ;;  %v1112_v0 = vmul.f32 0.2, %v984_v54  ;;  %vm1080_vm15 = vcmp.ge.f32.partialorder %v1016_v55, 0.0  ;;  %v605_v1 = vpop.f32.mrf.mxu0  ;;  %v733_v2 = vpop.f32.mrf.mxu1  ;;  %v1144_v5 = vmul.f32 0.2, %v1016_v55 }
 0x119   :  { %v1178_v3 = vsel %vm1050_vm12, %v986_v52, %v1114_v61  ;;  %v1210_v4 = vsel %vm1082_vm13, %v1018_v53, %v1146_v62  ;;  %v989_v6 = vadd.f32 %v1987_v42, %v2224_v40  ;;  %v1021_v10 = vadd.f32 %v2019_v43, %v2224_v40 }
 0x11a   :  { %v1772_v7 = vpack.c.bf16 %v1178_v3, %v1177_v46  ;;  %v1852_v8 = vpack.c.bf16 %v1210_v4, %v1209_v56  ;;  %v1176_v9 = vsel %vm1048_vm14, %v984_v54, %v1112_v0  ;;  %v1991_v11 = vpop.f32.mrf.mxu0  ;;  %v2023_v12 = vpop.f32.mrf.mxu1  ;;  %v1208_v14 = vsel %vm1080_vm15, %v1016_v55, %v1144_v5 }
 0x11b   :  { %v1767_v13 = vpack.c.bf16 %v1176_v9, %v1175_v57  ;;  %vm1053_vm0 = vcmp.ge.f32.partialorder %v989_v6, 0.0  ;;  %v1117_v15 = vmul.f32 0.2, %v989_v6  ;;  %v1847_v16 = vpack.c.bf16 %v1208_v14, %v1207_v63 }
 0x11c   :  { %1884 = vst [vmem:[%s2392_s3 + $0x58] sm:$0xff] %v1772_v7   ;;  %1900 = vst [vmem:[%s2392_s3 + $0xd8] sm:$0xff] %v1852_v8   ;;  %vm1085_vm1 = vcmp.ge.f32.partialorder %v1021_v10, 0.0  ;;  %v1149_v17 = vmul.f32 0.2, %v1021_v10  ;;  %v987_v18 = vadd.f32 %v2224_v40, %v602_v50  ;;  %v1019_v19 = vadd.f32 %v2224_v40, %v730_v51  ;;  %v618_v25 = vpop.f32.mrf.mxu0  ;;  %v746_v26 = vpop.f32.mrf.mxu1 }
 0x11d   :  { %1883 = vst [vmem:[%s2392_s3 + $0x50] sm:$0xff] %v1767_v13   ;;  %v990_v20 = vadd.f32 %v1988_v59, %v2224_v40  ;;  %v1022_v21 = vadd.f32 %v2020_v60, %v2224_v40  ;;  %1899 = vst [vmem:[%s2392_s3 + $0xd0] sm:$0xff] %v1847_v16   ;;  %v1181_v22 = vsel %vm1053_vm0, %v989_v6, %v1117_v15 }
 0x11e   :  { %vm1051_vm2 = vcmp.ge.f32.partialorder %v987_v18, 0.0  ;;  %v1115_v23 = vmul.f32 0.2, %v987_v18  ;;  %v988_v24 = vadd.f32 %v2224_v40, %v605_v1  ;;  %v1213_v27 = vsel %vm1085_vm1, %v1021_v10, %v1149_v17  ;;  %v1992_v39 = vpop.f32.mrf.mxu0  ;;  %v2024_v41 = vpop.f32.mrf.mxu1 }
 0x11f   :  { %vm1083_vm3 = vcmp.ge.f32.partialorder %v1019_v19, 0.0  ;;  %vm1054_vm4 = vcmp.ge.f32.partialorder %v990_v20, 0.0  ;;  %v1118_v28 = vmul.f32 0.2, %v990_v20  ;;  %v1147_v29 = vmul.f32 0.2, %v1019_v19 }
 0x120   :  { %vm1086_vm5 = vcmp.ge.f32.partialorder %v1022_v21, 0.0  ;;  %v1150_v30 = vmul.f32 0.2, %v1022_v21  ;;  %vm1052_vm6 = vcmp.ge.f32.partialorder %v988_v24, 0.0  ;;  %v1179_v31 = vsel %vm1051_vm2, %v987_v18, %v1115_v23  ;;  %v621_v55 = vpop.f32.mrf.mxu0  ;;  %v749_v56 = vpop.f32.mrf.mxu1 }
 0x121   :  { %v1182_v32 = vsel %vm1054_vm4, %v990_v20, %v1118_v28  ;;  %v1116_v33 = vmul.f32 0.2, %v988_v24  ;;  %v1020_v34 = vadd.f32 %v2224_v40, %v733_v2  ;;  %v993_v37 = vadd.f32 %v1991_v11, %v2224_v40 }
 0x122   :  { %v1782_v35 = vpack.c.bf16 %v1182_v32, %v1181_v22  ;;  %v1214_v36 = vsel %vm1086_vm5, %v1022_v21, %v1150_v30  ;;  %v1025_v38 = vadd.f32 %v2023_v12, %v2224_v40  ;;  %v1211_v45 = vsel %vm1083_vm3, %v1019_v19, %v1147_v29 }
 0x123   :  { %v1862_v42 = vpack.c.bf16 %v1214_v36, %v1213_v27  ;;  %v1180_v43 = vsel %vm1052_vm6, %v988_v24, %v1116_v33  ;;  %vm1084_vm7 = vcmp.ge.f32.partialorder %v1020_v34, 0.0  ;;  %v1148_v44 = vmul.f32 0.2, %v1020_v34 }
 0x124   :  { %1886 = vst [vmem:[%s2392_s3 + $0x68] sm:$0xff] %v1782_v35   ;;  %v1777_v46 = vpack.c.bf16 %v1180_v43, %v1179_v31  ;;  %vm1057_vm8 = vcmp.ge.f32.partialorder %v993_v37, 0.0  ;;  %v1121_v47 = vmul.f32 0.2, %v993_v37  ;;  %vm1089_vm9 = vcmp.ge.f32.partialorder %v1025_v38, 0.0 }
 0x125   :  { %1902 = vst [vmem:[%s2392_s3 + $0xe8] sm:$0xff] %v1862_v42   ;;  %v1212_v48 = vsel %vm1084_vm7, %v1020_v34, %v1148_v44  ;;  %v1153_v49 = vmul.f32 0.2, %v1025_v38  ;;  %v991_v50 = vadd.f32 %v2224_v40, %v618_v25  ;;  %v1023_v52 = vadd.f32 %v2224_v40, %v746_v26 }
 0x126   :  { %1885 = vst [vmem:[%s2392_s3 + $0x60] sm:$0xff] %v1777_v46   ;;  %v1857_v51 = vpack.c.bf16 %v1212_v48, %v1211_v45  ;;  %v994_v53 = vadd.f32 %v1992_v39, %v2224_v40  ;;  %v1026_v54 = vadd.f32 %v2024_v41, %v2224_v40  ;;  %v1185_v57 = vsel %vm1057_vm8, %v993_v37, %v1121_v47 }
 0x127   :  { %v1217_v58 = vsel %vm1089_vm9, %v1025_v38, %v1153_v49  ;;  %v1119_v60 = vmul.f32 0.2, %v991_v50  ;;  %v992_v62 = vadd.f32 %v2224_v40, %v621_v55  ;;  %v1024_v63 = vadd.f32 %v2224_v40, %v749_v56 }
 0x128   :  { %1901 = vst [vmem:[%s2392_s3 + $0xe0] sm:$0xff] %v1857_v51   ;;  %vm1058_vm10 = vcmp.ge.f32.partialorder %v994_v53, 0.0  ;;  %v1122_v59 = vmul.f32 0.2, %v994_v53  ;;  %vm1090_vm11 = vcmp.ge.f32.partialorder %v1026_v54, 0.0  ;;  %vm1055_vm12 = vcmp.ge.f32.partialorder %v991_v50, 0.0 }
 0x129   :  { %v1154_v61 = vmul.f32 0.2, %v1026_v54  ;;  %vm1087_vm13 = vcmp.ge.f32.partialorder %v1023_v52, 0.0  ;;  %v1151_v0 = vmul.f32 0.2, %v1023_v52  ;;  %vm1056_vm14 = vcmp.ge.f32.partialorder %v992_v62, 0.0 }
 0x12a   :  { %v1186_v1 = vsel %vm1058_vm10, %v994_v53, %v1122_v59  ;;  %v1120_v4 = vmul.f32 0.2, %v992_v62  ;;  %vm1088_vm15 = vcmp.ge.f32.partialorder %v1024_v63, 0.0  ;;  %v1152_v6 = vmul.f32 0.2, %v1024_v63 }
 0x12b   :  { %v1792_v2 = vpack.c.bf16 %v1186_v1, %v1185_v57  ;;  %v1218_v3 = vsel %vm1090_vm11, %v1026_v54, %v1154_v61  ;;  %v1183_v7 = vsel %vm1055_vm12, %v991_v50, %v1119_v60  ;;  %v1215_v9 = vsel %vm1087_vm13, %v1023_v52, %v1151_v0 }
 0x12c   :  { %v1872_v5 = vpack.c.bf16 %v1218_v3, %v1217_v58  ;;  %v1184_v8 = vsel %vm1056_vm14, %v992_v62, %v1120_v4  ;;  %v1216_v10 = vsel %vm1088_vm15, %v1024_v63, %v1152_v6 }
 0x12d   :  { %1888 = vst [vmem:[%s2392_s3 + $0x78] sm:$0xff] %v1792_v2   ;;  %v1787_v40 = vpack.c.bf16 %v1184_v8, %v1183_v7  ;;  %v1867_v11 = vpack.c.bf16 %v1216_v10, %v1215_v9 }
 0x12e   :  { %1904 = vst [vmem:[%s2392_s3 + $0xf8] sm:$0xff] %v1872_v5  }
 0x12f   :  { %1887 = vst [vmem:[%s2392_s3 + $0x70] sm:$0xff] %v1787_v40   ;;  %1903 = vst [vmem:[%s2392_s3 + $0xf0] sm:$0xff] %v1867_v11  }

// kernel: discriminator_forward.6
= control target key start
LH: loop header
LB: loop body
LE: loop exit
PB: predicated region body
PF: predicated region fallthrough
CT: control target
= control target key end

     0   :  { %s2586_s12 = smov 0   ;;  %s2588_s13 = smov 0   ;;  %s3164_s0 = inlined_call_operand.vmem [shape: bf16[128,2048], index: 0, kind: input, shape index: {}]   ;;  %s3165_s1 = inlined_call_operand.vmem [shape: bf16[2048,128], index: 1, kind: input, shape index: {}]   ;;  %s3166_s2 = inlined_call_operand.vmem [shape: f32[1,128], index: 2, kind: input, shape index: {}]   ;;  %s3167_s3 = inlined_call_operand.vmem [shape: bf16[128,128], index: 3, kind: output, shape index: {}]  }
   0x1   :  { %s2590_s14 = smov 0   ;;  %s2592_s15 = smov 0  }
   0x2   :  { %s2594_s16 = smov 0  }
   0x3 LB: > { %s22_s17 = sadd.s32 1, %s2559_s15  ;;  %p41_p1 = scmp.ne.s32.totalorder %s2551_s13, %s2547_s12  ;;  %s2563_s16 = sphi %s2594_s16, %s13_s16   ;;  %s2559_s15 = sphi %s2592_s15, %s3201_s15   ;;  %s2555_s14 = sphi %s2590_s14, %s3200_s14   ;;  %s2551_s13 = sphi %s2588_s13, %s3199_s13   ;;  %s2547_s12 = sphi %s2586_s12, %s3198_s12  }
   0x4   : > { %p23_p0 = scmp.ge.s32.totalorder %s22_s17, 2  ;;  %p42_p2 = scmp.eq.s32.totalorder %s2563_s16, 0 }
   0x5   : > { %s34_s19 = sadd.s32 1, %s2551_s13  ;;  %p1941_p5 = scmp.ge.s32.totalorder %s2563_s16, 2 }
   0x6   : > { %s3203_s17 = smov (%p23_p0, %s22_s17), 0  ;;  %p43_p3 = por %p42_p2, %p41_p1 }
   0x7   : > { %s30_s18 = ssub.s32 %s2559_s15, %s3203_s17  ;;  %141 = sbr.rel (%p1941_p5) target bundleno = 48 (0x30), region = 24 }
   0x8   : > { %p32_p4 = scmp.eq.s32.totalorder %s30_s18, 0 }
   0xa   : > { %s2621_s20 = scalar_select %p32_p4, %s2551_s13, %s34_s19  }
   0xc   : > { %144 = sbr.rel (!%p43_p3) target bundleno = 48 (0x30), region = 28  ;;  %s146_s21 = sand.u32 (%p43_p3), 1, %s2551_s13  }
   0xd   : > { %s2100_s22 = sshll.u32 (%p43_p3), %s2559_s15, 5  ;;  %s1942_s23 = sshll.u32 (%p43_p3), %s146_s21, 9 }
   0xe   : > { %s2629_s26 = scalar_lea.vmem (%p43_p3), %s3164_s0, %s2100_s22  ;;  %s2634_s27 = scalar_lea.vmem (%p43_p3), [#allocation3], %s1942_s23 }
   0xf   : > { %v167_v0 = vld [vmem:[%s2629_s26] sm:$0xff] (%p43_p3)  ;;  %v169_v1 = vld [vmem:[%s2629_s26 + $0x8] sm:$0xff] (%p43_p3)  ;;  %v171_v2 = vld [vmem:[%s2629_s26 + $0x10] sm:$0xff] (%p43_p3) }
  0x10   : > { %168 = vst [vmem:[%s2634_s27] sm:$0xff] (%p43_p3), %v167_v0  ;;  %170 = vst [vmem:[%s2634_s27 + $0x8] sm:$0xff] (%p43_p3), %v169_v1  ;;  %v173_v3 = vld [vmem:[%s2629_s26 + $0x18] sm:$0xff] (%p43_p3)  ;;  %v175_v4 = vld [vmem:[%s2629_s26 + $0x40] sm:$0xff] (%p43_p3) }
  0x11   : > { %172 = vst [vmem:[%s2634_s27 + $0x10] sm:$0xff] %v171_v2  ;;  %v177_v5 = vld [vmem:[%s2629_s26 + $0x48] sm:$0xff]  ;;  %174 = vst [vmem:[%s2634_s27 + $0x18] sm:$0xff] %v173_v3  ;;  %v179_v6 = vld [vmem:[%s2629_s26 + $0x50] sm:$0xff] }
  0x12   : > { %176 = vst [vmem:[%s2634_s27 + $0x20] sm:$0xff] %v175_v4  ;;  %178 = vst [vmem:[%s2634_s27 + $0x28] sm:$0xff] %v177_v5  ;;  %v181_v7 = vld [vmem:[%s2629_s26 + $0x58] sm:$0xff]  ;;  %v183_v8 = vld [vmem:[%s2629_s26 + $0x80] sm:$0xff] }
  0x13   : > { %180 = vst [vmem:[%s2634_s27 + $0x30] sm:$0xff] %v179_v6  ;;  %182 = vst [vmem:[%s2634_s27 + $0x38] sm:$0xff] %v181_v7  ;;  %v185_v9 = vld [vmem:[%s2629_s26 + $0x88] sm:$0xff]  ;;  %v187_v10 = vld [vmem:[%s2629_s26 + $0x90] sm:$0xff] }
  0x14   : > { %184 = vst [vmem:[%s2634_s27 + $0x40] sm:$0xff] %v183_v8  ;;  %v189_v11 = vld [vmem:[%s2629_s26 + $0x98] sm:$0xff]  ;;  %186 = vst [vmem:[%s2634_s27 + $0x48] sm:$0xff] %v185_v9  ;;  %v191_v12 = vld [vmem:[%s2629_s26 + $0xc0] sm:$0xff] }
  0x15   : > { %188 = vst [vmem:[%s2634_s27 + $0x50] sm:$0xff] %v187_v10  ;;  %190 = vst [vmem:[%s2634_s27 + $0x58] sm:$0xff] %v189_v11  ;;  %v193_v13 = vld [vmem:[%s2629_s26 + $0xc8] sm:$0xff]  ;;  %v195_v14 = vld [vmem:[%s2629_s26 + $0xd0] sm:$0xff] }
  0x16   : > { %192 = vst [vmem:[%s2634_s27 + $0x60] sm:$0xff] %v191_v12  ;;  %194 = vst [vmem:[%s2634_s27 + $0x68] sm:$0xff] %v193_v13  ;;  %v197_v15 = vld [vmem:[%s2629_s26 + $0xd8] sm:$0xff]  ;;  %v199_v16 = vld [vmem:[%s2629_s26 + $0x100] sm:$0xff] }
  0x17   : > { %196 = vst [vmem:[%s2634_s27 + $0x70] sm:$0xff] %v195_v14  ;;  %v201_v17 = vld [vmem:[%s2629_s26 + $0x108] sm:$0xff]  ;;  %198 = vst [vmem:[%s2634_s27 + $0x78] sm:$0xff] %v197_v15  ;;  %v203_v18 = vld [vmem:[%s2629_s26 + $0x110] sm:$0xff] }
  0x18   : > { %200 = vst [vmem:[%s2634_s27 + $0x80] sm:$0xff] %v199_v16  ;;  %202 = vst [vmem:[%s2634_s27 + $0x88] sm:$0xff] %v201_v17  ;;  %v205_v19 = vld [vmem:[%s2629_s26 + $0x118] sm:$0xff]  ;;  %v207_v20 = vld [vmem:[%s2629_s26 + $0x140] sm:$0xff] }
  0x19   : > { %204 = vst [vmem:[%s2634_s27 + $0x90] sm:$0xff] %v203_v18  ;;  %206 = vst [vmem:[%s2634_s27 + $0x98] sm:$0xff] %v205_v19  ;;  %v209_v21 = vld [vmem:[%s2629_s26 + $0x148] sm:$0xff]  ;;  %v211_v22 = vld [vmem:[%s2629_s26 + $0x150] sm:$0xff] }
  0x1a   : > { %208 = vst [vmem:[%s2634_s27 + $0xa0] sm:$0xff] %v207_v20  ;;  %v213_v23 = vld [vmem:[%s2629_s26 + $0x158] sm:$0xff]  ;;  %210 = vst [vmem:[%s2634_s27 + $0xa8] sm:$0xff] %v209_v21  ;;  %v215_v24 = vld [vmem:[%s2629_s26 + $0x180] sm:$0xff] }
  0x1b   : > { %212 = vst [vmem:[%s2634_s27 + $0xb0] sm:$0xff] %v211_v22  ;;  %214 = vst [vmem:[%s2634_s27 + $0xb8] sm:$0xff] %v213_v23  ;;  %v217_v25 = vld [vmem:[%s2629_s26 + $0x188] sm:$0xff]  ;;  %v219_v26 = vld [vmem:[%s2629_s26 + $0x190] sm:$0xff] }
  0x1c   : > { %216 = vst [vmem:[%s2634_s27 + $0xc0] sm:$0xff] %v215_v24  ;;  %218 = vst [vmem:[%s2634_s27 + $0xc8] sm:$0xff] %v217_v25  ;;  %v221_v27 = vld [vmem:[%s2629_s26 + $0x198] sm:$0xff]  ;;  %v223_v28 = vld [vmem:[%s2629_s26 + $0x1c0] sm:$0xff] }
  0x1d   : > { %220 = vst [vmem:[%s2634_s27 + $0xd0] sm:$0xff] %v219_v26  ;;  %v225_v29 = vld [vmem:[%s2629_s26 + $0x1c8] sm:$0xff]  ;;  %222 = vst [vmem:[%s2634_s27 + $0xd8] sm:$0xff] %v221_v27  ;;  %v227_v30 = vld [vmem:[%s2629_s26 + $0x1d0] sm:$0xff] }
  0x1e   : > { %224 = vst [vmem:[%s2634_s27 + $0xe0] sm:$0xff] %v223_v28  ;;  %226 = vst [vmem:[%s2634_s27 + $0xe8] sm:$0xff] %v225_v29  ;;  %v229_v31 = vld [vmem:[%s2629_s26 + $0x1d8] sm:$0xff]  ;;  %v231_v32 = vld [vmem:[%s2629_s26 + $0x200] sm:$0xff] }
  0x1f   : > { %228 = vst [vmem:[%s2634_s27 + $0xf0] sm:$0xff] %v227_v30  ;;  %230 = vst [vmem:[%s2634_s27 + $0xf8] sm:$0xff] %v229_v31  ;;  %v233_v33 = vld [vmem:[%s2629_s26 + $0x208] sm:$0xff]  ;;  %v235_v34 = vld [vmem:[%s2629_s26 + $0x210] sm:$0xff] }
  0x20   : > { %232 = vst [vmem:[%s2634_s27 + $0x100] sm:$0xff] %v231_v32  ;;  %v237_v35 = vld [vmem:[%s2629_s26 + $0x218] sm:$0xff]  ;;  %234 = vst [vmem:[%s2634_s27 + $0x108] sm:$0xff] %v233_v33  ;;  %v239_v36 = vld [vmem:[%s2629_s26 + $0x240] sm:$0xff] }
  0x21   : > { %236 = vst [vmem:[%s2634_s27 + $0x110] sm:$0xff] %v235_v34  ;;  %238 = vst [vmem:[%s2634_s27 + $0x118] sm:$0xff] %v237_v35  ;;  %v241_v37 = vld [vmem:[%s2629_s26 + $0x248] sm:$0xff]  ;;  %v243_v38 = vld [vmem:[%s2629_s26 + $0x250] sm:$0xff] }
  0x22   : > { %240 = vst [vmem:[%s2634_s27 + $0x120] sm:$0xff] %v239_v36  ;;  %242 = vst [vmem:[%s2634_s27 + $0x128] sm:$0xff] %v241_v37  ;;  %v245_v39 = vld [vmem:[%s2629_s26 + $0x258] sm:$0xff]  ;;  %v247_v40 = vld [vmem:[%s2629_s26 + $0x280] sm:$0xff] }
  0x23   : > { %244 = vst [vmem:[%s2634_s27 + $0x130] sm:$0xff] %v243_v38  ;;  %v249_v41 = vld [vmem:[%s2629_s26 + $0x288] sm:$0xff]  ;;  %246 = vst [vmem:[%s2634_s27 + $0x138] sm:$0xff] %v245_v39  ;;  %v251_v42 = vld [vmem:[%s2629_s26 + $0x290] sm:$0xff] }
  0x24   : > { %248 = vst [vmem:[%s2634_s27 + $0x140] sm:$0xff] %v247_v40  ;;  %250 = vst [vmem:[%s2634_s27 + $0x148] sm:$0xff] %v249_v41  ;;  %v253_v43 = vld [vmem:[%s2629_s26 + $0x298] sm:$0xff]  ;;  %v255_v44 = vld [vmem:[%s2629_s26 + $0x2c0] sm:$0xff] }
  0x25   : > { %252 = vst [vmem:[%s2634_s27 + $0x150] sm:$0xff] %v251_v42  ;;  %254 = vst [vmem:[%s2634_s27 + $0x158] sm:$0xff] %v253_v43  ;;  %v257_v45 = vld [vmem:[%s2629_s26 + $0x2c8] sm:$0xff]  ;;  %v259_v46 = vld [vmem:[%s2629_s26 + $0x2d0] sm:$0xff] }
  0x26   : > { %256 = vst [vmem:[%s2634_s27 + $0x160] sm:$0xff] %v255_v44  ;;  %v261_v47 = vld [vmem:[%s2629_s26 + $0x2d8] sm:$0xff]  ;;  %258 = vst [vmem:[%s2634_s27 + $0x168] sm:$0xff] %v257_v45  ;;  %v263_v48 = vld [vmem:[%s2629_s26 + $0x300] sm:$0xff] }
  0x27   : > { %260 = vst [vmem:[%s2634_s27 + $0x170] sm:$0xff] %v259_v46  ;;  %262 = vst [vmem:[%s2634_s27 + $0x178] sm:$0xff] %v261_v47  ;;  %v265_v49 = vld [vmem:[%s2629_s26 + $0x308] sm:$0xff]  ;;  %v267_v50 = vld [vmem:[%s2629_s26 + $0x310] sm:$0xff] }
  0x28   : > { %264 = vst [vmem:[%s2634_s27 + $0x180] sm:$0xff] %v263_v48  ;;  %266 = vst [vmem:[%s2634_s27 + $0x188] sm:$0xff] %v265_v49  ;;  %v269_v51 = vld [vmem:[%s2629_s26 + $0x318] sm:$0xff]  ;;  %v271_v52 = vld [vmem:[%s2629_s26 + $0x340] sm:$0xff] }
  0x29   : > { %268 = vst [vmem:[%s2634_s27 + $0x190] sm:$0xff] %v267_v50  ;;  %v273_v53 = vld [vmem:[%s2629_s26 + $0x348] sm:$0xff]  ;;  %270 = vst [vmem:[%s2634_s27 + $0x198] sm:$0xff] %v269_v51  ;;  %v275_v54 = vld [vmem:[%s2629_s26 + $0x350] sm:$0xff] }
  0x2a   : > { %272 = vst [vmem:[%s2634_s27 + $0x1a0] sm:$0xff] %v271_v52  ;;  %274 = vst [vmem:[%s2634_s27 + $0x1a8] sm:$0xff] %v273_v53  ;;  %v277_v55 = vld [vmem:[%s2629_s26 + $0x358] sm:$0xff]  ;;  %v279_v56 = vld [vmem:[%s2629_s26 + $0x380] sm:$0xff] }
  0x2b   : > { %276 = vst [vmem:[%s2634_s27 + $0x1b0] sm:$0xff] %v275_v54  ;;  %278 = vst [vmem:[%s2634_s27 + $0x1b8] sm:$0xff] %v277_v55  ;;  %v281_v57 = vld [vmem:[%s2629_s26 + $0x388] sm:$0xff]  ;;  %v283_v58 = vld [vmem:[%s2629_s26 + $0x390] sm:$0xff] }
  0x2c   : > { %280 = vst [vmem:[%s2634_s27 + $0x1c0] sm:$0xff] %v279_v56  ;;  %v285_v59 = vld [vmem:[%s2629_s26 + $0x398] sm:$0xff]  ;;  %282 = vst [vmem:[%s2634_s27 + $0x1c8] sm:$0xff] %v281_v57  ;;  %v287_v60 = vld [vmem:[%s2629_s26 + $0x3c0] sm:$0xff] }
  0x2d   : > { %284 = vst [vmem:[%s2634_s27 + $0x1d0] sm:$0xff] %v283_v58  ;;  %286 = vst [vmem:[%s2634_s27 + $0x1d8] sm:$0xff] %v285_v59  ;;  %v289_v61 = vld [vmem:[%s2629_s26 + $0x3c8] sm:$0xff]  ;;  %v291_v62 = vld [vmem:[%s2629_s26 + $0x3d0] sm:$0xff] }
  0x2e   : > { %288 = vst [vmem:[%s2634_s27 + $0x1e0] sm:$0xff] %v287_v60  ;;  %290 = vst [vmem:[%s2634_s27 + $0x1e8] sm:$0xff] %v289_v61  ;;  %v293_v63 = vld [vmem:[%s2629_s26 + $0x3d8] sm:$0xff] }
  0x2f   : > { %292 = vst [vmem:[%s2634_s27 + $0x1f0] sm:$0xff] %v291_v62  ;;  %294 = vst [vmem:[%s2634_s27 + $0x1f8] sm:$0xff] %v293_v63 }
  0x30 PF: > { %p1945_p6 = scmp.ge.s32.totalorder %s2563_s16, 1  ;;  %p299_p7 = scmp.lt.s32.totalorder %s2563_s16, 3 }
  0x32   : > { %p300_p8 = pnand %p1945_p6, %p299_p7 }
  0x34   : > { %303 = sbr.rel (%p300_p8) target bundleno = 463 (0x1cf), region = 51 }
  0x39   : > { %s306_s28 = sand.u32 1, %s2547_s12   ;;  %p1947_p9 = scmp.ne.s32.totalorder %s2555_s14, 0 }
  0x3a   : > { %s1946_s29 = sshll.u32 %s306_s28, 9 }
  0x3b   : > { %s2764_s30 = scalar_lea.vmem [#allocation3], %s1946_s29  ;;  %341 = sbr.rel (%p1947_p9) target bundleno = 73 (0x49), region = 59 }
  0x40   : > { %v2565_v0 = vmov 0.0  }
  0x41   : > { %342 = vst [vmem:[#allocation2 + $0x30] sm:$0xff] %v2565_v0  ;;  %343 = vst [vmem:[#allocation2] sm:$0xff] %v2565_v0 }
  0x42   : > { %344 = vst [vmem:[#allocation2 + $0x58] sm:$0xff] %v2565_v0  ;;  %345 = vst [vmem:[#allocation2 + $0x18] sm:$0xff] %v2565_v0 }
  0x43   : > { %346 = vst [vmem:[#allocation2 + $0x50] sm:$0xff] %v2565_v0  ;;  %347 = vst [vmem:[#allocation2 + $0x68] sm:$0xff] %v2565_v0 }
  0x44   : > { %348 = vst [vmem:[#allocation2 + $0x8] sm:$0xff] %v2565_v0  ;;  %349 = vst [vmem:[#allocation2 + $0x48] sm:$0xff] %v2565_v0 }
  0x45   : > { %350 = vst [vmem:[#allocation2 + $0x40] sm:$0xff] %v2565_v0  ;;  %351 = vst [vmem:[#allocation2 + $0x20] sm:$0xff] %v2565_v0 }
  0x46   : > { %352 = vst [vmem:[#allocation2 + $0x10] sm:$0xff] %v2565_v0  ;;  %353 = vst [vmem:[#allocation2 + $0x38] sm:$0xff] %v2565_v0 }
  0x47   : > { %354 = vst [vmem:[#allocation2 + $0x60] sm:$0xff] %v2565_v0  ;;  %355 = vst [vmem:[#allocation2 + $0x70] sm:$0xff] %v2565_v0 }
  0x48   : > { %356 = vst [vmem:[#allocation2 + $0x78] sm:$0xff] %v2565_v0  ;;  %357 = vst [vmem:[#allocation2 + $0x28] sm:$0xff] %v2565_v0 }
  0x49 PF: > { %s1948_s4 = sshll.u32 %s2555_s14, 10  ;;  %v2769_v1 = vld [vmem:[%s2764_s30] sm:$0xff]  ;;  %v2775_v3 = vld [vmem:[%s2764_s30 + $0x8] sm:$0xff]  ;;  %p2078_p10 = scmp.ne.s32.totalorder %s2555_s14, 1 }
  0x4a   : > { %v2772_v2 = vld [vmem:[%s2764_s30 + $0x20] sm:$0xff]  ;;  %s439_s5 = sshra.s32 %s1948_s4, 3  ;;  %v2780_v5 = vld [vmem:[%s2764_s30 + $0x28] sm:$0xff] }
  0x4b   : > { %v1951_v4 = vcombine.high %v2769_v1, %v2772_v2  ;;  %s1949_s6 = sshll.u32 %s439_s5, 2  ;;  %v1953_v6 = vcombine.high %v2775_v3, %v2780_v5  ;;  %v383_v36 = vld [vmem:[%s2764_s30 + $0x40] sm:$0xff]  ;;  %v384_v39 = vld [vmem:[%s2764_s30 + $0x48] sm:$0xff]  ;;  %v1950_v43 = vcombine.low %v2769_v1, %v2772_v2  ;;  %v1952_v44 = vcombine.low %v2775_v3, %v2780_v5 }
  0x4c   : > { %s2787_s9 = scalar_lea.vmem %s3165_s1, %s1949_s6  ;;  %v387_v37 = vld [vmem:[%s2764_s30 + $0x60] sm:$0xff]  ;;  %v388_v40 = vld [vmem:[%s2764_s30 + $0x68] sm:$0xff] }
  0x4d   : > { %1307 = vmatprep.mubr.bf16.mxu0 %v1951_v4  ;;  %v2461_v7 = vld [vmem:[%s2787_s9 + $0x78] sm:$0xff]   ;;  %1404 = vmatprep.mubr.bf16.mxu1 %v1953_v6  ;;  %v2465_v11 = vld [vmem:[%s2787_s9 + $0x70] sm:$0xff]   ;;  %v2469_v15 = vld [vmem:[%s2787_s9 + $0x68] sm:$0xff]   ;;  %v1959_v47 = vcombine.high %v383_v36, %v387_v37  ;;  %v1961_v49 = vcombine.high %v384_v39, %v388_v40  ;;  %v1958_v58 = vcombine.low %v383_v36, %v387_v37 }
  0x4e   : > { %v2462_v8 = vld [vmem:[%s2787_s9 + $0xf8] sm:$0xff]   ;;  %2164 = vmatprep.subr.bf16.mxu0 %v2461_v7  ;;  %v2466_v12 = vld [vmem:[%s2787_s9 + $0xf0] sm:$0xff]   ;;  %v2470_v16 = vld [vmem:[%s2787_s9 + $0xe8] sm:$0xff]   ;;  %v1960_v60 = vcombine.low %v384_v39, %v388_v40 }
  0x4f   : > { %v2463_v9 = vld [vmem:[%s2787_s9 + $0x38] sm:$0xff]   ;;  %2228 = vmatprep.subr.bf16.mxu1 %v2462_v8  ;;  %v2467_v13 = vld [vmem:[%s2787_s9 + $0x30] sm:$0xff]   ;;  %v2471_v17 = vld [vmem:[%s2787_s9 + $0x28] sm:$0xff]  }
  0x50   : > { %v2464_v10 = vld [vmem:[%s2787_s9 + $0xb8] sm:$0xff]   ;;  %2165 = vmatpush3.bf16.msra.mxu0 %v2463_v9  ;;  %v2468_v14 = vld [vmem:[%s2787_s9 + $0xb0] sm:$0xff]   ;;  %v2472_v18 = vld [vmem:[%s2787_s9 + $0xa8] sm:$0xff]  }
  0x51   : > { %2229 = vmatpush3.bf16.msra.mxu1 %v2464_v10  ;;  %2166 = vmatprep.subr.bf16.mxu0 %v2465_v11  ;;  %v2473_v19 = vld [vmem:[%s2787_s9 + $0x60] sm:$0xff]   ;;  %v2477_v23 = vld [vmem:[%s2787_s9 + $0x58] sm:$0xff]   ;;  %v2481_v27 = vld [vmem:[%s2787_s9 + $0x50] sm:$0xff]  }
  0x52   : > { %2230 = vmatprep.subr.bf16.mxu1 %v2466_v12  ;;  %v2474_v20 = vld [vmem:[%s2787_s9 + $0xe0] sm:$0xff]   ;;  %v2478_v24 = vld [vmem:[%s2787_s9 + $0xd8] sm:$0xff]   ;;  %v2482_v28 = vld [vmem:[%s2787_s9 + $0xd0] sm:$0xff]  }
  0x53   : > { %v2475_v21 = vld [vmem:[%s2787_s9 + $0x20] sm:$0xff]   ;;  %v2479_v25 = vld [vmem:[%s2787_s9 + $0x18] sm:$0xff]   ;;  %v2483_v29 = vld [vmem:[%s2787_s9 + $0x10] sm:$0xff]  }
  0x54   : > { %2167 = vmatpush3.bf16.msra.mxu0 %v2467_v13  ;;  %v2476_v22 = vld [vmem:[%s2787_s9 + $0xa0] sm:$0xff]   ;;  %v2480_v26 = vld [vmem:[%s2787_s9 + $0x98] sm:$0xff]   ;;  %v2484_v30 = vld [vmem:[%s2787_s9 + $0x90] sm:$0xff]  }
  0x55   : > { %2231 = vmatpush3.bf16.msra.mxu1 %v2468_v14  ;;  %2168 = vmatprep.subr.bf16.mxu0 %v2469_v15  ;;  %v2485_v31 = vld [vmem:[%s2787_s9 + $0x48] sm:$0xff]   ;;  %v2489_v35 = vld [vmem:[%s2787_s9 + $0x40] sm:$0xff]   ;;  %v2493_v45 = vld [vmem:[%s2787_s9 + $0x178] sm:$0xff]  }
  0x56   : > { %2232 = vmatprep.subr.bf16.mxu1 %v2470_v16  ;;  %v2486_v32 = vld [vmem:[%s2787_s9 + $0xc8] sm:$0xff]   ;;  %v2490_v38 = vld [vmem:[%s2787_s9 + $0xc0] sm:$0xff]   ;;  %v2494_v46 = vld [vmem:[%s2787_s9 + $0x138] sm:$0xff]  }
  0x57   : > { %v2487_v33 = vld [vmem:[%s2787_s9 + $0x8] sm:$0xff]   ;;  %v2491_v41 = vld [vmem:[%s2787_s9] sm:$0xff]   ;;  %v2495_v48 = vld [vmem:[%s2787_s9 + $0x1f8] sm:$0xff]  }
  0x58   : > { %2169 = vmatpush3.bf16.msra.mxu0 %v2471_v17  ;;  %v2488_v34 = vld [vmem:[%s2787_s9 + $0x88] sm:$0xff]   ;;  %v2492_v42 = vld [vmem:[%s2787_s9 + $0x80] sm:$0xff]   ;;  %v2496_v50 = vld [vmem:[%s2787_s9 + $0x1b8] sm:$0xff]  }
  0x59   : > { %2233 = vmatpush3.bf16.msra.mxu1 %v2472_v18  ;;  %2170 = vmatprep.subr.bf16.mxu0 %v2473_v19  ;;  %v391_v51 = vld [vmem:[%s2764_s30 + $0x80] sm:$0xff]  ;;  %v2497_v53 = vld [vmem:[%s2787_s9 + $0x170] sm:$0xff]   ;;  %v392_v54 = vld [vmem:[%s2764_s30 + $0x88] sm:$0xff] }
  0x5a   : > { %2234 = vmatprep.subr.bf16.mxu1 %v2474_v20  ;;  %v395_v52 = vld [vmem:[%s2764_s30 + $0xa0] sm:$0xff]  ;;  %v396_v55 = vld [vmem:[%s2764_s30 + $0xa8] sm:$0xff]  ;;  %v2498_v56 = vld [vmem:[%s2787_s9 + $0x130] sm:$0xff]  }
  0x5b   : > { %v2499_v57 = vld [vmem:[%s2787_s9 + $0x1f0] sm:$0xff]   ;;  %v1967_v61 = vcombine.high %v391_v51, %v395_v52  ;;  %v2501_v62 = vld [vmem:[%s2787_s9 + $0x168] sm:$0xff]   ;;  %v1969_v63 = vcombine.high %v392_v54, %v396_v55  ;;  %v399_v3 = vld [vmem:[%s2764_s30 + $0xc0] sm:$0xff]  ;;  %v1966_v8 = vcombine.low %v391_v51, %v395_v52  ;;  %v1968_v10 = vcombine.low %v392_v54, %v396_v55 }
  0x5c   : > { %2171 = vmatpush3.bf16.msra.mxu0 %v2475_v21  ;;  %v2500_v59 = vld [vmem:[%s2787_s9 + $0x1b0] sm:$0xff]   ;;  %v2502_v0 = vld [vmem:[%s2787_s9 + $0x128] sm:$0xff]   ;;  %v403_v4 = vld [vmem:[%s2764_s30 + $0xe0] sm:$0xff] }
  0x5d   : > { %2235 = vmatpush3.bf16.msra.mxu1 %v2476_v22  ;;  %2172 = vmatprep.subr.bf16.mxu0 %v2477_v23  ;;  %v2503_v1 = vld [vmem:[%s2787_s9 + $0x1e8] sm:$0xff]   ;;  %v2505_v7 = vld [vmem:[%s2787_s9 + $0x160] sm:$0xff]   ;;  %v1975_v11 = vcombine.high %v399_v3, %v403_v4  ;;  %v2509_v17 = vld [vmem:[%s2787_s9 + $0x158] sm:$0xff]   ;;  %v1974_v23 = vcombine.low %v399_v3, %v403_v4 }
  0x5e   : > { %2236 = vmatprep.subr.bf16.mxu1 %v2478_v24  ;;  %v2504_v2 = vld [vmem:[%s2787_s9 + $0x1a8] sm:$0xff]   ;;  %v2506_v9 = vld [vmem:[%s2787_s9 + $0x120] sm:$0xff]   ;;  %v2510_v19 = vld [vmem:[%s2787_s9 + $0x118] sm:$0xff]  }
  0x5f   : > { %v400_v5 = vld [vmem:[%s2764_s30 + $0xc8] sm:$0xff]  ;;  %v2507_v12 = vld [vmem:[%s2787_s9 + $0x1e0] sm:$0xff]   ;;  %v2511_v20 = vld [vmem:[%s2787_s9 + $0x1d8] sm:$0xff]  }
  0x60   : > { %2173 = vmatpush3.bf16.msra.mxu0 %v2479_v25  ;;  %v404_v6 = vld [vmem:[%s2764_s30 + $0xe8] sm:$0xff]  ;;  %v2508_v14 = vld [vmem:[%s2787_s9 + $0x1a0] sm:$0xff]   ;;  %v2512_v22 = vld [vmem:[%s2787_s9 + $0x198] sm:$0xff]  }
  0x61   : > { %2237 = vmatpush3.bf16.msra.mxu1 %v2480_v26  ;;  %2174 = vmatprep.subr.bf16.mxu0 %v2481_v27  ;;  %v1977_v13 = vcombine.high %v400_v5, %v404_v6  ;;  %v407_v15 = vld [vmem:[%s2764_s30 + $0x100] sm:$0xff]  ;;  %v408_v18 = vld [vmem:[%s2764_s30 + $0x108] sm:$0xff]  ;;  %v1976_v24 = vcombine.low %v400_v5, %v404_v6  ;;  %v2513_v26 = vld [vmem:[%s2787_s9 + $0x150] sm:$0xff]  }
  0x62   : > { %2238 = vmatprep.subr.bf16.mxu1 %v2482_v28  ;;  %v411_v16 = vld [vmem:[%s2764_s30 + $0x120] sm:$0xff]  ;;  %v412_v21 = vld [vmem:[%s2764_s30 + $0x128] sm:$0xff]  ;;  %v2514_v28 = vld [vmem:[%s2787_s9 + $0x110] sm:$0xff]  }
  0x63   : > { %v1983_v25 = vcombine.high %v407_v15, %v411_v16  ;;  %v1985_v27 = vcombine.high %v408_v18, %v412_v21  ;;  %v1982_v36 = vcombine.low %v407_v15, %v411_v16  ;;  %v2518_v37 = vld [vmem:[%s2787_s9 + $0x108] sm:$0xff]   ;;  %v431_v55 = vld [vmem:[%s2764_s30 + $0x1c0] sm:$0xff]  ;;  %v393_v15 = vld [vmem:[%s2764_s30 + $0x90] sm:$0xff] }
  0x64   : > { %2175 = vmatpush3.bf16.msra.mxu0 %v2483_v29  ;;  %v2515_v29 = vld [vmem:[%s2787_s9 + $0x1d0] sm:$0xff]   ;;  %v2519_v40 = vld [vmem:[%s2787_s9 + $0x1c8] sm:$0xff]  }
  0x65   : > { %2239 = vmatpush3.bf16.msra.mxu1 %v2484_v30  ;;  %2176 = vmatprep.subr.bf16.mxu0 %v2485_v31  ;;  %v2516_v30 = vld [vmem:[%s2787_s9 + $0x190] sm:$0xff]   ;;  %v415_v31 = vld [vmem:[%s2764_s30 + $0x140] sm:$0xff] }
  0x66   : > { %2240 = vmatprep.subr.bf16.mxu1 %v2486_v32  ;;  %v419_v32 = vld [vmem:[%s2764_s30 + $0x160] sm:$0xff]  ;;  %v397_v16 = vld [vmem:[%s2764_s30 + $0xb0] sm:$0xff] }
  0x67   : > { %v1991_v39 = vcombine.high %v415_v31, %v419_v32  ;;  %v1990_v51 = vcombine.low %v415_v31, %v419_v32  ;;  %v409_v31 = vld [vmem:[%s2764_s30 + $0x110] sm:$0xff] }
  0x68   : > { %2177 = vmatpush3.bf16.msra.mxu0 %v2487_v33  ;;  %v416_v33 = vld [vmem:[%s2764_s30 + $0x148] sm:$0xff]  ;;  %v413_v32 = vld [vmem:[%s2764_s30 + $0x130] sm:$0xff] }
  0x69   : > { %2241 = vmatpush3.bf16.msra.mxu1 %v2488_v34  ;;  %2178 = vmatprep.subr.bf16.mxu0 %v2489_v35  ;;  %v420_v34 = vld [vmem:[%s2764_s30 + $0x168] sm:$0xff] }
  0x6a   : > { %2242 = vmatprep.subr.bf16.mxu1 %v2490_v38  ;;  %v2517_v35 = vld [vmem:[%s2787_s9 + $0x148] sm:$0xff]   ;;  %v1984_v38 = vcombine.low %v408_v18, %v412_v21  ;;  %v1992_v52 = vcombine.low %v416_v33, %v420_v34  ;;  %v398_v18 = vld [vmem:[%s2764_s30 + $0xb8] sm:$0xff]  ;;  %v1971_v21 = vcombine.high %v393_v15, %v397_v16 }
  0x6c   : > { %2179 = vmatpush3.bf16.msra.mxu0 %v2491_v41  ;;  %v1993_v41 = vcombine.high %v416_v33, %v420_v34  ;;  %v410_v33 = vld [vmem:[%s2764_s30 + $0x118] sm:$0xff] }
  0x6d   : > { %2243 = vmatpush3.bf16.msra.mxu1 %v2492_v42  ;;  %2292 = vmatprep.subr.bf16.mxu0 %v2493_v45  ;;  %v2520_v42 = vld [vmem:[%s2787_s9 + $0x188] sm:$0xff]   ;;  %v2521_v45 = vld [vmem:[%s2787_s9 + $0x140] sm:$0xff]   ;;  %v414_v34 = vld [vmem:[%s2764_s30 + $0x138] sm:$0xff] }
  0x6e   : > { %2356 = vmatprep.subr.bf16.mxu1 %v2495_v48  ;;  %v2523_v48 = vld [vmem:[%s2787_s9 + $0x1c0] sm:$0xff]  }
  0x6f   : > { %1308 = vmatmul.mubr.bf16.vlgmr.msra.gmra.mxu0 %v1950_v43  ;;  %v423_v43 = vld [vmem:[%s2764_s30 + $0x180] sm:$0xff] }
  0x70   : > { %1405 = vmatmul.mubr.bf16.vlgmr.msra.gmra.mxu1 %v1952_v44  ;;  %2293 = vmatpush3.bf16.msra.mxu0 %v2494_v46  ;;  %v427_v44 = vld [vmem:[%s2764_s30 + $0x1a0] sm:$0xff]  ;;  %v424_v46 = vld [vmem:[%s2764_s30 + $0x188] sm:$0xff] }
  0x71   : > { %1315 = vmatprep.mubr.bf16.mxu0 %v1959_v47  ;;  %2357 = vmatpush3.bf16.msra.mxu1 %v2496_v50  ;;  %v2522_v47 = vld [vmem:[%s2787_s9 + $0x100] sm:$0xff]  }
  0x72   : > { %1412 = vmatprep.mubr.bf16.mxu1 %v1961_v49  ;;  %2294 = vmatprep.subr.bf16.mxu0 %v2497_v53  ;;  %v428_v49 = vld [vmem:[%s2764_s30 + $0x1a8] sm:$0xff]  ;;  %v2524_v50 = vld [vmem:[%s2787_s9 + $0x180] sm:$0xff]   ;;  %v1999_v53 = vcombine.high %v423_v43, %v427_v44 }
  0x73   : > { %2358 = vmatprep.subr.bf16.mxu1 %v2499_v57  ;;  %v2001_v54 = vcombine.high %v424_v46, %v428_v49  ;;  %v432_v57 = vld [vmem:[%s2764_s30 + $0x1c8] sm:$0xff] }
  0x74   : > { %2295 = vmatpush3.bf16.msra.mxu0 %v2498_v56  ;;  %v435_v56 = vld [vmem:[%s2764_s30 + $0x1e0] sm:$0xff] }
  0x75   : > { %2359 = vmatpush3.bf16.msra.mxu1 %v2500_v59  ;;  %2296 = vmatprep.subr.bf16.mxu0 %v2501_v62  ;;  %v1998_v59 = vcombine.low %v423_v43, %v427_v44  ;;  %v2006_v3 = vcombine.low %v431_v55, %v435_v56  ;;  %v1986_v43 = vcombine.low %v409_v31, %v413_v32 }
  0x76   : > { %2360 = vmatprep.subr.bf16.mxu1 %v2503_v1  ;;  %v378_v1 = vld [vmem:[%s2764_s30 + $0x18] sm:$0xff]  ;;  %v1988_v44 = vcombine.low %v410_v33, %v414_v34 }
  0x77   : > { %1316 = vmatmul.mubr.bf16.gmra.mxu0 %v1958_v58  ;;  %v436_v58 = vld [vmem:[%s2764_s30 + $0x1e8] sm:$0xff] }
  0x78   : > { %1413 = vmatmul.mubr.bf16.gmra.mxu1 %v1960_v60  ;;  %1323 = vmatprep.mubr.bf16.mxu0 %v1967_v61  ;;  %v2000_v60 = vcombine.low %v424_v46, %v428_v49  ;;  %v2007_v61 = vcombine.high %v431_v55, %v435_v56  ;;  %v2009_v62 = vcombine.high %v432_v57, %v436_v58  ;;  %v426_v49 = vld [vmem:[%s2764_s30 + $0x198] sm:$0xff]  ;;  %v433_v55 = vld [vmem:[%s2764_s30 + $0x1d0] sm:$0xff] }
  0x79   : > { %1420 = vmatprep.mubr.bf16.mxu1 %v1969_v63  ;;  %2297 = vmatpush3.bf16.msra.mxu0 %v2502_v0  ;;  %v377_v63 = vld [vmem:[%s2764_s30 + $0x10] sm:$0xff]  ;;  %v2008_v4 = vcombine.low %v432_v57, %v436_v58  ;;  %v434_v57 = vld [vmem:[%s2764_s30 + $0x1d8] sm:$0xff] }
  0x7a   : > { %2361 = vmatpush3.bf16.msra.mxu1 %v2504_v2  ;;  %2298 = vmatprep.subr.bf16.mxu0 %v2505_v7  ;;  %v381_v0 = vld [vmem:[%s2764_s30 + $0x30] sm:$0xff]  ;;  %v382_v2 = vld [vmem:[%s2764_s30 + $0x38] sm:$0xff] }
  0x7b   : > { %2362 = vmatprep.subr.bf16.mxu1 %v2507_v12  ;;  %v1955_v5 = vcombine.high %v377_v63, %v381_v0  ;;  %v1957_v6 = vcombine.high %v378_v1, %v382_v2  ;;  %v385_v7 = vld [vmem:[%s2764_s30 + $0x50] sm:$0xff]  ;;  %v1956_v12 = vcombine.low %v378_v1, %v382_v2  ;;  %v438_v58 = vld [vmem:[%s2764_s30 + $0x1f8] sm:$0xff] }
  0x7c   : > { %v437_v56 = vld [vmem:[%s2764_s30 + $0x1f0] sm:$0xff] }
  0x7d   : > { %2299 = vmatpush3.bf16.msra.mxu0 %v2506_v9  ;;  %v386_v9 = vld [vmem:[%s2764_s30 + $0x58] sm:$0xff] }
  0x7e   : > { %2363 = vmatpush3.bf16.msra.mxu1 %v2508_v14  ;;  %2300 = vmatprep.subr.bf16.mxu0 %v2509_v17  ;;  %v394_v17 = vld [vmem:[%s2764_s30 + $0x98] sm:$0xff] }
  0x7f   : > { %1324 = vmatmul.mubr.bf16.gmra.mxu0 %v1966_v8  ;;  %2364 = vmatprep.subr.bf16.mxu1 %v2511_v20  ;;  %v389_v8 = vld [vmem:[%s2764_s30 + $0x70] sm:$0xff] }
  0x80   : > { %1421 = vmatmul.mubr.bf16.gmra.mxu1 %v1968_v10  ;;  %1331 = vmatprep.mubr.bf16.mxu0 %v1975_v11  ;;  %v390_v10 = vld [vmem:[%s2764_s30 + $0x78] sm:$0xff]  ;;  %v1954_v11 = vcombine.low %v377_v63, %v381_v0  ;;  %v2010_v63 = vcombine.low %v433_v55, %v437_v56  ;;  %v2012_v0 = vcombine.low %v434_v57, %v438_v58 }
  0x81   : > { %1428 = vmatprep.mubr.bf16.mxu1 %v1977_v13  ;;  %2301 = vmatpush3.bf16.msra.mxu0 %v2510_v19  ;;  %v1963_v13 = vcombine.high %v385_v7, %v389_v8  ;;  %v1965_v14 = vcombine.high %v386_v9, %v390_v10  ;;  %v1962_v19 = vcombine.low %v385_v7, %v389_v8 }
  0x82   : > { %2365 = vmatpush3.bf16.msra.mxu1 %v2512_v22  ;;  %2302 = vmatprep.subr.bf16.mxu0 %v2513_v26  ;;  %v1964_v20 = vcombine.low %v386_v9, %v390_v10  ;;  %v1973_v22 = vcombine.high %v394_v17, %v398_v18  ;;  %v406_v26 = vld [vmem:[%s2764_s30 + $0xf8] sm:$0xff] }
  0x83   : > { %2366 = vmatprep.subr.bf16.mxu1 %v2515_v29 }
  0x85   : > { %2303 = vmatpush3.bf16.msra.mxu0 %v2514_v28  ;;  %v1972_v28 = vcombine.low %v394_v17, %v398_v18 }
  0x86   : > { %2367 = vmatpush3.bf16.msra.mxu1 %v2516_v30  ;;  %2304 = vmatprep.subr.bf16.mxu0 %v2517_v35 }
  0x87   : > { %1332 = vmatmul.mubr.bf16.gmra.mxu0 %v1974_v23  ;;  %2368 = vmatprep.subr.bf16.mxu1 %v2519_v40  ;;  %v401_v23 = vld [vmem:[%s2764_s30 + $0xd0] sm:$0xff] }
  0x88   : > { %1429 = vmatmul.mubr.bf16.gmra.mxu1 %v1976_v24  ;;  %1339 = vmatprep.mubr.bf16.mxu0 %v1983_v25  ;;  %v405_v24 = vld [vmem:[%s2764_s30 + $0xf0] sm:$0xff]  ;;  %v402_v25 = vld [vmem:[%s2764_s30 + $0xd8] sm:$0xff] }
  0x89   : > { %1436 = vmatprep.mubr.bf16.mxu1 %v1985_v27  ;;  %2305 = vmatpush3.bf16.msra.mxu0 %v2518_v37  ;;  %v1970_v27 = vcombine.low %v393_v15, %v397_v16  ;;  %v1979_v29 = vcombine.high %v401_v23, %v405_v24  ;;  %v1981_v30 = vcombine.high %v402_v25, %v406_v26  ;;  %v421_v40 = vld [vmem:[%s2764_s30 + $0x170] sm:$0xff] }
  0x8a   : > { %2369 = vmatpush3.bf16.msra.mxu1 %v2520_v42  ;;  %2306 = vmatprep.subr.bf16.mxu0 %v2521_v45  ;;  %v1978_v35 = vcombine.low %v401_v23, %v405_v24  ;;  %v1987_v37 = vcombine.high %v409_v31, %v413_v32  ;;  %v422_v42 = vld [vmem:[%s2764_s30 + $0x178] sm:$0xff] }
  0x8b   : > { %2370 = vmatprep.subr.bf16.mxu1 %v2523_v48  ;;  %v429_v48 = vld [vmem:[%s2764_s30 + $0x1b0] sm:$0xff] }
  0x8d   : > { %2307 = vmatpush3.bf16.msra.mxu0 %v2522_v47  ;;  %v425_v47 = vld [vmem:[%s2764_s30 + $0x190] sm:$0xff] }
  0x8e   : > { %2371 = vmatpush3.bf16.msra.mxu1 %v2524_v50  ;;  %v430_v50 = vld [vmem:[%s2764_s30 + $0x1b8] sm:$0xff] }
  0x8f   : > { %1340 = vmatmul.mubr.bf16.gmra.mxu0 %v1982_v36  ;;  %v1980_v36 = vcombine.low %v402_v25, %v406_v26 }
  0x90   : > { %1437 = vmatmul.mubr.bf16.gmra.mxu1 %v1984_v38  ;;  %1347 = vmatprep.mubr.bf16.mxu0 %v1991_v39  ;;  %v1989_v38 = vcombine.high %v410_v33, %v414_v34  ;;  %v417_v39 = vld [vmem:[%s2764_s30 + $0x150] sm:$0xff] }
  0x91   : > { %1444 = vmatprep.mubr.bf16.mxu1 %v1993_v41  ;;  %v418_v41 = vld [vmem:[%s2764_s30 + $0x158] sm:$0xff]  ;;  %v1995_v45 = vcombine.high %v417_v39, %v421_v40 }
  0x92   : > { %v1997_v46 = vcombine.high %v418_v41, %v422_v42 }
  0x97   : > { %1348 = vmatmul.mubr.bf16.gmra.mxu0 %v1990_v51  ;;  %v1994_v51 = vcombine.low %v417_v39, %v421_v40 }
  0x98   : > { %1445 = vmatmul.mubr.bf16.gmra.mxu1 %v1992_v52  ;;  %1355 = vmatprep.mubr.bf16.mxu0 %v1999_v53  ;;  %v1996_v52 = vcombine.low %v418_v41, %v422_v42  ;;  %v2003_v53 = vcombine.high %v425_v47, %v429_v48 }
  0x99   : > { %1452 = vmatprep.mubr.bf16.mxu1 %v2001_v54  ;;  %v2005_v54 = vcombine.high %v426_v49, %v430_v50 }
  0x9f   : > { %1356 = vmatmul.mubr.bf16.gmra.mxu0 %v1998_v59  ;;  %v2002_v59 = vcombine.low %v425_v47, %v429_v48 }
  0xa0   : > { %1453 = vmatmul.mubr.bf16.gmra.mxu1 %v2000_v60  ;;  %1363 = vmatprep.mubr.bf16.mxu0 %v2007_v61  ;;  %v2004_v60 = vcombine.low %v426_v49, %v430_v50  ;;  %v2011_v61 = vcombine.high %v433_v55, %v437_v56 }
  0xa1   : > { %1460 = vmatprep.mubr.bf16.mxu1 %v2009_v62  ;;  %v2013_v62 = vcombine.high %v434_v57, %v438_v58 }
  0xa7   : > { %1364 = vmatmul.mubr.bf16.gmra.mxu0 %v2006_v3 }
  0xa8   : > { %1461 = vmatmul.mubr.bf16.gmra.mxu1 %v2008_v4  ;;  %1501 = vmatprep.mubr.bf16.mxu0 %v1955_v5 }
  0xa9   : > { %1598 = vmatprep.mubr.bf16.mxu1 %v1957_v6 }
  0xaf   : > { %1502 = vmatmul.mubr.bf16.vlgmr.msra.gmra.mxu0 %v1954_v11 }
  0xb0   : > { %1599 = vmatmul.mubr.bf16.vlgmr.msra.gmra.mxu1 %v1956_v12  ;;  %1509 = vmatprep.mubr.bf16.mxu0 %v1963_v13 }
  0xb1   : > { %1606 = vmatprep.mubr.bf16.mxu1 %v1965_v14 }
  0xb7   : > { %1510 = vmatmul.mubr.bf16.gmra.mxu0 %v1962_v19 }
  0xb8   : > { %1607 = vmatmul.mubr.bf16.gmra.mxu1 %v1964_v20  ;;  %1517 = vmatprep.mubr.bf16.mxu0 %v1971_v21 }
  0xb9   : > { %1614 = vmatprep.mubr.bf16.mxu1 %v1973_v22 }
  0xbf   : > { %1518 = vmatmul.mubr.bf16.gmra.mxu0 %v1970_v27 }
  0xc0   : > { %1615 = vmatmul.mubr.bf16.gmra.mxu1 %v1972_v28  ;;  %1525 = vmatprep.mubr.bf16.mxu0 %v1979_v29 }
  0xc1   : > { %1622 = vmatprep.mubr.bf16.mxu1 %v1981_v30 }
  0xc7   : > { %1526 = vmatmul.mubr.bf16.gmra.mxu0 %v1978_v35 }
  0xc8   : > { %1623 = vmatmul.mubr.bf16.gmra.mxu1 %v1980_v36  ;;  %1533 = vmatprep.mubr.bf16.mxu0 %v1987_v37 }
  0xc9   : > { %1630 = vmatprep.mubr.bf16.mxu1 %v1989_v38 }
  0xcf   : > { %1534 = vmatmul.mubr.bf16.gmra.mxu0 %v1986_v43 }
  0xd0   : > { %1631 = vmatmul.mubr.bf16.gmra.mxu1 %v1988_v44  ;;  %1541 = vmatprep.mubr.bf16.mxu0 %v1995_v45 }
  0xd1   : > { %1638 = vmatprep.mubr.bf16.mxu1 %v1997_v46 }
  0xd7   : > { %1542 = vmatmul.mubr.bf16.gmra.mxu0 %v1994_v51 }
  0xd8   : > { %1639 = vmatmul.mubr.bf16.gmra.mxu1 %v1996_v52  ;;  %1549 = vmatprep.mubr.bf16.mxu0 %v2003_v53 }
  0xd9   : > { %1646 = vmatprep.mubr.bf16.mxu1 %v2005_v54 }
  0xdf   : > { %1550 = vmatmul.mubr.bf16.gmra.mxu0 %v2002_v59 }
  0xe0   : > { %1647 = vmatmul.mubr.bf16.gmra.mxu1 %v2004_v60  ;;  %1557 = vmatprep.mubr.bf16.mxu0 %v2011_v61 }
  0xe1   : > { %1654 = vmatprep.mubr.bf16.mxu1 %v2013_v62 }
  0xe7   : > { %1558 = vmatmul.mubr.bf16.gmra.mxu0 %v2010_v63 }
  0xe8   : > { %1655 = vmatmul.mubr.bf16.gmra.mxu1 %v2012_v0 }
 0x12f   : > { %v2917_v1 = vpop.f32.mrf.mxu0 }
 0x130   : > { %v2919_v2 = vpop.f32.mrf.mxu1 }
 0x131   : > { %v2181_v3 = vpop.f32.mrf.mxu0 }
 0x132   : > { %v2245_v4 = vpop.f32.mrf.mxu1  ;;  %v2182_v0 = vadd.f32 %v2181_v3, %v2917_v1 }
 0x133   : > { %v2921_v5 = vpop.f32.mrf.mxu0 }
 0x134   : > { %v2923_v6 = vpop.f32.mrf.mxu1 }
 0x135   : > { %v2925_v7 = vpop.f32.mrf.mxu0 }
 0x136   : > { %v2927_v8 = vpop.f32.mrf.mxu1 }
 0x137   : > { %v2929_v9 = vpop.f32.mrf.mxu0 }
 0x138   : > { %v2931_v10 = vpop.f32.mrf.mxu1 }
 0x139   : > { %v2933_v11 = vpop.f32.mrf.mxu0 }
 0x13a   : > { %v2935_v12 = vpop.f32.mrf.mxu1 }
 0x13b   : > { %v2937_v13 = vpop.f32.mrf.mxu0  ;;  %v2252_v3 = vadd.f32 %v2935_v12, %v2931_v10 }
 0x13c   : > { %v2939_v14 = vpop.f32.mrf.mxu1 }
 0x13d   : > { %v2941_v15 = vpop.f32.mrf.mxu0 }
 0x13e   : > { %v2943_v16 = vpop.f32.mrf.mxu1 }
 0x13f   : > { %v2945_v17 = vpop.f32.mrf.mxu0  ;;  %v2255_v10 = vadd.f32 %v2943_v16, %v2939_v14 }
 0x140   : > { %v2947_v18 = vpop.f32.mrf.mxu1 }
 0x141   : > { %v2949_v19 = vpop.f32.mrf.mxu0 }
 0x142   : > { %v2951_v20 = vpop.f32.mrf.mxu1 }
 0x143   : > { %v2953_v21 = vpop.f32.mrf.mxu0 }
 0x144   : > { %v2955_v22 = vpop.f32.mrf.mxu1 }
 0x145   : > { %v2957_v23 = vpop.f32.mrf.mxu0 }
 0x146   : > { %v2959_v24 = vpop.f32.mrf.mxu1 }
 0x147   : > { %v2961_v25 = vpop.f32.mrf.mxu0 }
 0x148   : > { %v2963_v26 = vpop.f32.mrf.mxu1 }
 0x149   : > { %v2965_v27 = vpop.f32.mrf.mxu0 }
 0x14a   : > { %v2967_v28 = vpop.f32.mrf.mxu1 }
 0x14b   : > { %v2969_v29 = vpop.f32.mrf.mxu0 }
 0x14c   : > { %v2971_v30 = vpop.f32.mrf.mxu1 }
 0x14d   : > { %v2973_v31 = vpop.f32.mrf.mxu0 }
 0x14e   : > { %v2975_v32 = vpop.f32.mrf.mxu1 }
 0x14f   : > { %v2977_v33 = vpop.f32.mrf.mxu0 }
 0x150   : > { %v2979_v34 = vpop.f32.mrf.mxu1 }
 0x151   : > { %v2981_v35 = vpop.f32.mrf.mxu0 }
 0x152   : > { %v2983_v36 = vpop.f32.mrf.mxu1 }
 0x153   : > { %v2985_v37 = vpop.f32.mrf.mxu0 }
 0x154   : > { %v2987_v38 = vpop.f32.mrf.mxu1 }
 0x155   : > { %v2989_v39 = vpop.f32.mrf.mxu0 }
 0x156   : > { %v2991_v40 = vpop.f32.mrf.mxu1 }
 0x157   : > { %v2993_v41 = vpop.f32.mrf.mxu0 }
 0x158   : > { %v2995_v42 = vpop.f32.mrf.mxu1 }
 0x159   : > { %v2997_v43 = vpop.f32.mrf.mxu0 }
 0x15a   : > { %v2999_v44 = vpop.f32.mrf.mxu1 }
 0x15b   : > { %v3001_v45 = vpop.f32.mrf.mxu0 }
 0x15c   : > { %v3003_v46 = vpop.f32.mrf.mxu1 }
 0x15d   : > { %v3005_v47 = vpop.f32.mrf.mxu0 }
 0x15e   : > { %v3007_v48 = vpop.f32.mrf.mxu1 }
 0x15f   : > { %v3009_v49 = vpop.f32.mrf.mxu0 }
 0x160   : > { %v3011_v50 = vpop.f32.mrf.mxu1 }
 0x161   : > { %3168 = vst [vmem:[#allocation4_spill] sm:$0xff] %v3011_v50  ;;  %v3013_v51 = vpop.f32.mrf.mxu0 }
 0x162   : > { %3169 = vst [vmem:[#allocation5_spill] sm:$0xff] %v3013_v51  ;;  %v3015_v52 = vpop.f32.mrf.mxu1 }
 0x163   : > { %3170 = vst [vmem:[#allocation6_spill] sm:$0xff] %v3015_v52  ;;  %v3017_v53 = vpop.f32.mrf.mxu0 }
 0x164   : > { %3171 = vst [vmem:[#allocation7_spill] sm:$0xff] %v3017_v53  ;;  %v3019_v54 = vpop.f32.mrf.mxu1 }
 0x165   : > { %3172 = vst [vmem:[#allocation8_spill] sm:$0xff] %v3019_v54  ;;  %v3021_v55 = vpop.f32.mrf.mxu0  ;;  %v2246_v54 = vadd.f32 %v2245_v4, %v2919_v2  ;;  %v2188_v2 = vadd.f32 %v2933_v11, %v2929_v9  ;;  %v359_v4 = vld [vmem:[#allocation2 + $0x30] sm:$0xff]  ;;  %v2191_v9 = vadd.f32 %v2941_v15, %v2937_v13 }
 0x166   : > { %3173 = vst [vmem:[#allocation9_spill] sm:$0xff] %v3021_v55  ;;  %v3023_v56 = vpop.f32.mrf.mxu1 }
 0x167   : > { %3174 = vst [vmem:[#allocation10_spill] sm:$0xff] %v3023_v56  ;;  %v3025_v57 = vpop.f32.mrf.mxu0  ;;  %v1418_v15 = vadd.f32 %v2255_v10, %v2191_v9  ;;  %v2200_v10 = vadd.f32 %v2965_v27, %v2961_v25  ;;  %v2203_v25 = vadd.f32 %v2973_v31, %v2969_v29 }
 0x168   : > { %3175 = vst [vmem:[#allocation11_spill] sm:$0xff] %v3025_v57  ;;  %v3027_v58 = vpop.f32.mrf.mxu1 }
 0x169   : > { %3176 = vst [vmem:[#allocation12_spill] sm:$0xff] %v3027_v58  ;;  %v3029_v59 = vpop.f32.mrf.mxu0  ;;  %v1407_v58 = vadd.f32 %v2246_v54, %v2182_v0 }
 0x16a   : > { %3177 = vst [vmem:[#allocation13_spill] sm:$0xff] %v3029_v59  ;;  %v3031_v60 = vpop.f32.mrf.mxu1  ;;  %v2185_v59 = vadd.f32 %v2925_v7, %v2921_v5 }
 0x16b   : > { %3178 = vst [vmem:[#allocation14_spill] sm:$0xff] %v3031_v60  ;;  %v3033_v61 = vpop.f32.mrf.mxu0 }
 0x16c   : > { %3179 = vst [vmem:[#allocation15_spill] sm:$0xff] %v3033_v61  ;;  %v3035_v62 = vpop.f32.mrf.mxu1  ;;  %v2249_v61 = vadd.f32 %v2927_v8, %v2923_v6 }
 0x16d   : > { %3180 = vst [vmem:[#allocation16_spill] sm:$0xff] %v3035_v62  ;;  %v3037_v63 = vpop.f32.mrf.mxu0 }
 0x16e   : > { %3181 = vst [vmem:[#allocation17_spill] sm:$0xff] %v3037_v63  ;;  %v3041_v55 = vpop.f32.mrf.mxu1  ;;  %v1410_v0 = vadd.f32 %v2249_v61, %v2185_v59 }
 0x16f   : > { %3182 = vst [vmem:[#allocation18_spill] sm:$0xff] %v3041_v55  ;;  %v2308_v56 = vpop.f32.mrf.mxu0 }
 0x170   : > { %v2372_v57 = vpop.f32.mrf.mxu1 }
 0x171   : > { %v2309_v53 = vpop.f32.mrf.mxu0 }
 0x172   : > { %v2310_v60 = vadd.f32 %v2309_v53, %v2308_v56  ;;  %v2373_v62 = vpop.f32.mrf.mxu1 }
 0x173   : > { %v2311_v52 = vpop.f32.mrf.mxu0  ;;  %v2374_v50 = vadd.f32 %v2373_v62, %v2372_v57  ;;  %v360_v57 = vld [vmem:[#allocation2] sm:$0xff] }
 0x174   : > { %v1504_v63 = vadd.f32 %v2310_v60, %v1407_v58  ;;  %v2375_v1 = vpop.f32.mrf.mxu1  ;;  %v1415_v58 = vadd.f32 %v2252_v3, %v2188_v2  ;;  %v361_v2 = vld [vmem:[#allocation2 + $0x58] sm:$0xff] }
 0x175   : > { %v2312_v54 = vpop.f32.mrf.mxu0 }
 0x176   : > { %v1601_v55 = vadd.f32 %v2374_v50, %v1504_v63  ;;  %v2313_v5 = vadd.f32 %v2312_v54, %v2311_v52  ;;  %v2376_v7 = vpop.f32.mrf.mxu1  ;;  %v2194_v63 = vadd.f32 %v2949_v19, %v2945_v17  ;;  %v2197_v17 = vadd.f32 %v2957_v23, %v2953_v21 }
 0x177   : > { %v2314_v51 = vpop.f32.mrf.mxu0  ;;  %v2377_v53 = vadd.f32 %v2376_v7, %v2375_v1  ;;  %v2258_v1 = vadd.f32 %v2951_v20, %v2947_v18  ;;  %v2261_v18 = vadd.f32 %v2959_v24, %v2955_v22 }
 0x178   : > { %v1663_v6 = vadd.f32 %v1601_v55, %v359_v4  ;;  %v1507_v8 = vadd.f32 %v2313_v5, %v1410_v0  ;;  %v2378_v56 = vpop.f32.mrf.mxu1 }
 0x179   : > { %v2315_v60 = vpop.f32.mrf.mxu0  ;;  %v1423_v7 = vadd.f32 %v2258_v1, %v2194_v63  ;;  %v1426_v23 = vadd.f32 %v2261_v18, %v2197_v17  ;;  %v364_v1 = vld [vmem:[#allocation2 + $0x68] sm:$0xff] }
 0x17a   : > { %1679 = vst [vmem:[#allocation2 + $0x30] sm:$0xff] %v1663_v6  ;;  %v1604_v11 = vadd.f32 %v2377_v53, %v1507_v8  ;;  %v2316_v12 = vadd.f32 %v2315_v60, %v2314_v51  ;;  %v2379_v50 = vpop.f32.mrf.mxu1  ;;  %v362_v6 = vld [vmem:[#allocation2 + $0x18] sm:$0xff] }
 0x17b   : > { %v2317_v52 = vpop.f32.mrf.mxu0  ;;  %v2380_v55 = vadd.f32 %v2379_v50, %v2378_v56 }
 0x17c   : > { %v1664_v59 = vadd.f32 %v1604_v11, %v360_v57  ;;  %v1512_v61 = vadd.f32 %v2316_v12, %v1415_v58  ;;  %v2381_v62 = vpop.f32.mrf.mxu1  ;;  %v2264_v11 = vadd.f32 %v2967_v28, %v2963_v26  ;;  %v363_v12 = vld [vmem:[#allocation2 + $0x50] sm:$0xff]  ;;  %v2267_v26 = vadd.f32 %v2975_v32, %v2971_v30 }
 0x17d   : > { %v2318_v13 = vpop.f32.mrf.mxu0 }
 0x17e   : > { %1680 = vst [vmem:[#allocation2] sm:$0xff] %v1664_v59  ;;  %v1609_v14 = vadd.f32 %v2380_v55, %v1512_v61  ;;  %v2319_v16 = vadd.f32 %v2318_v13, %v2317_v52  ;;  %v2382_v3 = vpop.f32.mrf.mxu1  ;;  %v1431_v63 = vadd.f32 %v2264_v11, %v2200_v10  ;;  %v1434_v31 = vadd.f32 %v2267_v26, %v2203_v25 }
 0x17f   : > { %v2320_v51 = vpop.f32.mrf.mxu0  ;;  %v2383_v0 = vadd.f32 %v2382_v3, %v2381_v62  ;;  %v2212_v11 = vadd.f32 %v2997_v43, %v2993_v41  ;;  %v2215_v41 = vadd.f32 %v3005_v47, %v3001_v45 }
 0x180   : > { %v1665_v4 = vadd.f32 %v1609_v14, %v361_v2  ;;  %v1515_v54 = vadd.f32 %v2319_v16, %v1418_v15  ;;  %v2384_v5 = vpop.f32.mrf.mxu1 }
 0x181   : > { %v2321_v8 = vpop.f32.mrf.mxu0 }
 0x182   : > { %1681 = vst [vmem:[#allocation2 + $0x58] sm:$0xff] %v1665_v4  ;;  %v1612_v19 = vadd.f32 %v2383_v0, %v1515_v54  ;;  %v2322_v20 = vadd.f32 %v2321_v8, %v2320_v51  ;;  %v2385_v53 = vpop.f32.mrf.mxu1  ;;  %v2206_v4 = vadd.f32 %v2981_v35, %v2977_v33  ;;  %v2270_v54 = vadd.f32 %v2983_v36, %v2979_v34  ;;  %v365_v0 = vld [vmem:[#allocation2 + $0x8] sm:$0xff] }
 0x183   : > { %v2323_v56 = vpop.f32.mrf.mxu0  ;;  %v2386_v60 = vadd.f32 %v2385_v53, %v2384_v5  ;;  %v2209_v33 = vadd.f32 %v2989_v39, %v2985_v37  ;;  %v2273_v34 = vadd.f32 %v2991_v40, %v2987_v38 }
 0x184   : > { %v1666_v58 = vadd.f32 %v1612_v19, %v362_v6  ;;  %v1520_v57 = vadd.f32 %v2322_v20, %v1423_v7  ;;  %v2387_v9 = vpop.f32.mrf.mxu1  ;;  %v1439_v19 = vadd.f32 %v2270_v54, %v2206_v4  ;;  %v366_v20 = vld [vmem:[#allocation2 + $0x48] sm:$0xff] }
 0x185   : > { %v2324_v21 = vpop.f32.mrf.mxu0  ;;  %v1442_v39 = vadd.f32 %v2273_v34, %v2209_v33 }
 0x186   : > { %1682 = vst [vmem:[#allocation2 + $0x18] sm:$0xff] %v1666_v58  ;;  %v1617_v22 = vadd.f32 %v2386_v60, %v1520_v57  ;;  %v2325_v24 = vadd.f32 %v2324_v21, %v2323_v56  ;;  %v2388_v50 = vpop.f32.mrf.mxu1  ;;  %v367_v21 = vld [vmem:[#allocation2 + $0x40] sm:$0xff] }
 0x187   : > { %v2326_v52 = vpop.f32.mrf.mxu0  ;;  %v2389_v55 = vadd.f32 %v2388_v50, %v2387_v9 }
 0x188   : > { %v1667_v59 = vadd.f32 %v1617_v22, %v363_v12  ;;  %v1523_v61 = vadd.f32 %v2325_v24, %v1426_v23  ;;  %v2390_v62 = vpop.f32.mrf.mxu1  ;;  %v2276_v12 = vadd.f32 %v2999_v44, %v2995_v42  ;;  %v2279_v42 = vadd.f32 %v3007_v48, %v3003_v46 }
 0x189   : > { %v2327_v2 = vpop.f32.mrf.mxu0 }
 0x18a   : > { %1683 = vst [vmem:[#allocation2 + $0x50] sm:$0xff] %v1667_v59  ;;  %v1620_v27 = vadd.f32 %v2389_v55, %v1523_v61  ;;  %v2328_v28 = vadd.f32 %v2327_v2, %v2326_v52  ;;  %v2391_v13 = vpop.f32.mrf.mxu1  ;;  %v1447_v61 = vadd.f32 %v2276_v12, %v2212_v11  ;;  %v368_v55 = vld [vmem:[#allocation2 + $0x20] sm:$0xff]  ;;  %v1450_v47 = vadd.f32 %v2279_v42, %v2215_v41  ;;  %v3195_v41 = vld [vmem:[#allocation17_spill] sm:$0xff] }
 0x18b   : > { %v2329_v15 = vpop.f32.mrf.mxu0  ;;  %v2392_v3 = vadd.f32 %v2391_v13, %v2390_v62  ;;  %v371_v12 = vld [vmem:[#allocation2 + $0x60] sm:$0xff] }
 0x18c   : > { %v1668_v14 = vadd.f32 %v1620_v27, %v364_v1  ;;  %v1528_v16 = vadd.f32 %v2328_v28, %v1431_v63  ;;  %v2393_v51 = vpop.f32.mrf.mxu1  ;;  %v3183_v28 = vld [vmem:[#allocation5_spill] sm:$0xff] }
 0x18d   : > { %v2330_v29 = vpop.f32.mrf.mxu0  ;;  %v2218_v13 = vadd.f32 %v3183_v28, %v3009_v49  ;;  %v3187_v49 = vld [vmem:[#allocation9_spill] sm:$0xff] }
 0x18e   : > { %1684 = vst [vmem:[#allocation2 + $0x68] sm:$0xff] %v1668_v14  ;;  %v1625_v30 = vadd.f32 %v2392_v3, %v1528_v16  ;;  %v2331_v32 = vadd.f32 %v2330_v29, %v2329_v15  ;;  %v2394_v5 = vpop.f32.mrf.mxu1  ;;  %v3184_v15 = vld [vmem:[#allocation4_spill] sm:$0xff]  ;;  %v3185_v14 = vld [vmem:[#allocation6_spill] sm:$0xff] }
 0x18f   : > { %v2332_v7 = vpop.f32.mrf.mxu0  ;;  %v2395_v17 = vadd.f32 %v2394_v5, %v2393_v51  ;;  %v2282_v16 = vadd.f32 %v3185_v14, %v3184_v15  ;;  %v369_v3 = vld [vmem:[#allocation2 + $0x10] sm:$0xff]  ;;  %v373_v14 = vld [vmem:[#allocation2 + $0x78] sm:$0xff] }
 0x190   : > { %v1669_v6 = vadd.f32 %v1625_v30, %v365_v0  ;;  %v1531_v8 = vadd.f32 %v2331_v32, %v1434_v31  ;;  %v2396_v18 = vpop.f32.mrf.mxu1  ;;  %v370_v32 = vld [vmem:[#allocation2 + $0x38] sm:$0xff] }
 0x191   : > { %v2333_v53 = vpop.f32.mrf.mxu0  ;;  %v1455_v30 = vadd.f32 %v2282_v16, %v2218_v13 }
 0x192   : > { %1685 = vst [vmem:[#allocation2 + $0x8] sm:$0xff] %v1669_v6  ;;  %v1628_v35 = vadd.f32 %v2395_v17, %v1531_v8  ;;  %v2334_v36 = vadd.f32 %v2333_v53, %v2332_v7  ;;  %v2397_v56 = vpop.f32.mrf.mxu1  ;;  %v3186_v7 = vld [vmem:[#allocation7_spill] sm:$0xff]  ;;  %v3188_v8 = vld [vmem:[#allocation8_spill] sm:$0xff]  ;;  %v3189_v17 = vld [vmem:[#allocation10_spill] sm:$0xff] }
 0x193   : > { %v2335_v58 = vpop.f32.mrf.mxu0  ;;  %v2398_v9 = vadd.f32 %v2397_v56, %v2396_v18  ;;  %v2221_v6 = vadd.f32 %v3187_v49, %v3186_v7  ;;  %v2285_v18 = vadd.f32 %v3189_v17, %v3188_v8 }
 0x194   : > { %v1670_v57 = vadd.f32 %v1628_v35, %v366_v20  ;;  %v1536_v60 = vadd.f32 %v2334_v36, %v1439_v19  ;;  %v2399_v10 = vpop.f32.mrf.mxu1 }
 0x195   : > { %v2336_v37 = vpop.f32.mrf.mxu0 }
 0x196   : > { %1686 = vst [vmem:[#allocation2 + $0x48] sm:$0xff] %v1670_v57  ;;  %v1633_v38 = vadd.f32 %v2398_v9, %v1536_v60  ;;  %v2337_v40 = vadd.f32 %v2336_v37, %v2335_v58  ;;  %v2400_v23 = vpop.f32.mrf.mxu1  ;;  %v3190_v58 = vld [vmem:[#allocation11_spill] sm:$0xff]  ;;  %v3191_v57 = vld [vmem:[#allocation13_spill] sm:$0xff]  ;;  %v3192_v9 = vld [vmem:[#allocation12_spill] sm:$0xff]  ;;  %v1458_v37 = vadd.f32 %v2285_v18, %v2221_v6 }
 0x197   : > { %v2338_v22 = vpop.f32.mrf.mxu0  ;;  %v2401_v52 = vadd.f32 %v2400_v23, %v2399_v10  ;;  %v2224_v60 = vadd.f32 %v3191_v57, %v3190_v58  ;;  %v3193_v10 = vld [vmem:[#allocation14_spill] sm:$0xff] }
 0x198   : > { %v1671_v24 = vadd.f32 %v1633_v38, %v367_v21  ;;  %v1539_v50 = vadd.f32 %v2337_v40, %v1442_v39  ;;  %v2402_v59 = vpop.f32.mrf.mxu1  ;;  %v2288_v11 = vadd.f32 %v3193_v10, %v3192_v9 }
 0x199   : > { %v2339_v62 = vpop.f32.mrf.mxu0 }
 0x19a   : > { %1687 = vst [vmem:[#allocation2 + $0x40] sm:$0xff] %v1671_v24  ;;  %v1636_v43 = vadd.f32 %v2401_v52, %v1539_v50  ;;  %v2340_v44 = vadd.f32 %v2339_v62, %v2338_v22  ;;  %v2403_v63 = vpop.f32.mrf.mxu1  ;;  %v3194_v62 = vld [vmem:[#allocation15_spill] sm:$0xff] }
 0x19b   : > { %v2341_v1 = vpop.f32.mrf.mxu0  ;;  %v2404_v26 = vadd.f32 %v2403_v63, %v2402_v59  ;;  %v1463_v59 = vadd.f32 %v2288_v11, %v2224_v60  ;;  %v2227_v42 = vadd.f32 %v3195_v41, %v3194_v62 }
 0x19c   : > { %v1672_v2 = vadd.f32 %v1636_v43, %v368_v55  ;;  %v1544_v25 = vadd.f32 %v2340_v44, %v1447_v61  ;;  %v2405_v27 = vpop.f32.mrf.mxu1  ;;  %v372_v61 = vld [vmem:[#allocation2 + $0x70] sm:$0xff]  ;;  %v3196_v43 = vld [vmem:[#allocation16_spill] sm:$0xff] }
 0x19d   : > { %v2342_v45 = vpop.f32.mrf.mxu0  ;;  %v3197_v44 = vld [vmem:[#allocation18_spill] sm:$0xff] }
 0x19e   : > { %1688 = vst [vmem:[#allocation2 + $0x20] sm:$0xff] %v1672_v2  ;;  %v1641_v46 = vadd.f32 %v2404_v26, %v1544_v25  ;;  %v2343_v48 = vadd.f32 %v2342_v45, %v2341_v1  ;;  %v2406_v51 = vpop.f32.mrf.mxu1  ;;  %v2291_v63 = vadd.f32 %v3197_v44, %v3196_v43 }
 0x19f   : > { %v2344_v4 = vpop.f32.mrf.mxu0  ;;  %v2407_v29 = vadd.f32 %v2406_v51, %v2405_v27 }
 0x1a0   : > { %v1673_v54 = vadd.f32 %v1641_v46, %v369_v3  ;;  %v1547_v0 = vadd.f32 %v2343_v48, %v1450_v47  ;;  %v2408_v31 = vpop.f32.mrf.mxu1  ;;  %v1466_v3 = vadd.f32 %v2291_v63, %v2227_v42 }
 0x1a1   : > { %v2345_v5 = vpop.f32.mrf.mxu0 }
 0x1a2   : > { %1689 = vst [vmem:[#allocation2 + $0x10] sm:$0xff] %v1673_v54  ;;  %v1644_v19 = vadd.f32 %v2407_v29, %v1547_v0  ;;  %v2346_v20 = vadd.f32 %v2345_v5, %v2344_v4  ;;  %v2409_v53 = vpop.f32.mrf.mxu1  ;;  %v374_v54 = vld [vmem:[#allocation2 + $0x28] sm:$0xff] }
 0x1a3   : > { %v2347_v33 = vpop.f32.mrf.mxu0  ;;  %v2410_v36 = vadd.f32 %v2409_v53, %v2408_v31 }
 0x1a4   : > { %v1674_v34 = vadd.f32 %v1644_v19, %v370_v32  ;;  %v1552_v35 = vadd.f32 %v2346_v20, %v1455_v30  ;;  %v2411_v56 = vpop.f32.mrf.mxu1 }
 0x1a5   : > { %v2348_v21 = vpop.f32.mrf.mxu0 }
 0x1a6   : > { %1690 = vst [vmem:[#allocation2 + $0x38] sm:$0xff] %v1674_v34  ;;  %v1649_v39 = vadd.f32 %v2410_v36, %v1552_v35  ;;  %v2349_v38 = vadd.f32 %v2348_v21, %v2347_v33  ;;  %v2412_v40 = vpop.f32.mrf.mxu1 }
 0x1a7   : > { %v2350_v23 = vpop.f32.mrf.mxu0  ;;  %v2413_v50 = vadd.f32 %v2412_v40, %v2411_v56 }
 0x1a8   : > { %v1675_v22 = vadd.f32 %v1649_v39, %v371_v12  ;;  %v1555_v24 = vadd.f32 %v2349_v38, %v1458_v37  ;;  %v2414_v52 = vpop.f32.mrf.mxu1 }
 0x1a9   : > { %v2351_v55 = vpop.f32.mrf.mxu0 }
 0x1aa   : > { %1691 = vst [vmem:[#allocation2 + $0x60] sm:$0xff] %v1675_v22  ;;  %v1652_v1 = vadd.f32 %v2413_v50, %v1555_v24  ;;  %v2352_v2 = vadd.f32 %v2351_v55, %v2350_v23  ;;  %v2415_v25 = vpop.f32.mrf.mxu1 }
 0x1ab   : > { %v2353_v26 = vpop.f32.mrf.mxu0  ;;  %v2416_v13 = vadd.f32 %v2415_v25, %v2414_v52 }
 0x1ac   : > { %v1676_v27 = vadd.f32 %v1652_v1, %v372_v61  ;;  %v1560_v28 = vadd.f32 %v2352_v2, %v1463_v59  ;;  %v2417_v15 = vpop.f32.mrf.mxu1 }
 0x1ad   : > { %v2354_v16 = vpop.f32.mrf.mxu0 }
 0x1ae   : > { %1692 = vst [vmem:[#allocation2 + $0x70] sm:$0xff] %v1676_v27  ;;  %v1657_v45 = vadd.f32 %v2416_v13, %v1560_v28  ;;  %v2355_v47 = vadd.f32 %v2354_v16, %v2353_v26  ;;  %v2418_v46 = vpop.f32.mrf.mxu1 }
 0x1af   : > { %v2419_v4 = vadd.f32 %v2418_v46, %v2417_v15 }
 0x1b0   : > { %v1677_v48 = vadd.f32 %v1657_v45, %v373_v14  ;;  %v1563_v51 = vadd.f32 %v2355_v47, %v1466_v3 }
 0x1b2   : > { %1693 = vst [vmem:[#allocation2 + $0x78] sm:$0xff] %v1677_v48  ;;  %v1660_v0 = vadd.f32 %v2419_v4, %v1563_v51  ;;  %1698 = sbr.rel (%p2078_p10) target bundleno = 463 (0x1cf), region = 63 }
 0x1b4   : > { %v1678_v29 = vadd.f32 %v1660_v0, %v374_v54 }
 0x1b6   : > { %1694 = vst [vmem:[#allocation2 + $0x28] sm:$0xff] %v1678_v29 }
 0x1b7   : > { %v1699_v31 = vld [vmem:[#allocation2 + $0x30] sm:$0xff]  ;;  %v1700_v30 = vld [vmem:[#allocation2] sm:$0xff]  ;;  %v1701_v49 = vld [vmem:[#allocation2 + $0x58] sm:$0xff] }
 0x1b8   : > { %v3107_v32 = vld [vmem:[%s3166_s2] ss:$0 sm:$0xff]  ;;  %v1702_v6 = vld [vmem:[#allocation2 + $0x18] sm:$0xff]  ;;  %v1703_v8 = vld [vmem:[#allocation2 + $0x50] sm:$0xff] }
 0x1b9   : > { %v1722_v5 = vadd.f32 %v3107_v32, %v1699_v31  ;;  %v1723_v7 = vadd.f32 %v3107_v32, %v1700_v30  ;;  %v1724_v17 = vadd.f32 %v3107_v32, %v1701_v49  ;;  %v1725_v18 = vadd.f32 %v3107_v32, %v1702_v6  ;;  %v1704_v19 = vld [vmem:[#allocation2 + $0x68] sm:$0xff]  ;;  %v1707_v9 = vld [vmem:[#allocation2 + $0x40] sm:$0xff]  ;;  %v1709_v39 = vld [vmem:[#allocation2 + $0x10] sm:$0xff] }
 0x1ba   : > { %v1726_v20 = vadd.f32 %v3107_v32, %v1703_v8  ;;  %v1705_v53 = vld [vmem:[#allocation2 + $0x8] sm:$0xff]  ;;  %v1727_v57 = vadd.f32 %v3107_v32, %v1704_v19  ;;  %v1708_v10 = vld [vmem:[#allocation2 + $0x20] sm:$0xff]  ;;  %v1730_v50 = vadd.f32 %v3107_v32, %v1707_v9  ;;  %v1710_v55 = vld [vmem:[#allocation2 + $0x38] sm:$0xff]  ;;  %v1732_v62 = vadd.f32 %v3107_v32, %v1709_v39 }
 0x1bb   : > { %vm1738_vm0 = vcmp.ge.f32.partialorder %v1722_v5, 0.0  ;;  %vm1739_vm1 = vcmp.ge.f32.partialorder %v1723_v7, 0.0  ;;  %v1754_v33 = vmul.f32 0.2, %v1722_v5  ;;  %v1755_v34 = vmul.f32 0.2, %v1723_v7 }
 0x1bc   : > { %vm1740_vm2 = vcmp.ge.f32.partialorder %v1724_v17, 0.0  ;;  %vm1741_vm3 = vcmp.ge.f32.partialorder %v1725_v18, 0.0  ;;  %v1756_v35 = vmul.f32 0.2, %v1724_v17  ;;  %v1757_v36 = vmul.f32 0.2, %v1725_v18 }
 0x1bd   : > { %v1770_v56 = vsel %vm1738_vm0, %v1722_v5, %v1754_v33  ;;  %v1771_v58 = vsel %vm1739_vm1, %v1723_v7, %v1755_v34  ;;  %vm1742_vm4 = vcmp.ge.f32.partialorder %v1726_v20, 0.0  ;;  %v1706_v60 = vld [vmem:[#allocation2 + $0x48] sm:$0xff]  ;;  %v1758_v37 = vmul.f32 0.2, %v1726_v20  ;;  %v1711_v43 = vld [vmem:[#allocation2 + $0x60] sm:$0xff]  ;;  %v1712_v27 = vld [vmem:[#allocation2 + $0x70] sm:$0xff] }
 0x1be   : > { %v2120_v11 = vpack.c.bf16 %v1771_v58, %v1770_v56  ;;  %v1772_v12 = vsel %vm1740_vm2, %v1724_v17, %v1756_v35  ;;  %v1773_v21 = vsel %vm1741_vm3, %v1725_v18, %v1757_v36  ;;  %vm1743_vm5 = vcmp.ge.f32.partialorder %v1727_v57, 0.0  ;;  %v1713_v28 = vld [vmem:[#allocation2 + $0x78] sm:$0xff]  ;;  %v1714_v3 = vld [vmem:[#allocation2 + $0x28] sm:$0xff] }
 0x1bf   : > { %v2125_v38 = vpack.c.bf16 %v1773_v21, %v1772_v12  ;;  %v1759_v40 = vmul.f32 0.2, %v1727_v57  ;;  %v1728_v23 = vadd.f32 %v3107_v32, %v1705_v53  ;;  %v1774_v22 = vsel %vm1742_vm4, %v1726_v20, %v1758_v37 }
 0x1c0   : > { %2121 = vst [vmem:[%s3167_s3] sm:$0xff] %v2120_v11   ;;  %v1729_v24 = vadd.f32 %v3107_v32, %v1706_v60  ;;  %v1731_v52 = vadd.f32 %v3107_v32, %v1708_v10  ;;  %vm1746_vm8 = vcmp.ge.f32.partialorder %v1730_v50, 0.0  ;;  %v1762_v63 = vmul.f32 0.2, %v1730_v50 }
 0x1c1   : > { %2157 = vst [vmem:[%s3167_s3 + $0x8] sm:$0xff] %v2125_v38   ;;  %v1775_v59 = vsel %vm1743_vm5, %v1727_v57, %v1759_v40  ;;  %vm1744_vm6 = vcmp.ge.f32.partialorder %v1728_v23, 0.0  ;;  %v1760_v61 = vmul.f32 0.2, %v1728_v23  ;;  %v1733_v25 = vadd.f32 %v3107_v32, %v1710_v55 }
 0x1c2   : > { %v2130_v41 = vpack.c.bf16 %v1775_v59, %v1774_v22  ;;  %vm1745_vm7 = vcmp.ge.f32.partialorder %v1729_v24, 0.0  ;;  %v1761_v42 = vmul.f32 0.2, %v1729_v24  ;;  %vm1747_vm9 = vcmp.ge.f32.partialorder %v1731_v52, 0.0 }
 0x1c3   : > { %v1776_v44 = vsel %vm1744_vm6, %v1728_v23, %v1760_v61  ;;  %v1763_v1 = vmul.f32 0.2, %v1731_v52  ;;  %vm1748_vm10 = vcmp.ge.f32.partialorder %v1732_v62, 0.0  ;;  %v1764_v26 = vmul.f32 0.2, %v1732_v62 }
 0x1c4   : > { %2158 = vst [vmem:[%s3167_s3 + $0x10] sm:$0xff] %v2130_v41   ;;  %v1777_v2 = vsel %vm1745_vm7, %v1729_v24, %v1761_v42  ;;  %v1778_v15 = vsel %vm1746_vm8, %v1730_v50, %v1762_v63  ;;  %v1734_v16 = vadd.f32 %v3107_v32, %v1711_v43  ;;  %vm1749_vm11 = vcmp.ge.f32.partialorder %v1733_v25, 0.0 }
 0x1c5   : > { %v2135_v13 = vpack.c.bf16 %v1777_v2, %v1776_v44  ;;  %v1779_v14 = vsel %vm1747_vm9, %v1731_v52, %v1763_v1  ;;  %v1765_v47 = vmul.f32 0.2, %v1733_v25  ;;  %v1780_v46 = vsel %vm1748_vm10, %v1732_v62, %v1764_v26 }
 0x1c6   : > { %v2140_v45 = vpack.c.bf16 %v1779_v14, %v1778_v15  ;;  %v1735_v48 = vadd.f32 %v3107_v32, %v1712_v27  ;;  %vm1750_vm12 = vcmp.ge.f32.partialorder %v1734_v16, 0.0  ;;  %v1766_v51 = vmul.f32 0.2, %v1734_v16 }
 0x1c7   : > { %2159 = vst [vmem:[%s3167_s3 + $0x18] sm:$0xff] %v2135_v13   ;;  %v1736_v4 = vadd.f32 %v3107_v32, %v1713_v28  ;;  %v1781_v54 = vsel %vm1749_vm11, %v1733_v25, %v1765_v47  ;;  %v1737_v0 = vadd.f32 %v3107_v32, %v1714_v3 }
 0x1c8   : > { %2160 = vst [vmem:[%s3167_s3 + $0x20] sm:$0xff] %v2140_v45   ;;  %v2145_v29 = vpack.c.bf16 %v1781_v54, %v1780_v46  ;;  %vm1751_vm13 = vcmp.ge.f32.partialorder %v1735_v48, 0.0  ;;  %v1767_v31 = vmul.f32 0.2, %v1735_v48  ;;  %v1782_v30 = vsel %vm1750_vm12, %v1734_v16, %v1766_v51 }
 0x1c9   : > { %vm1752_vm14 = vcmp.ge.f32.partialorder %v1736_v4, 0.0  ;;  %vm1753_vm15 = vcmp.ge.f32.partialorder %v1737_v0, 0.0  ;;  %v1768_v5 = vmul.f32 0.2, %v1736_v4  ;;  %v1769_v7 = vmul.f32 0.2, %v1737_v0 }
 0x1ca   : > { %2161 = vst [vmem:[%s3167_s3 + $0x28] sm:$0xff] %v2145_v29   ;;  %v1783_v49 = vsel %vm1751_vm13, %v1735_v48, %v1767_v31 }
 0x1cb   : > { %v2150_v6 = vpack.c.bf16 %v1783_v49, %v1782_v30  ;;  %v1784_v8 = vsel %vm1752_vm14, %v1736_v4, %v1768_v5  ;;  %v1785_v17 = vsel %vm1753_vm15, %v1737_v0, %v1769_v7 }
 0x1cc   : > { %v2155_v18 = vpack.c.bf16 %v1785_v17, %v1784_v8 }
 0x1cd   : > { %2162 = vst [vmem:[%s3167_s3 + $0x30] sm:$0xff] %v2150_v6  }
 0x1ce   : > { %2163 = vst [vmem:[%s3167_s3 + $0x38] sm:$0xff] %v2155_v18  }
 0x1cf PF: > { %s13_s16 = sadd.s32 1, %s2563_s16   ;;  %s3198_s12 = smov %s2551_s13 }
 0x1d0   : > { %p10_p11 = scmp.ge.s32.totalorder %s13_s16, 4   ;;  %s3199_s13 = smov %s2621_s20 }
 0x1d1   : > { %s3200_s14 = smov %s2559_s15  ;;  %s3201_s15 = smov %s3203_s17 }
 0x1d2   :  { %12 = sbr.rel (!%p10_p11) target bundleno = 3 (0x3), region = 99 }

// kernel: discriminator_forward.7
= control target key start
LH: loop header
LB: loop body
LE: loop exit
PB: predicated region body
PF: predicated region fallthrough
CT: control target
= control target key end

     0   :  { %s1985_s12 = smov 0   ;;  %s1987_s13 = smov 0   ;;  %s2271_s0 = inlined_call_operand.vmem [shape: bf16[32,2048], index: 0, kind: input, shape index: {}]   ;;  %s2272_s1 = inlined_call_operand.vmem [shape: bf16[2048,256], index: 1, kind: input, shape index: {}]   ;;  %s2273_s2 = inlined_call_operand.vmem [shape: f32[1,256], index: 2, kind: input, shape index: {}]   ;;  %s2274_s3 = inlined_call_operand.vmem [shape: bf16[32,256], index: 3, kind: output, shape index: {}]  }
   0x1   :  { %s1989_s14 = smov 0   ;;  %s1991_s15 = smov 0  }
   0x2   :  { %s1993_s16 = smov 0  }
   0x3 LB: > { %s22_s17 = sadd.s32 1, %s1958_s15  ;;  %p41_p1 = scmp.ne.s32.totalorder %s1950_s13, %s1946_s12  ;;  %s1962_s16 = sphi %s1993_s16, %s13_s16   ;;  %s1958_s15 = sphi %s1991_s15, %s2278_s15   ;;  %s1954_s14 = sphi %s1989_s14, %s2277_s14   ;;  %s1950_s13 = sphi %s1987_s13, %s2276_s13   ;;  %s1946_s12 = sphi %s1985_s12, %s2275_s12  }
   0x4   : > { %p23_p0 = scmp.ge.s32.totalorder %s22_s17, 2  ;;  %p42_p2 = scmp.eq.s32.totalorder %s1962_s16, 0 }
   0x5   : > { %s34_s19 = sadd.s32 1, %s1950_s13  ;;  %p1522_p5 = scmp.ge.s32.totalorder %s1962_s16, 2 }
   0x6   : > { %s2280_s17 = smov (%p23_p0, %s22_s17), 0  ;;  %p43_p3 = por %p42_p2, %p41_p1 }
   0x7   : > { %s30_s18 = ssub.s32 %s1958_s15, %s2280_s17  ;;  %141 = sbr.rel (%p1522_p5) target bundleno = 24 (0x18), region = 24 }
   0x8   : > { %p32_p4 = scmp.eq.s32.totalorder %s30_s18, 0 }
   0xa   : > { %s2020_s20 = scalar_select %p32_p4, %s1950_s13, %s34_s19  }
   0xc   : > { %144 = sbr.rel (!%p43_p3) target bundleno = 24 (0x18), region = 28  ;;  %s146_s21 = sand.u32 (%p43_p3), 1, %s1950_s13  }
   0xd   : > { %s1685_s22 = sshll.u32 (%p43_p3), %s1958_s15, 5  ;;  %s1523_s23 = sshll.u32 (%p43_p3), %s146_s21, 7 }
   0xe   : > { %s2028_s26 = scalar_lea.vmem (%p43_p3), %s2271_s0, %s1685_s22  ;;  %s148_s27 = scalar_lea.vmem (%p43_p3), [#allocation3], %s1523_s23 }
   0xf   : > { %v167_v0 = vld [vmem:[%s2028_s26] sm:$0xff] (%p43_p3)  ;;  %v169_v1 = vld [vmem:[%s2028_s26 + $0x8] sm:$0xff] (%p43_p3)  ;;  %v171_v2 = vld [vmem:[%s2028_s26 + $0x10] sm:$0xff] (%p43_p3) }
  0x10   : > { %168 = vst [vmem:[%s148_s27] sm:$0xff] (%p43_p3), %v167_v0  ;;  %170 = vst [vmem:[%s148_s27 + $0x8] sm:$0xff] (%p43_p3), %v169_v1  ;;  %v173_v3 = vld [vmem:[%s2028_s26 + $0x18] sm:$0xff] (%p43_p3)  ;;  %v175_v4 = vld [vmem:[%s2028_s26 + $0x40] sm:$0xff] (%p43_p3) }
  0x11   : > { %172 = vst [vmem:[%s148_s27 + $0x10] sm:$0xff] %v171_v2  ;;  %v177_v5 = vld [vmem:[%s2028_s26 + $0x48] sm:$0xff]  ;;  %174 = vst [vmem:[%s148_s27 + $0x18] sm:$0xff] %v173_v3  ;;  %v179_v6 = vld [vmem:[%s2028_s26 + $0x50] sm:$0xff] }
  0x12   : > { %176 = vst [vmem:[%s148_s27 + $0x20] sm:$0xff] %v175_v4  ;;  %178 = vst [vmem:[%s148_s27 + $0x28] sm:$0xff] %v177_v5  ;;  %v181_v7 = vld [vmem:[%s2028_s26 + $0x58] sm:$0xff]  ;;  %v183_v8 = vld [vmem:[%s2028_s26 + $0x80] sm:$0xff] }
  0x13   : > { %180 = vst [vmem:[%s148_s27 + $0x30] sm:$0xff] %v179_v6  ;;  %182 = vst [vmem:[%s148_s27 + $0x38] sm:$0xff] %v181_v7  ;;  %v185_v9 = vld [vmem:[%s2028_s26 + $0x88] sm:$0xff]  ;;  %v187_v10 = vld [vmem:[%s2028_s26 + $0x90] sm:$0xff] }
  0x14   : > { %184 = vst [vmem:[%s148_s27 + $0x40] sm:$0xff] %v183_v8  ;;  %v189_v11 = vld [vmem:[%s2028_s26 + $0x98] sm:$0xff]  ;;  %186 = vst [vmem:[%s148_s27 + $0x48] sm:$0xff] %v185_v9  ;;  %v191_v12 = vld [vmem:[%s2028_s26 + $0xc0] sm:$0xff] }
  0x15   : > { %188 = vst [vmem:[%s148_s27 + $0x50] sm:$0xff] %v187_v10  ;;  %190 = vst [vmem:[%s148_s27 + $0x58] sm:$0xff] %v189_v11  ;;  %v193_v13 = vld [vmem:[%s2028_s26 + $0xc8] sm:$0xff]  ;;  %v195_v14 = vld [vmem:[%s2028_s26 + $0xd0] sm:$0xff] }
  0x16   : > { %192 = vst [vmem:[%s148_s27 + $0x60] sm:$0xff] %v191_v12  ;;  %194 = vst [vmem:[%s148_s27 + $0x68] sm:$0xff] %v193_v13  ;;  %v197_v15 = vld [vmem:[%s2028_s26 + $0xd8] sm:$0xff] }
  0x17   : > { %196 = vst [vmem:[%s148_s27 + $0x70] sm:$0xff] %v195_v14  ;;  %198 = vst [vmem:[%s148_s27 + $0x78] sm:$0xff] %v197_v15 }
  0x18 PF: > { %p1526_p6 = scmp.ge.s32.totalorder %s1962_s16, 1  ;;  %p203_p7 = scmp.lt.s32.totalorder %s1962_s16, 3 }
  0x1a   : > { %p204_p8 = pnand %p1526_p6, %p203_p7 }
  0x1b   : > { %s210_s28 = sand.u32 (!%p204_p8), 1, %s1946_s12   ;;  %p1528_p9 = scmp.ne.s32.totalorder (!%p204_p8), %s1954_s14, 0 }
  0x1c   : > { %207 = sbr.rel (%p204_p8) target bundleno = 410 (0x19a), region = 51  ;;  %s1527_s29 = sshll.u32 (!%p204_p8), %s210_s28, 7 }
  0x1d   : > { %s2049_s30 = scalar_lea.vmem (!%p204_p8), [#allocation3], %s1527_s29 }
  0x21   : > { %246 = sbr.rel (%p1528_p9) target bundleno = 43 (0x2b), region = 59 }
  0x26   : > { %v1964_v16 = vmov 0.0  }
  0x27   : > { %247 = vst [vmem:[#allocation2 + $0x30] sm:$0xff] %v1964_v16  ;;  %248 = vst [vmem:[#allocation2] sm:$0xff] %v1964_v16 }
  0x28   : > { %249 = vst [vmem:[#allocation2 + $0x18] sm:$0xff] %v1964_v16  ;;  %250 = vst [vmem:[#allocation2 + $0x10] sm:$0xff] %v1964_v16 }
  0x29   : > { %251 = vst [vmem:[#allocation2 + $0x8] sm:$0xff] %v1964_v16  ;;  %252 = vst [vmem:[#allocation2 + $0x20] sm:$0xff] %v1964_v16 }
  0x2a   : > { %253 = vst [vmem:[#allocation2 + $0x28] sm:$0xff] %v1964_v16  ;;  %254 = vst [vmem:[#allocation2 + $0x38] sm:$0xff] %v1964_v16 }
  0x2b PF: > { %s1529_s4 = sshll.u32 %s1954_s14, 10  ;;  %v2054_v17 = vld [vmem:[%s2049_s30] sm:$0xff]  ;;  %v2060_v19 = vld [vmem:[%s2049_s30 + $0x8] sm:$0xff]  ;;  %p1676_p10 = scmp.ne.s32.totalorder %s1954_s14, 1 }
  0x2c   : > { %v2057_v18 = vld [vmem:[%s2049_s30 + $0x20] sm:$0xff]  ;;  %s2065_s7 = scalar_lea.vmem %s2272_s1, %s1529_s4  ;;  %v2072_v22 = vld [vmem:[%s2049_s30 + $0x28] sm:$0xff] }
  0x2d   : > { %v1532_v20 = vcombine.low %v2054_v17, %v2057_v18  ;;  %v1533_v21 = vcombine.high %v2054_v17, %v2057_v18  ;;  %v1732_v23 = vld [vmem:[%s2065_s7 + $0x74] ss:$8 sps:$4 sm:$0xff]   ;;  %v1534_v24 = vcombine.low %v2060_v19, %v2072_v22  ;;  %v1535_v25 = vcombine.high %v2060_v19, %v2072_v22  ;;  %v1736_v27 = vld [vmem:[%s2065_s7 + $0x70] ss:$8 sps:$4 sm:$0xff]   ;;  %v1738_v29 = vld [vmem:[%s2065_s7 + $0x64] ss:$8 sps:$4 sm:$0xff]  }
  0x2e   : > { %v1734_v26 = vld [vmem:[%s2065_s7 + $0x174] ss:$8 sps:$4 sm:$0xff]   ;;  %1133 = vmatprep.subr.bf16.mxu0 %v1732_v23  ;;  %v1737_v28 = vld [vmem:[%s2065_s7 + $0x170] ss:$8 sps:$4 sm:$0xff]   ;;  %v1740_v30 = vld [vmem:[%s2065_s7 + $0x164] ss:$8 sps:$4 sm:$0xff]  }
  0x2f   : > { %1165 = vmatprep.mubr.bf16.mxu0 %v1533_v21  ;;  %1218 = vmatprep.mubr.bf16.mxu1 %v1535_v25  ;;  %v1742_v31 = vld [vmem:[%s2065_s7 + $0x60] ss:$8 sps:$4 sm:$0xff]   ;;  %v1744_v33 = vld [vmem:[%s2065_s7 + $0x54] ss:$8 sps:$4 sm:$0xff]   ;;  %v1748_v35 = vld [vmem:[%s2065_s7 + $0x50] ss:$8 sps:$4 sm:$0xff]  }
  0x30   : > { %1186 = vmatprep.subr.bf16.mxu1 %v1734_v26  ;;  %1134 = vmatpush1.bf16.msra.mxu0 %v1736_v27  ;;  %v1743_v32 = vld [vmem:[%s2065_s7 + $0x160] ss:$8 sps:$4 sm:$0xff]   ;;  %v1746_v34 = vld [vmem:[%s2065_s7 + $0x154] ss:$8 sps:$4 sm:$0xff]   ;;  %v1749_v36 = vld [vmem:[%s2065_s7 + $0x150] ss:$8 sps:$4 sm:$0xff]  }
  0x31   : > { %1187 = vmatpush1.bf16.msra.mxu1 %v1737_v28  ;;  %1135 = vmatprep.subr.bf16.mxu0 %v1738_v29  ;;  %v1750_v37 = vld [vmem:[%s2065_s7 + $0x44] ss:$8 sps:$4 sm:$0xff]   ;;  %v1754_v39 = vld [vmem:[%s2065_s7 + $0x40] ss:$8 sps:$4 sm:$0xff]   ;;  %v1756_v41 = vld [vmem:[%s2065_s7 + $0x34] ss:$8 sps:$4 sm:$0xff]  }
  0x32   : > { %1188 = vmatprep.subr.bf16.mxu1 %v1740_v30  ;;  %v1752_v38 = vld [vmem:[%s2065_s7 + $0x144] ss:$8 sps:$4 sm:$0xff]   ;;  %v1755_v40 = vld [vmem:[%s2065_s7 + $0x140] ss:$8 sps:$4 sm:$0xff]   ;;  %v1758_v42 = vld [vmem:[%s2065_s7 + $0x134] ss:$8 sps:$4 sm:$0xff]  }
  0x33   : > { %v1760_v43 = vld [vmem:[%s2065_s7 + $0x30] ss:$8 sps:$4 sm:$0xff]   ;;  %v1762_v45 = vld [vmem:[%s2065_s7 + $0x24] ss:$8 sps:$4 sm:$0xff]   ;;  %v1766_v47 = vld [vmem:[%s2065_s7 + $0x20] ss:$8 sps:$4 sm:$0xff]  }
  0x34   : > { %1136 = vmatpush1.bf16.msra.mxu0 %v1742_v31  ;;  %v1761_v44 = vld [vmem:[%s2065_s7 + $0x130] ss:$8 sps:$4 sm:$0xff]   ;;  %v1764_v46 = vld [vmem:[%s2065_s7 + $0x124] ss:$8 sps:$4 sm:$0xff]   ;;  %v1767_v48 = vld [vmem:[%s2065_s7 + $0x120] ss:$8 sps:$4 sm:$0xff]  }
  0x35   : > { %1189 = vmatpush1.bf16.msra.mxu1 %v1743_v32  ;;  %1137 = vmatprep.subr.bf16.mxu0 %v1744_v33  ;;  %v1768_v49 = vld [vmem:[%s2065_s7 + $0x14] ss:$8 sps:$4 sm:$0xff]   ;;  %v1772_v51 = vld [vmem:[%s2065_s7 + $0x10] ss:$8 sps:$4 sm:$0xff]   ;;  %v1774_v53 = vld [vmem:[%s2065_s7 + $0x4] ss:$8 sps:$4 sm:$0xff]  }
  0x36   : > { %1190 = vmatprep.subr.bf16.mxu1 %v1746_v34  ;;  %v1770_v50 = vld [vmem:[%s2065_s7 + $0x114] ss:$8 sps:$4 sm:$0xff]   ;;  %v1773_v52 = vld [vmem:[%s2065_s7 + $0x110] ss:$8 sps:$4 sm:$0xff]   ;;  %v1776_v54 = vld [vmem:[%s2065_s7 + $0x104] ss:$8 sps:$4 sm:$0xff]  }
  0x37   : > { %v1778_v55 = vld [vmem:[%s2065_s7] ss:$8 sps:$4 sm:$0xff]   ;;  %v1780_v57 = vld [vmem:[%s2065_s7 + $0xf4] ss:$8 sps:$4 sm:$0xff]   ;;  %v1784_v59 = vld [vmem:[%s2065_s7 + $0xf0] ss:$8 sps:$4 sm:$0xff]  }
  0x38   : > { %1138 = vmatpush1.bf16.msra.mxu0 %v1748_v35  ;;  %v1779_v56 = vld [vmem:[%s2065_s7 + $0x100] ss:$8 sps:$4 sm:$0xff]   ;;  %v1782_v58 = vld [vmem:[%s2065_s7 + $0x1f4] ss:$8 sps:$4 sm:$0xff]   ;;  %v1785_v60 = vld [vmem:[%s2065_s7 + $0x1f0] ss:$8 sps:$4 sm:$0xff]  }
  0x39   : > { %1191 = vmatpush1.bf16.msra.mxu1 %v1749_v36  ;;  %1139 = vmatprep.subr.bf16.mxu0 %v1750_v37  ;;  %v1786_v61 = vld [vmem:[%s2065_s7 + $0xe4] ss:$8 sps:$4 sm:$0xff]   ;;  %v1790_v63 = vld [vmem:[%s2065_s7 + $0xe0] ss:$8 sps:$4 sm:$0xff]   ;;  %v1792_v1 = vld [vmem:[%s2065_s7 + $0xd4] ss:$8 sps:$4 sm:$0xff]  }
  0x3a   : > { %1192 = vmatprep.subr.bf16.mxu1 %v1752_v38  ;;  %v1788_v62 = vld [vmem:[%s2065_s7 + $0x1e4] ss:$8 sps:$4 sm:$0xff]   ;;  %v1791_v0 = vld [vmem:[%s2065_s7 + $0x1e0] ss:$8 sps:$4 sm:$0xff]   ;;  %v1794_v2 = vld [vmem:[%s2065_s7 + $0x1d4] ss:$8 sps:$4 sm:$0xff]  }
  0x3b   : > { %v1796_v3 = vld [vmem:[%s2065_s7 + $0xd0] ss:$8 sps:$4 sm:$0xff]   ;;  %v1798_v5 = vld [vmem:[%s2065_s7 + $0xc4] ss:$8 sps:$4 sm:$0xff]   ;;  %v1802_v7 = vld [vmem:[%s2065_s7 + $0xc0] ss:$8 sps:$4 sm:$0xff]  }
  0x3c   : > { %1140 = vmatpush1.bf16.msra.mxu0 %v1754_v39  ;;  %v1797_v4 = vld [vmem:[%s2065_s7 + $0x1d0] ss:$8 sps:$4 sm:$0xff]   ;;  %v1800_v6 = vld [vmem:[%s2065_s7 + $0x1c4] ss:$8 sps:$4 sm:$0xff]   ;;  %v1803_v8 = vld [vmem:[%s2065_s7 + $0x1c0] ss:$8 sps:$4 sm:$0xff]  }
  0x3d   : > { %1193 = vmatpush1.bf16.msra.mxu1 %v1755_v40  ;;  %1141 = vmatprep.subr.bf16.mxu0 %v1756_v41  ;;  %v1804_v9 = vld [vmem:[%s2065_s7 + $0xb4] ss:$8 sps:$4 sm:$0xff]   ;;  %v1808_v11 = vld [vmem:[%s2065_s7 + $0xb0] ss:$8 sps:$4 sm:$0xff]   ;;  %v1810_v13 = vld [vmem:[%s2065_s7 + $0xa4] ss:$8 sps:$4 sm:$0xff]  }
  0x3e   : > { %1194 = vmatprep.subr.bf16.mxu1 %v1758_v42  ;;  %v1806_v10 = vld [vmem:[%s2065_s7 + $0x1b4] ss:$8 sps:$4 sm:$0xff]   ;;  %v1809_v12 = vld [vmem:[%s2065_s7 + $0x1b0] ss:$8 sps:$4 sm:$0xff]   ;;  %v1812_v14 = vld [vmem:[%s2065_s7 + $0x1a4] ss:$8 sps:$4 sm:$0xff]  }
  0x3f   : > { %v1814_v15 = vld [vmem:[%s2065_s7 + $0xa0] ss:$8 sps:$4 sm:$0xff]   ;;  %v1816_v21 = vld [vmem:[%s2065_s7 + $0x94] ss:$8 sps:$4 sm:$0xff]   ;;  %v1820_v25 = vld [vmem:[%s2065_s7 + $0x90] ss:$8 sps:$4 sm:$0xff]  }
  0x40   : > { %1142 = vmatpush1.bf16.msra.mxu0 %v1760_v43  ;;  %v1815_v16 = vld [vmem:[%s2065_s7 + $0x1a0] ss:$8 sps:$4 sm:$0xff]   ;;  %v1818_v23 = vld [vmem:[%s2065_s7 + $0x194] ss:$8 sps:$4 sm:$0xff]   ;;  %v1821_v26 = vld [vmem:[%s2065_s7 + $0x190] ss:$8 sps:$4 sm:$0xff]  }
  0x41   : > { %1195 = vmatpush1.bf16.msra.mxu1 %v1761_v44  ;;  %1143 = vmatprep.subr.bf16.mxu0 %v1762_v45  ;;  %v1822_v27 = vld [vmem:[%s2065_s7 + $0x84] ss:$8 sps:$4 sm:$0xff]   ;;  %v1826_v29 = vld [vmem:[%s2065_s7 + $0x80] ss:$8 sps:$4 sm:$0xff]   ;;  %v1830_v31 = vld [vmem:[%s2065_s7 + $0x274] ss:$8 sps:$4 sm:$0xff]  }
  0x42   : > { %1196 = vmatprep.subr.bf16.mxu1 %v1764_v46  ;;  %v1824_v28 = vld [vmem:[%s2065_s7 + $0x184] ss:$8 sps:$4 sm:$0xff]   ;;  %v1827_v30 = vld [vmem:[%s2065_s7 + $0x180] ss:$8 sps:$4 sm:$0xff]   ;;  %v1833_v32 = vld [vmem:[%s2065_s7 + $0x374] ss:$8 sps:$4 sm:$0xff]  }
  0x43   : > { %v272_v33 = vld [vmem:[%s2049_s30 + $0x40] sm:$0xff]  ;;  %v1828_v35 = vld [vmem:[%s2065_s7 + $0x270] ss:$8 sps:$4 sm:$0xff]   ;;  %v1842_v42 = vld [vmem:[%s2065_s7 + $0x254] ss:$8 sps:$4 sm:$0xff]  }
  0x44   : > { %1144 = vmatpush1.bf16.msra.mxu0 %v1766_v47  ;;  %v276_v34 = vld [vmem:[%s2049_s30 + $0x60] sm:$0xff]  ;;  %v1831_v36 = vld [vmem:[%s2065_s7 + $0x370] ss:$8 sps:$4 sm:$0xff]   ;;  %v1845_v43 = vld [vmem:[%s2065_s7 + $0x354] ss:$8 sps:$4 sm:$0xff]  }
  0x45   : > { %1197 = vmatpush1.bf16.msra.mxu1 %v1767_v48  ;;  %1145 = vmatprep.subr.bf16.mxu0 %v1768_v49  ;;  %v1836_v37 = vld [vmem:[%s2065_s7 + $0x264] ss:$8 sps:$4 sm:$0xff]   ;;  %v1541_v39 = vcombine.high %v272_v33, %v276_v34  ;;  %v1834_v40 = vld [vmem:[%s2065_s7 + $0x260] ss:$8 sps:$4 sm:$0xff]   ;;  %v1840_v17 = vld [vmem:[%s2065_s7 + $0x250] ss:$8 sps:$4 sm:$0xff]  }
  0x46   : > { %1198 = vmatprep.subr.bf16.mxu1 %v1770_v50  ;;  %v1839_v38 = vld [vmem:[%s2065_s7 + $0x364] ss:$8 sps:$4 sm:$0xff]   ;;  %v1837_v41 = vld [vmem:[%s2065_s7 + $0x360] ss:$8 sps:$4 sm:$0xff]   ;;  %v1843_v18 = vld [vmem:[%s2065_s7 + $0x350] ss:$8 sps:$4 sm:$0xff]  }
  0x47   : > { %v1848_v19 = vld [vmem:[%s2065_s7 + $0x244] ss:$8 sps:$4 sm:$0xff]   ;;  %v1849_v44 = vld [vmem:[%s2065_s7 + $0x340] ss:$8 sps:$4 sm:$0xff]   ;;  %v1854_v45 = vld [vmem:[%s2065_s7 + $0x234] ss:$8 sps:$4 sm:$0xff]  }
  0x48   : > { %1146 = vmatpush1.bf16.msra.mxu0 %v1772_v51  ;;  %v1851_v22 = vld [vmem:[%s2065_s7 + $0x344] ss:$8 sps:$4 sm:$0xff]   ;;  %v1857_v46 = vld [vmem:[%s2065_s7 + $0x334] ss:$8 sps:$4 sm:$0xff]   ;;  %v1852_v51 = vld [vmem:[%s2065_s7 + $0x230] ss:$8 sps:$4 sm:$0xff]  }
  0x49   : > { %1199 = vmatpush1.bf16.msra.mxu1 %v1773_v52  ;;  %1147 = vmatprep.subr.bf16.mxu0 %v1774_v53  ;;  %v273_v47 = vld [vmem:[%s2049_s30 + $0x48] sm:$0xff]  ;;  %v1855_v52 = vld [vmem:[%s2065_s7 + $0x330] ss:$8 sps:$4 sm:$0xff]  }
  0x4a   : > { %1200 = vmatprep.subr.bf16.mxu1 %v1776_v54  ;;  %v277_v48 = vld [vmem:[%s2049_s30 + $0x68] sm:$0xff] }
  0x4b   : > { %v1543_v49 = vcombine.high %v273_v47, %v277_v48  ;;  %v1542_v50 = vcombine.low %v273_v47, %v277_v48  ;;  %v1860_v53 = vld [vmem:[%s2065_s7 + $0x224] ss:$8 sps:$4 sm:$0xff]  }
  0x4c   : > { %1148 = vmatpush1.bf16.msra.mxu0 %v1778_v55  ;;  %v1863_v54 = vld [vmem:[%s2065_s7 + $0x324] ss:$8 sps:$4 sm:$0xff]   ;;  %v1858_v55 = vld [vmem:[%s2065_s7 + $0x220] ss:$8 sps:$4 sm:$0xff]  }
  0x4d   : > { %1201 = vmatpush1.bf16.msra.mxu1 %v1779_v56  ;;  %1149 = vmatprep.subr.bf16.mxu0 %v1780_v57  ;;  %v1861_v56 = vld [vmem:[%s2065_s7 + $0x320] ss:$8 sps:$4 sm:$0xff]   ;;  %v1866_v57 = vld [vmem:[%s2065_s7 + $0x214] ss:$8 sps:$4 sm:$0xff]  }
  0x4e   : > { %1202 = vmatprep.subr.bf16.mxu1 %v1782_v58  ;;  %v1869_v58 = vld [vmem:[%s2065_s7 + $0x314] ss:$8 sps:$4 sm:$0xff]  }
  0x50   : > { %1150 = vmatpush2.bf16.msra.mxu0 %v1784_v59  ;;  %v2179_v59 = vld [vmem:[%s2049_s30 + $0x10] sm:$0xff] }
  0x51   : > { %1203 = vmatpush2.bf16.msra.mxu1 %v1785_v60  ;;  %1151 = vmatprep.subr.bf16.mxu0 %v1786_v61  ;;  %v2182_v60 = vld [vmem:[%s2049_s30 + $0x30] sm:$0xff]  ;;  %v2185_v61 = vld [vmem:[%s2049_s30 + $0x18] sm:$0xff] }
  0x52   : > { %1204 = vmatprep.subr.bf16.mxu1 %v1788_v62  ;;  %v1537_v62 = vcombine.high %v2179_v59, %v2182_v60 }
  0x54   : > { %1152 = vmatpush2.bf16.msra.mxu0 %v1790_v63  ;;  %v2190_v63 = vld [vmem:[%s2049_s30 + $0x38] sm:$0xff] }
  0x55   : > { %1205 = vmatpush2.bf16.msra.mxu1 %v1791_v0  ;;  %1153 = vmatprep.subr.bf16.mxu0 %v1792_v1  ;;  %v1864_v0 = vld [vmem:[%s2065_s7 + $0x210] ss:$8 sps:$4 sm:$0xff]  }
  0x56   : > { %1206 = vmatprep.subr.bf16.mxu1 %v1794_v2  ;;  %v1867_v1 = vld [vmem:[%s2065_s7 + $0x310] ss:$8 sps:$4 sm:$0xff]   ;;  %v1539_v2 = vcombine.high %v2185_v61, %v2190_v63 }
  0x58   : > { %1154 = vmatpush2.bf16.msra.mxu0 %v1796_v3  ;;  %v1872_v3 = vld [vmem:[%s2065_s7 + $0x204] ss:$8 sps:$4 sm:$0xff]  }
  0x59   : > { %1207 = vmatpush2.bf16.msra.mxu1 %v1797_v4  ;;  %1155 = vmatprep.subr.bf16.mxu0 %v1798_v5  ;;  %v1875_v4 = vld [vmem:[%s2065_s7 + $0x304] ss:$8 sps:$4 sm:$0xff]   ;;  %v1870_v5 = vld [vmem:[%s2065_s7 + $0x200] ss:$8 sps:$4 sm:$0xff]  }
  0x5a   : > { %1208 = vmatprep.subr.bf16.mxu1 %v1800_v6  ;;  %v1873_v6 = vld [vmem:[%s2065_s7 + $0x300] ss:$8 sps:$4 sm:$0xff]  }
  0x5c   : > { %1156 = vmatpush2.bf16.msra.mxu0 %v1802_v7  ;;  %v1878_v7 = vld [vmem:[%s2065_s7 + $0x2f4] ss:$8 sps:$4 sm:$0xff]  }
  0x5d   : > { %1209 = vmatpush2.bf16.msra.mxu1 %v1803_v8  ;;  %1157 = vmatprep.subr.bf16.mxu0 %v1804_v9  ;;  %v1881_v8 = vld [vmem:[%s2065_s7 + $0x3f4] ss:$8 sps:$4 sm:$0xff]   ;;  %v1876_v9 = vld [vmem:[%s2065_s7 + $0x2f0] ss:$8 sps:$4 sm:$0xff]  }
  0x5e   : > { %1210 = vmatprep.subr.bf16.mxu1 %v1806_v10  ;;  %v1879_v10 = vld [vmem:[%s2065_s7 + $0x3f0] ss:$8 sps:$4 sm:$0xff]  }
  0x60   : > { %1158 = vmatpush2.bf16.msra.mxu0 %v1808_v11  ;;  %v1884_v11 = vld [vmem:[%s2065_s7 + $0x2e4] ss:$8 sps:$4 sm:$0xff]  }
  0x61   : > { %1211 = vmatpush2.bf16.msra.mxu1 %v1809_v12  ;;  %1159 = vmatprep.subr.bf16.mxu0 %v1810_v13  ;;  %v1887_v12 = vld [vmem:[%s2065_s7 + $0x3e4] ss:$8 sps:$4 sm:$0xff]   ;;  %v1882_v13 = vld [vmem:[%s2065_s7 + $0x2e0] ss:$8 sps:$4 sm:$0xff]  }
  0x62   : > { %1212 = vmatprep.subr.bf16.mxu1 %v1812_v14  ;;  %v1885_v14 = vld [vmem:[%s2065_s7 + $0x3e0] ss:$8 sps:$4 sm:$0xff]  }
  0x64   : > { %1160 = vmatpush2.bf16.msra.mxu0 %v1814_v15  ;;  %v1890_v15 = vld [vmem:[%s2065_s7 + $0x2d4] ss:$8 sps:$4 sm:$0xff]  }
  0x65   : > { %1213 = vmatpush2.bf16.msra.mxu1 %v1815_v16  ;;  %1161 = vmatprep.subr.bf16.mxu0 %v1816_v21  ;;  %v1893_v16 = vld [vmem:[%s2065_s7 + $0x3d4] ss:$8 sps:$4 sm:$0xff]   ;;  %v1888_v21 = vld [vmem:[%s2065_s7 + $0x2d0] ss:$8 sps:$4 sm:$0xff]  }
  0x66   : > { %1214 = vmatprep.subr.bf16.mxu1 %v1818_v23  ;;  %v1891_v23 = vld [vmem:[%s2065_s7 + $0x3d0] ss:$8 sps:$4 sm:$0xff]  }
  0x68   : > { %1162 = vmatpush2.bf16.msra.mxu0 %v1820_v25  ;;  %v1896_v25 = vld [vmem:[%s2065_s7 + $0x2c4] ss:$8 sps:$4 sm:$0xff]  }
  0x69   : > { %1215 = vmatpush2.bf16.msra.mxu1 %v1821_v26  ;;  %1163 = vmatprep.subr.bf16.mxu0 %v1822_v27  ;;  %v1899_v26 = vld [vmem:[%s2065_s7 + $0x3c4] ss:$8 sps:$4 sm:$0xff]   ;;  %v1894_v27 = vld [vmem:[%s2065_s7 + $0x2c0] ss:$8 sps:$4 sm:$0xff]  }
  0x6a   : > { %1216 = vmatprep.subr.bf16.mxu1 %v1824_v28  ;;  %v1897_v28 = vld [vmem:[%s2065_s7 + $0x3c0] ss:$8 sps:$4 sm:$0xff]  }
  0x6c   : > { %1164 = vmatpush2.bf16.msra.mxu0 %v1826_v29  ;;  %v1902_v29 = vld [vmem:[%s2065_s7 + $0x2b4] ss:$8 sps:$4 sm:$0xff]  }
  0x6d   : > { %1217 = vmatpush2.bf16.msra.mxu1 %v1827_v30  ;;  %1239 = vmatprep.subr.bf16.mxu0 %v1830_v31  ;;  %v1905_v30 = vld [vmem:[%s2065_s7 + $0x3b4] ss:$8 sps:$4 sm:$0xff]   ;;  %v1900_v31 = vld [vmem:[%s2065_s7 + $0x2b0] ss:$8 sps:$4 sm:$0xff]  }
  0x6e   : > { %1292 = vmatprep.subr.bf16.mxu1 %v1833_v32  ;;  %v1903_v32 = vld [vmem:[%s2065_s7 + $0x3b0] ss:$8 sps:$4 sm:$0xff]  }
  0x6f   : > { %1166 = vmatmul.mubr.bf16.vlgmr.msra.gmra.mxu0 %v1532_v20  ;;  %v1540_v20 = vcombine.low %v272_v33, %v276_v34  ;;  %v1908_v33 = vld [vmem:[%s2065_s7 + $0x2a4] ss:$8 sps:$4 sm:$0xff]  }
  0x70   : > { %1219 = vmatmul.mubr.bf16.vlgmr.msra.gmra.mxu1 %v1534_v24  ;;  %1240 = vmatpush1.bf16.msra.mxu0 %v1828_v35  ;;  %v1846_v24 = vld [vmem:[%s2065_s7 + $0x240] ss:$8 sps:$4 sm:$0xff]   ;;  %v1911_v34 = vld [vmem:[%s2065_s7 + $0x3a4] ss:$8 sps:$4 sm:$0xff]  }
  0x71   : > { %1293 = vmatpush1.bf16.msra.mxu1 %v1831_v36  ;;  %1241 = vmatprep.subr.bf16.mxu0 %v1836_v37  ;;  %v1906_v35 = vld [vmem:[%s2065_s7 + $0x2a0] ss:$8 sps:$4 sm:$0xff]   ;;  %v1914_v37 = vld [vmem:[%s2065_s7 + $0x294] ss:$8 sps:$4 sm:$0xff]  }
  0x72   : > { %1294 = vmatprep.subr.bf16.mxu1 %v1839_v38  ;;  %1175 = vmatprep.mubr.bf16.mxu0 %v1541_v39  ;;  %v1909_v36 = vld [vmem:[%s2065_s7 + $0x3a0] ss:$8 sps:$4 sm:$0xff]   ;;  %v1917_v38 = vld [vmem:[%s2065_s7 + $0x394] ss:$8 sps:$4 sm:$0xff]   ;;  %v1912_v39 = vld [vmem:[%s2065_s7 + $0x290] ss:$8 sps:$4 sm:$0xff]  }
  0x73   : > { %1228 = vmatprep.mubr.bf16.mxu1 %v1543_v49 }
  0x74   : > { %1242 = vmatpush1.bf16.msra.mxu0 %v1834_v40  ;;  %v1915_v40 = vld [vmem:[%s2065_s7 + $0x390] ss:$8 sps:$4 sm:$0xff]  }
  0x75   : > { %1295 = vmatpush1.bf16.msra.mxu1 %v1837_v41  ;;  %1243 = vmatprep.subr.bf16.mxu0 %v1842_v42  ;;  %v1920_v41 = vld [vmem:[%s2065_s7 + $0x284] ss:$8 sps:$4 sm:$0xff]  }
  0x76   : > { %1296 = vmatprep.subr.bf16.mxu1 %v1845_v43  ;;  %v1923_v42 = vld [vmem:[%s2065_s7 + $0x384] ss:$8 sps:$4 sm:$0xff]   ;;  %v1918_v43 = vld [vmem:[%s2065_s7 + $0x280] ss:$8 sps:$4 sm:$0xff]  }
  0x77   : > { %1176 = vmatmul.mubr.bf16.gmra.mxu0 %v1540_v20  ;;  %v278_v20 = vld [vmem:[%s2049_s30 + $0x70] sm:$0xff] }
  0x78   : > { %1244 = vmatpush1.bf16.msra.mxu0 %v1840_v17  ;;  %1229 = vmatmul.mubr.bf16.gmra.mxu1 %v1542_v50  ;;  %v1921_v17 = vld [vmem:[%s2065_s7 + $0x380] ss:$8 sps:$4 sm:$0xff]  }
  0x79   : > { %1297 = vmatpush1.bf16.msra.mxu1 %v1843_v18  ;;  %1245 = vmatprep.subr.bf16.mxu0 %v1848_v19  ;;  %v274_v18 = vld [vmem:[%s2049_s30 + $0x50] sm:$0xff]  ;;  %v275_v19 = vld [vmem:[%s2049_s30 + $0x58] sm:$0xff] }
  0x7a   : > { %1298 = vmatprep.subr.bf16.mxu1 %v1851_v22  ;;  %1271 = vmatprep.mubr.bf16.mxu0 %v1537_v62  ;;  %v279_v22 = vld [vmem:[%s2049_s30 + $0x78] sm:$0xff]  ;;  %v1544_v47 = vcombine.low %v274_v18, %v278_v20 }
  0x7b   : > { %1324 = vmatprep.mubr.bf16.mxu1 %v1539_v2  ;;  %v1546_v48 = vcombine.low %v275_v19, %v279_v22 }
  0x7c   : > { %1246 = vmatpush1.bf16.msra.mxu0 %v1846_v24  ;;  %v1536_v24 = vcombine.low %v2179_v59, %v2182_v60 }
  0x7d   : > { %1299 = vmatpush1.bf16.msra.mxu1 %v1849_v44  ;;  %1247 = vmatprep.subr.bf16.mxu0 %v1854_v45  ;;  %v1538_v44 = vcombine.low %v2185_v61, %v2190_v63  ;;  %v1545_v45 = vcombine.high %v274_v18, %v278_v20  ;;  %v261_v20 = vld [vmem:[#allocation2 + $0x20] sm:$0xff] }
  0x7e   : > { %1300 = vmatprep.subr.bf16.mxu1 %v1857_v46  ;;  %v1547_v46 = vcombine.high %v275_v19, %v279_v22 }
  0x80   : > { %1248 = vmatpush1.bf16.msra.mxu0 %v1852_v51 }
  0x81   : > { %1301 = vmatpush1.bf16.msra.mxu1 %v1855_v52  ;;  %1249 = vmatprep.subr.bf16.mxu0 %v1860_v53 }
  0x82   : > { %1302 = vmatprep.subr.bf16.mxu1 %v1863_v54 }
  0x84   : > { %1250 = vmatpush1.bf16.msra.mxu0 %v1858_v55 }
  0x85   : > { %1303 = vmatpush1.bf16.msra.mxu1 %v1861_v56  ;;  %1251 = vmatprep.subr.bf16.mxu0 %v1866_v57 }
  0x86   : > { %1304 = vmatprep.subr.bf16.mxu1 %v1869_v58 }
  0x88   : > { %1252 = vmatpush1.bf16.msra.mxu0 %v1864_v0 }
  0x89   : > { %1305 = vmatpush1.bf16.msra.mxu1 %v1867_v1  ;;  %1253 = vmatprep.subr.bf16.mxu0 %v1872_v3 }
  0x8a   : > { %1306 = vmatprep.subr.bf16.mxu1 %v1875_v4 }
  0x8c   : > { %1254 = vmatpush1.bf16.msra.mxu0 %v1870_v5 }
  0x8d   : > { %1307 = vmatpush1.bf16.msra.mxu1 %v1873_v6  ;;  %1255 = vmatprep.subr.bf16.mxu0 %v1878_v7  ;;  %v256_v6 = vld [vmem:[#allocation2 + $0x30] sm:$0xff] }
  0x8e   : > { %1308 = vmatprep.subr.bf16.mxu1 %v1881_v8 }
  0x90   : > { %1256 = vmatpush2.bf16.msra.mxu0 %v1876_v9 }
  0x91   : > { %1309 = vmatpush2.bf16.msra.mxu1 %v1879_v10  ;;  %1257 = vmatprep.subr.bf16.mxu0 %v1884_v11 }
  0x92   : > { %1310 = vmatprep.subr.bf16.mxu1 %v1887_v12  ;;  %v257_v12 = vld [vmem:[#allocation2] sm:$0xff] }
  0x94   : > { %1258 = vmatpush2.bf16.msra.mxu0 %v1882_v13 }
  0x95   : > { %1311 = vmatpush2.bf16.msra.mxu1 %v1885_v14  ;;  %1259 = vmatprep.subr.bf16.mxu0 %v1890_v15 }
  0x96   : > { %1312 = vmatprep.subr.bf16.mxu1 %v1893_v16 }
  0x98   : > { %1260 = vmatpush2.bf16.msra.mxu0 %v1888_v21 }
  0x99   : > { %1313 = vmatpush2.bf16.msra.mxu1 %v1891_v23  ;;  %1261 = vmatprep.subr.bf16.mxu0 %v1896_v25  ;;  %v258_v25 = vld [vmem:[#allocation2 + $0x18] sm:$0xff] }
  0x9a   : > { %1314 = vmatprep.subr.bf16.mxu1 %v1899_v26 }
  0x9c   : > { %1262 = vmatpush2.bf16.msra.mxu0 %v1894_v27 }
  0x9d   : > { %1315 = vmatpush2.bf16.msra.mxu1 %v1897_v28  ;;  %1263 = vmatprep.subr.bf16.mxu0 %v1902_v29 }
  0x9e   : > { %1316 = vmatprep.subr.bf16.mxu1 %v1905_v30 }
  0xa0   : > { %1264 = vmatpush2.bf16.msra.mxu0 %v1900_v31 }
  0xa1   : > { %1317 = vmatpush2.bf16.msra.mxu1 %v1903_v32  ;;  %1265 = vmatprep.subr.bf16.mxu0 %v1908_v33  ;;  %v259_v32 = vld [vmem:[#allocation2 + $0x10] sm:$0xff] }
  0xa2   : > { %1318 = vmatprep.subr.bf16.mxu1 %v1911_v34 }
  0xa4   : > { %1266 = vmatpush2.bf16.msra.mxu0 %v1906_v35 }
  0xa5   : > { %1319 = vmatpush2.bf16.msra.mxu1 %v1909_v36  ;;  %1267 = vmatprep.subr.bf16.mxu0 %v1914_v37 }
  0xa6   : > { %1320 = vmatprep.subr.bf16.mxu1 %v1917_v38 }
  0xa8   : > { %1268 = vmatpush2.bf16.msra.mxu0 %v1912_v39  ;;  %v260_v39 = vld [vmem:[#allocation2 + $0x8] sm:$0xff] }
  0xa9   : > { %1321 = vmatpush2.bf16.msra.mxu1 %v1915_v40  ;;  %1269 = vmatprep.subr.bf16.mxu0 %v1920_v41 }
  0xaa   : > { %1322 = vmatprep.subr.bf16.mxu1 %v1923_v42 }
  0xac   : > { %1270 = vmatpush2.bf16.msra.mxu0 %v1918_v43 }
  0xad   : > { %1323 = vmatpush2.bf16.msra.mxu1 %v1921_v17 }
  0xaf   : > { %1272 = vmatmul.mubr.bf16.vlgmr.msra.gmra.mxu0 %v1536_v24 }
  0xb0   : > { %1325 = vmatmul.mubr.bf16.vlgmr.msra.gmra.mxu1 %v1538_v44  ;;  %1281 = vmatprep.mubr.bf16.mxu0 %v1545_v45 }
  0xb1   : > { %1334 = vmatprep.mubr.bf16.mxu1 %v1547_v46 }
  0xb7   : > { %1282 = vmatmul.mubr.bf16.gmra.mxu0 %v1544_v47  ;;  %v262_v47 = vld [vmem:[#allocation2 + $0x28] sm:$0xff] }
  0xb8   : > { %1335 = vmatmul.mubr.bf16.gmra.mxu1 %v1546_v48 }
 0x12f   : > { %v1167_v49 = vpop.f32.mrf.mxu0 }
 0x130   : > { %v1220_v50 = vpop.f32.mrf.mxu1 }
 0x131   : > { %v1169_v51 = vpop.f32.mrf.mxu0  ;;  %v1221_v1 = vadd.f32 %v1220_v50, %v1167_v49 }
 0x132   : > { %v1222_v52 = vpop.f32.mrf.mxu1 }
 0x133   : > { %v1171_v53 = vpop.f32.mrf.mxu0  ;;  %v1223_v4 = vadd.f32 %v1222_v52, %v1169_v51  ;;  %v263_v52 = vld [vmem:[#allocation2 + $0x38] sm:$0xff] }
 0x134   : > { %v1224_v54 = vpop.f32.mrf.mxu1 }
 0x135   : > { %v1173_v55 = vpop.f32.mrf.mxu0  ;;  %v1225_v9 = vadd.f32 %v1224_v54, %v1171_v53 }
 0x136   : > { %v1226_v56 = vpop.f32.mrf.mxu1 }
 0x137   : > { %v1177_v57 = vpop.f32.mrf.mxu0  ;;  %v1227_v15 = vadd.f32 %v1226_v56, %v1173_v55 }
 0x138   : > { %v1230_v58 = vpop.f32.mrf.mxu1 }
 0x139   : > { %v1179_v59 = vpop.f32.mrf.mxu0  ;;  %v1231_v28 = vadd.f32 %v1230_v58, %v1177_v57 }
 0x13a   : > { %v1232_v60 = vpop.f32.mrf.mxu1 }
 0x13b   : > { %v1181_v61 = vpop.f32.mrf.mxu0  ;;  %v1233_v35 = vadd.f32 %v1232_v60, %v1179_v59 }
 0x13c   : > { %v1234_v62 = vpop.f32.mrf.mxu1 }
 0x13d   : > { %v1183_v63 = vpop.f32.mrf.mxu0  ;;  %v1235_v42 = vadd.f32 %v1234_v62, %v1181_v61 }
 0x13e   : > { %v1236_v0 = vpop.f32.mrf.mxu1 }
 0x13f   : > { %v1237_v24 = vadd.f32 %v1236_v0, %v1183_v63 }
 0x16f   : > { %v1273_v2 = vpop.f32.mrf.mxu0 }
 0x170   : > { %v1326_v3 = vpop.f32.mrf.mxu1  ;;  %v1274_v5 = vadd.f32 %v1273_v2, %v1221_v1 }
 0x171   : > { %v1275_v7 = vpop.f32.mrf.mxu0 }
 0x172   : > { %v1328_v8 = vpop.f32.mrf.mxu1  ;;  %v1327_v10 = vadd.f32 %v1326_v3, %v1274_v5  ;;  %v1276_v11 = vadd.f32 %v1275_v7, %v1223_v4 }
 0x173   : > { %v1277_v13 = vpop.f32.mrf.mxu0 }
 0x174   : > { %v1330_v14 = vpop.f32.mrf.mxu1  ;;  %v1345_v16 = vadd.f32 %v1327_v10, %v256_v6  ;;  %v1329_v21 = vadd.f32 %v1328_v8, %v1276_v11  ;;  %v1278_v23 = vadd.f32 %v1277_v13, %v1225_v9 }
 0x175   : > { %v1279_v26 = vpop.f32.mrf.mxu0 }
 0x176   : > { %v1332_v27 = vpop.f32.mrf.mxu1  ;;  %1353 = vst [vmem:[#allocation2 + $0x30] sm:$0xff] %v1345_v16  ;;  %v1346_v29 = vadd.f32 %v1329_v21, %v257_v12  ;;  %v1331_v30 = vadd.f32 %v1330_v14, %v1278_v23  ;;  %v1280_v31 = vadd.f32 %v1279_v26, %v1227_v15 }
 0x177   : > { %v1283_v33 = vpop.f32.mrf.mxu0 }
 0x178   : > { %v1336_v34 = vpop.f32.mrf.mxu1  ;;  %1354 = vst [vmem:[#allocation2] sm:$0xff] %v1346_v29  ;;  %v1347_v36 = vadd.f32 %v1331_v30, %v258_v25  ;;  %v1333_v37 = vadd.f32 %v1332_v27, %v1280_v31  ;;  %v1284_v38 = vadd.f32 %v1283_v33, %v1231_v28 }
 0x179   : > { %v1285_v40 = vpop.f32.mrf.mxu0 }
 0x17a   : > { %v1338_v41 = vpop.f32.mrf.mxu1  ;;  %1355 = vst [vmem:[#allocation2 + $0x18] sm:$0xff] %v1347_v36  ;;  %v1348_v43 = vadd.f32 %v1333_v37, %v259_v32  ;;  %v1337_v17 = vadd.f32 %v1336_v34, %v1284_v38  ;;  %v1286_v18 = vadd.f32 %v1285_v40, %v1233_v35 }
 0x17b   : > { %v1287_v19 = vpop.f32.mrf.mxu0 }
 0x17c   : > { %v1340_v22 = vpop.f32.mrf.mxu1  ;;  %1356 = vst [vmem:[#allocation2 + $0x10] sm:$0xff] %v1348_v43  ;;  %v1349_v44 = vadd.f32 %v1337_v17, %v260_v39  ;;  %v1339_v45 = vadd.f32 %v1338_v41, %v1286_v18  ;;  %v1288_v46 = vadd.f32 %v1287_v19, %v1235_v42 }
 0x17d   : > { %v1289_v48 = vpop.f32.mrf.mxu0 }
 0x17e   : > { %1357 = vst [vmem:[#allocation2 + $0x8] sm:$0xff] %v1349_v44  ;;  %v1350_v49 = vadd.f32 %v1339_v45, %v261_v20  ;;  %v1341_v50 = vadd.f32 %v1340_v22, %v1288_v46  ;;  %v1290_v51 = vadd.f32 %v1289_v48, %v1237_v24  ;;  %v1342_v53 = vpop.f32.mrf.mxu1 }
 0x180   : > { %1358 = vst [vmem:[#allocation2 + $0x20] sm:$0xff] %v1350_v49  ;;  %v1351_v54 = vadd.f32 %v1341_v50, %v262_v47  ;;  %v1343_v55 = vadd.f32 %v1342_v53, %v1290_v51  ;;  %1364 = sbr.rel (%p1676_p10) target bundleno = 410 (0x19a), region = 63 }
 0x182   : > { %1359 = vst [vmem:[#allocation2 + $0x28] sm:$0xff] %v1351_v54  ;;  %v1352_v56 = vadd.f32 %v1343_v55, %v263_v52 }
 0x184   : > { %1360 = vst [vmem:[#allocation2 + $0x38] sm:$0xff] %v1352_v56 }
 0x185   : > { %v1375_v57 = vlaneseq  ;;  %v1373_v59 = vld [vmem:[%s2273_s2] sm:$0x3]  ;;  %v1365_v60 = vld [vmem:[#allocation2 + $0x30] sm:$0xff]  ;;  %v1367_v0 = vld [vmem:[#allocation2 + $0x18] sm:$0xff] }
 0x186   : > { %v1366_v61 = vld [vmem:[#allocation2] sm:$0xff]  ;;  %v1368_v1 = vld [vmem:[#allocation2 + $0x10] sm:$0xff]  ;;  %v1369_v2 = vld [vmem:[#allocation2 + $0x8] sm:$0xff] }
 0x187   : > { %v1376_v58 = vshrl.u32 %v1375_v57, 7  ;;  %v1370_v5 = vld [vmem:[#allocation2 + $0x20] sm:$0xff] }
 0x189   : > { %v1377_v62 = vsub.s32 0, %v1376_v58  ;;  %v1381_v63 = vsub.s32 1, %v1376_v58  ;;  %v1371_v6 = vld [vmem:[#allocation2 + $0x28] sm:$0xff] }
 0x18b   : > { %v1378_v3 = vrot.slane %v1373_v59, %v1377_v62  ;;  %v1382_v4 = vrot.slane %v1373_v59, %v1381_v63  ;;  %v1372_v7 = vld [vmem:[#allocation2 + $0x38] sm:$0xff] }
 0x18d   : > { %v1385_v8 = vadd.f32 %v1378_v3, %v1365_v60  ;;  %v1386_v9 = vadd.f32 %v1382_v4, %v1366_v61  ;;  %v1387_v10 = vadd.f32 %v1378_v3, %v1367_v0  ;;  %v1388_v11 = vadd.f32 %v1382_v4, %v1368_v1 }
 0x18e   : > { %v1389_v12 = vadd.f32 %v1378_v3, %v1369_v2  ;;  %v1390_v13 = vadd.f32 %v1382_v4, %v1370_v5  ;;  %v1391_v14 = vadd.f32 %v1378_v3, %v1371_v6  ;;  %v1392_v15 = vadd.f32 %v1382_v4, %v1372_v7 }
 0x18f   : > { %vm1393_vm0 = vcmp.ge.f32.partialorder %v1385_v8, 0.0  ;;  %vm1394_vm1 = vcmp.ge.f32.partialorder %v1386_v9, 0.0  ;;  %v1401_v16 = vmul.f32 0.2, %v1385_v8  ;;  %v1402_v21 = vmul.f32 0.2, %v1386_v9 }
 0x190   : > { %vm1395_vm2 = vcmp.ge.f32.partialorder %v1387_v10, 0.0  ;;  %vm1396_vm3 = vcmp.ge.f32.partialorder %v1388_v11, 0.0  ;;  %v1403_v23 = vmul.f32 0.2, %v1387_v10  ;;  %v1404_v25 = vmul.f32 0.2, %v1388_v11 }
 0x191   : > { %v1409_v26 = vsel %vm1393_vm0, %v1385_v8, %v1401_v16  ;;  %v1410_v27 = vsel %vm1394_vm1, %v1386_v9, %v1402_v21  ;;  %vm1397_vm4 = vcmp.ge.f32.partialorder %v1389_v12, 0.0  ;;  %vm1398_vm5 = vcmp.ge.f32.partialorder %v1390_v13, 0.0 }
 0x192   : > { %v1687_v28 = vpack.c.bf16 %v1410_v27, %v1409_v26  ;;  %v1411_v29 = vsel %vm1395_vm2, %v1387_v10, %v1403_v23  ;;  %v1412_v30 = vsel %vm1396_vm3, %v1388_v11, %v1404_v25  ;;  %v1405_v31 = vmul.f32 0.2, %v1389_v12 }
 0x193   : > { %v1688_v32 = vpack.c.bf16 %v1412_v30, %v1411_v29  ;;  %v1406_v33 = vmul.f32 0.2, %v1390_v13  ;;  %vm1399_vm6 = vcmp.ge.f32.partialorder %v1391_v14, 0.0  ;;  %vm1400_vm7 = vcmp.ge.f32.partialorder %v1392_v15, 0.0 }
 0x194   : > { %1441 = vst [vmem:[%s2274_s3] sm:$0xff] %v1687_v28  ;;  %v1413_v34 = vsel %vm1397_vm4, %v1389_v12, %v1405_v31  ;;  %v1407_v35 = vmul.f32 0.2, %v1391_v14  ;;  %v1408_v36 = vmul.f32 0.2, %v1392_v15 }
 0x195   : > { %1442 = vst [vmem:[%s2274_s3 + $0x8] sm:$0xff] %v1688_v32  ;;  %v1414_v37 = vsel %vm1398_vm5, %v1390_v13, %v1406_v33 }
 0x196   : > { %v1689_v38 = vpack.c.bf16 %v1414_v37, %v1413_v34  ;;  %v1415_v39 = vsel %vm1399_vm6, %v1391_v14, %v1407_v35  ;;  %v1416_v40 = vsel %vm1400_vm7, %v1392_v15, %v1408_v36 }
 0x197   : > { %v1690_v41 = vpack.c.bf16 %v1416_v40, %v1415_v39 }
 0x198   : > { %1443 = vst [vmem:[%s2274_s3 + $0x10] sm:$0xff] %v1689_v38 }
 0x199   : > { %1444 = vst [vmem:[%s2274_s3 + $0x18] sm:$0xff] %v1690_v41 }
 0x19a PF: > { %s13_s16 = sadd.s32 1, %s1962_s16   ;;  %s2275_s12 = smov %s1950_s13 }
 0x19b   : > { %p10_p11 = scmp.ge.s32.totalorder %s13_s16, 4   ;;  %s2276_s13 = smov %s2020_s20 }
 0x19c   : > { %s2277_s14 = smov %s1958_s15  ;;  %s2278_s15 = smov %s2280_s17 }
 0x19d   :  { %12 = sbr.rel (!%p10_p11) target bundleno = 3 (0x3), region = 99 }

// kernel: discriminator_forward.8
= control target key start
LH: loop header
LB: loop body
LE: loop exit
PB: predicated region body
PF: predicated region fallthrough
CT: control target
= control target key end

     0   :  { %s3143_s12 = smov 0   ;;  %s3145_s13 = smov 0   ;;  %s3541_s0 = inlined_call_operand.vmem [shape: bf16[16,4096], index: 0, kind: input, shape index: {}]   ;;  %s3542_s1 = inlined_call_operand.vmem [shape: bf16[4096,512], index: 1, kind: input, shape index: {}]   ;;  %s3543_s2 = inlined_call_operand.vmem [shape: f32[1,512], index: 2, kind: input, shape index: {}]   ;;  %s3544_s3 = inlined_call_operand.vmem [shape: bf16[16,512], index: 3, kind: output, shape index: {}]  }
   0x1   :  { %s3147_s14 = smov 0   ;;  %s3149_s15 = smov 0  }
   0x2   :  { %s3151_s16 = smov 0  }
   0x3 LB: > { %s22_s17 = sadd.s32 1, %s3116_s15  ;;  %p41_p1 = scmp.ne.s32.totalorder %s3108_s13, %s3104_s12  ;;  %s3120_s16 = sphi %s3151_s16, %s13_s16   ;;  %s3116_s15 = sphi %s3149_s15, %s3548_s15   ;;  %s3112_s14 = sphi %s3147_s14, %s3547_s14   ;;  %s3108_s13 = sphi %s3145_s13, %s3546_s13   ;;  %s3104_s12 = sphi %s3143_s12, %s3545_s12  }
   0x4   : > { %p23_p0 = scmp.ge.s32.totalorder %s22_s17, 4  ;;  %p42_p2 = scmp.eq.s32.totalorder %s3120_s16, 0 }
   0x5   : > { %s34_s19 = sadd.s32 1, %s3108_s13  ;;  %p2368_p5 = scmp.ge.s32.totalorder %s3120_s16, 4 }
   0x6   : > { %s3550_s17 = smov (%p23_p0, %s22_s17), 0  ;;  %p43_p3 = por %p42_p2, %p41_p1 }
   0x7   : > { %s30_s18 = ssub.s32 %s3116_s15, %s3550_s17  ;;  %141 = sbr.rel (%p2368_p5) target bundleno = 20 (0x14), region = 24 }
   0x8   : > { %p32_p4 = scmp.eq.s32.totalorder %s30_s18, 0 }
   0xa   : > { %s3178_s20 = scalar_select %p32_p4, %s3108_s13, %s34_s19  }
   0xc   : > { %144 = sbr.rel (!%p43_p3) target bundleno = 20 (0x14), region = 28  ;;  %s146_s21 = sand.u32 (%p43_p3), 1, %s3108_s13  }
   0xd   : > { %s2651_s22 = sshll.u32 (%p43_p3), %s3116_s15, 5  ;;  %s2369_s23 = sshll.u32 (%p43_p3), %s146_s21, 6 }
   0xe   : > { %s154_s26 = scalar_lea.vmem (%p43_p3), %s3541_s0, %s2651_s22  ;;  %s148_s27 = scalar_lea.vmem (%p43_p3), [#allocation3], %s2369_s23 }
   0xf   : > { %v167_v0 = vld [vmem:[%s154_s26] sm:$0xff] (%p43_p3)  ;;  %v169_v1 = vld [vmem:[%s154_s26 + $0x8] sm:$0xff] (%p43_p3)  ;;  %v171_v2 = vld [vmem:[%s154_s26 + $0x10] sm:$0xff] (%p43_p3) }
  0x10   : > { %168 = vst [vmem:[%s148_s27] sm:$0xff] (%p43_p3), %v167_v0  ;;  %170 = vst [vmem:[%s148_s27 + $0x8] sm:$0xff] (%p43_p3), %v169_v1  ;;  %v173_v3 = vld [vmem:[%s154_s26 + $0x18] sm:$0xff] (%p43_p3)  ;;  %v175_v4 = vld [vmem:[%s154_s26 + $0x80] sm:$0xff] (%p43_p3) }
  0x11   : > { %172 = vst [vmem:[%s148_s27 + $0x10] sm:$0xff] %v171_v2  ;;  %v177_v5 = vld [vmem:[%s154_s26 + $0x88] sm:$0xff]  ;;  %174 = vst [vmem:[%s148_s27 + $0x18] sm:$0xff] %v173_v3  ;;  %v179_v6 = vld [vmem:[%s154_s26 + $0x90] sm:$0xff] }
  0x12   : > { %176 = vst [vmem:[%s148_s27 + $0x20] sm:$0xff] %v175_v4  ;;  %178 = vst [vmem:[%s148_s27 + $0x28] sm:$0xff] %v177_v5  ;;  %v181_v7 = vld [vmem:[%s154_s26 + $0x98] sm:$0xff] }
  0x13   : > { %180 = vst [vmem:[%s148_s27 + $0x30] sm:$0xff] %v179_v6  ;;  %182 = vst [vmem:[%s148_s27 + $0x38] sm:$0xff] %v181_v7 }
  0x14 PF: > { %p2372_p6 = scmp.ge.s32.totalorder %s3120_s16, 1  ;;  %p187_p7 = scmp.lt.s32.totalorder %s3120_s16, 5 }
  0x16   : > { %p188_p8 = pnand %p2372_p6, %p187_p7 }
  0x17   : > { %s194_s28 = sand.u32 (!%p188_p8), 1, %s3104_s12   ;;  %p2374_p9 = scmp.ne.s32.totalorder (!%p188_p8), %s3112_s14, 0 }
  0x18   : > { %191 = sbr.rel (%p188_p8) target bundleno = 527 (0x20f), region = 51  ;;  %s2373_s29 = sshll.u32 (!%p188_p8), %s194_s28, 6 }
  0x19   : > { %s3189_s30 = scalar_lea.vmem (!%p188_p8), [#allocation3], %s2373_s29 }
  0x1d   : > { %230 = sbr.rel (%p2374_p9) target bundleno = 39 (0x27), region = 59 }
  0x22   : > { %v3122_v8 = vmov 0.0  }
  0x23   : > { %231 = vst [vmem:[#allocation2 + $0x30] sm:$0xff] %v3122_v8  ;;  %232 = vst [vmem:[#allocation2] sm:$0xff] %v3122_v8 }
  0x24   : > { %233 = vst [vmem:[#allocation2 + $0x18] sm:$0xff] %v3122_v8  ;;  %234 = vst [vmem:[#allocation2 + $0x10] sm:$0xff] %v3122_v8 }
  0x25   : > { %235 = vst [vmem:[#allocation2 + $0x8] sm:$0xff] %v3122_v8  ;;  %236 = vst [vmem:[#allocation2 + $0x20] sm:$0xff] %v3122_v8 }
  0x26   : > { %237 = vst [vmem:[#allocation2 + $0x28] sm:$0xff] %v3122_v8  ;;  %238 = vst [vmem:[#allocation2 + $0x38] sm:$0xff] %v3122_v8 }
  0x27 PF: > { %s2375_s4 = sshll.u32 %s3112_s14, 10  ;;  %v248_v9 = vld [vmem:[%s3189_s30] sm:$0xff]  ;;  %v249_v11 = vld [vmem:[%s3189_s30 + $0x8] sm:$0xff]  ;;  %p2642_p10 = scmp.ne.s32.totalorder %s3112_s14, 3 }
  0x28   : > { %v252_v10 = vld [vmem:[%s3189_s30 + $0x20] sm:$0xff]  ;;  %s256_s5 = sshra.s32 %s2375_s4, 3  ;;  %v253_v14 = vld [vmem:[%s3189_s30 + $0x28] sm:$0xff] }
  0x29   : > { %v3196_v12 = vcombine.low %v248_v9, %v252_v10  ;;  %v3198_v13 = vcombine.high %v248_v9, %v252_v10  ;;  %s2652_s6 = sshll.u32 %s256_s5, 4  ;;  %v3201_v15 = vcombine.low %v249_v11, %v253_v14  ;;  %v3203_v16 = vcombine.high %v249_v11, %v253_v14 }
  0x2a   : > { %s3208_s9 = scalar_lea.vmem %s3542_s1, %s2652_s6 }
  0x2b   : > { %1869 = vmatprep.mubr.bf16.mxu0 %v3198_v13  ;;  %v2698_v17 = vld [vmem:[%s3208_s9 + $0xe4] ss:$16 sps:$4 sm:$0xff]   ;;  %1912 = vmatprep.mubr.bf16.mxu1 %v3203_v16  ;;  %v2702_v19 = vld [vmem:[%s3208_s9 + $0xe0] ss:$16 sps:$4 sm:$0xff]  }
  0x2c   : > { %v2700_v18 = vld [vmem:[%s3208_s9 + $0x2e4] ss:$16 sps:$4 sm:$0xff]   ;;  %1837 = vmatprep.subr.bf16.mxu0 %v2698_v17  ;;  %v2703_v20 = vld [vmem:[%s3208_s9 + $0x2e0] ss:$16 sps:$4 sm:$0xff]  }
  0x2d   : > { %1880 = vmatprep.subr.bf16.mxu1 %v2700_v18  ;;  %v2704_v21 = vld [vmem:[%s3208_s9 + $0xc4] ss:$16 sps:$4 sm:$0xff]   ;;  %1838 = vmatpush1.bf16.msra.mxu0 %v2702_v19  ;;  %v2708_v23 = vld [vmem:[%s3208_s9 + $0xc0] ss:$16 sps:$4 sm:$0xff]  }
  0x2e   : > { %1881 = vmatpush1.bf16.msra.mxu1 %v2703_v20  ;;  %v2706_v22 = vld [vmem:[%s3208_s9 + $0x2c4] ss:$16 sps:$4 sm:$0xff]   ;;  %1839 = vmatprep.subr.bf16.mxu0 %v2704_v21  ;;  %v2709_v24 = vld [vmem:[%s3208_s9 + $0x2c0] ss:$16 sps:$4 sm:$0xff]  }
  0x2f   : > { %1882 = vmatprep.subr.bf16.mxu1 %v2706_v22  ;;  %v2710_v25 = vld [vmem:[%s3208_s9 + $0xa4] ss:$16 sps:$4 sm:$0xff]   ;;  %v2714_v27 = vld [vmem:[%s3208_s9 + $0xa0] ss:$16 sps:$4 sm:$0xff]  }
  0x30   : > { %v2712_v26 = vld [vmem:[%s3208_s9 + $0x2a4] ss:$16 sps:$4 sm:$0xff]   ;;  %v2715_v28 = vld [vmem:[%s3208_s9 + $0x2a0] ss:$16 sps:$4 sm:$0xff]  }
  0x31   : > { %1840 = vmatpush1.bf16.msra.mxu0 %v2708_v23  ;;  %v2716_v29 = vld [vmem:[%s3208_s9 + $0x84] ss:$16 sps:$4 sm:$0xff]   ;;  %v2720_v31 = vld [vmem:[%s3208_s9 + $0x80] ss:$16 sps:$4 sm:$0xff]  }
  0x32   : > { %1883 = vmatpush1.bf16.msra.mxu1 %v2709_v24  ;;  %1841 = vmatprep.subr.bf16.mxu0 %v2710_v25  ;;  %v2718_v30 = vld [vmem:[%s3208_s9 + $0x284] ss:$16 sps:$4 sm:$0xff]   ;;  %v2721_v32 = vld [vmem:[%s3208_s9 + $0x280] ss:$16 sps:$4 sm:$0xff]  }
  0x33   : > { %1884 = vmatprep.subr.bf16.mxu1 %v2712_v26  ;;  %v2722_v33 = vld [vmem:[%s3208_s9 + $0x64] ss:$16 sps:$4 sm:$0xff]   ;;  %v2726_v35 = vld [vmem:[%s3208_s9 + $0x60] ss:$16 sps:$4 sm:$0xff]  }
  0x34   : > { %v2724_v34 = vld [vmem:[%s3208_s9 + $0x264] ss:$16 sps:$4 sm:$0xff]   ;;  %v2727_v36 = vld [vmem:[%s3208_s9 + $0x260] ss:$16 sps:$4 sm:$0xff]  }
  0x35   : > { %1842 = vmatpush1.bf16.msra.mxu0 %v2714_v27  ;;  %v2728_v37 = vld [vmem:[%s3208_s9 + $0x44] ss:$16 sps:$4 sm:$0xff]   ;;  %v2732_v39 = vld [vmem:[%s3208_s9 + $0x40] ss:$16 sps:$4 sm:$0xff]  }
  0x36   : > { %1885 = vmatpush1.bf16.msra.mxu1 %v2715_v28  ;;  %1843 = vmatprep.subr.bf16.mxu0 %v2716_v29  ;;  %v2730_v38 = vld [vmem:[%s3208_s9 + $0x244] ss:$16 sps:$4 sm:$0xff]   ;;  %v2733_v40 = vld [vmem:[%s3208_s9 + $0x240] ss:$16 sps:$4 sm:$0xff]  }
  0x37   : > { %1886 = vmatprep.subr.bf16.mxu1 %v2718_v30  ;;  %v2734_v41 = vld [vmem:[%s3208_s9 + $0x24] ss:$16 sps:$4 sm:$0xff]   ;;  %v2738_v43 = vld [vmem:[%s3208_s9 + $0x20] ss:$16 sps:$4 sm:$0xff]  }
  0x38   : > { %v2736_v42 = vld [vmem:[%s3208_s9 + $0x224] ss:$16 sps:$4 sm:$0xff]   ;;  %v2739_v44 = vld [vmem:[%s3208_s9 + $0x220] ss:$16 sps:$4 sm:$0xff]  }
  0x39   : > { %1844 = vmatpush1.bf16.msra.mxu0 %v2720_v31  ;;  %v2740_v45 = vld [vmem:[%s3208_s9 + $0x4] ss:$16 sps:$4 sm:$0xff]   ;;  %v2744_v47 = vld [vmem:[%s3208_s9] ss:$16 sps:$4 sm:$0xff]  }
  0x3a   : > { %1887 = vmatpush1.bf16.msra.mxu1 %v2721_v32  ;;  %1845 = vmatprep.subr.bf16.mxu0 %v2722_v33  ;;  %v2742_v46 = vld [vmem:[%s3208_s9 + $0x204] ss:$16 sps:$4 sm:$0xff]   ;;  %v2745_v48 = vld [vmem:[%s3208_s9 + $0x200] ss:$16 sps:$4 sm:$0xff]  }
  0x3b   : > { %1888 = vmatprep.subr.bf16.mxu1 %v2724_v34  ;;  %v2746_v49 = vld [vmem:[%s3208_s9 + $0x1e4] ss:$16 sps:$4 sm:$0xff]   ;;  %v2750_v51 = vld [vmem:[%s3208_s9 + $0x1e0] ss:$16 sps:$4 sm:$0xff]  }
  0x3c   : > { %v2748_v50 = vld [vmem:[%s3208_s9 + $0x3e4] ss:$16 sps:$4 sm:$0xff]   ;;  %v2751_v52 = vld [vmem:[%s3208_s9 + $0x3e0] ss:$16 sps:$4 sm:$0xff]  }
  0x3d   : > { %1846 = vmatpush1.bf16.msra.mxu0 %v2726_v35  ;;  %v2752_v53 = vld [vmem:[%s3208_s9 + $0x1c4] ss:$16 sps:$4 sm:$0xff]   ;;  %v2756_v55 = vld [vmem:[%s3208_s9 + $0x1c0] ss:$16 sps:$4 sm:$0xff]  }
  0x3e   : > { %1889 = vmatpush1.bf16.msra.mxu1 %v2727_v36  ;;  %1847 = vmatprep.subr.bf16.mxu0 %v2728_v37  ;;  %v2754_v54 = vld [vmem:[%s3208_s9 + $0x3c4] ss:$16 sps:$4 sm:$0xff]   ;;  %v2757_v56 = vld [vmem:[%s3208_s9 + $0x3c0] ss:$16 sps:$4 sm:$0xff]  }
  0x3f   : > { %1890 = vmatprep.subr.bf16.mxu1 %v2730_v38  ;;  %v2758_v57 = vld [vmem:[%s3208_s9 + $0x1a4] ss:$16 sps:$4 sm:$0xff]   ;;  %v2762_v59 = vld [vmem:[%s3208_s9 + $0x1a0] ss:$16 sps:$4 sm:$0xff]  }
  0x40   : > { %v2760_v58 = vld [vmem:[%s3208_s9 + $0x3a4] ss:$16 sps:$4 sm:$0xff]   ;;  %v2763_v60 = vld [vmem:[%s3208_s9 + $0x3a0] ss:$16 sps:$4 sm:$0xff]  }
  0x41   : > { %1848 = vmatpush1.bf16.msra.mxu0 %v2732_v39  ;;  %v2764_v61 = vld [vmem:[%s3208_s9 + $0x184] ss:$16 sps:$4 sm:$0xff]   ;;  %v2768_v63 = vld [vmem:[%s3208_s9 + $0x180] ss:$16 sps:$4 sm:$0xff]  }
  0x42   : > { %1891 = vmatpush1.bf16.msra.mxu1 %v2733_v40  ;;  %1849 = vmatprep.subr.bf16.mxu0 %v2734_v41  ;;  %v2766_v62 = vld [vmem:[%s3208_s9 + $0x384] ss:$16 sps:$4 sm:$0xff]   ;;  %v2769_v0 = vld [vmem:[%s3208_s9 + $0x380] ss:$16 sps:$4 sm:$0xff]  }
  0x43   : > { %1892 = vmatprep.subr.bf16.mxu1 %v2736_v42  ;;  %v2770_v1 = vld [vmem:[%s3208_s9 + $0x164] ss:$16 sps:$4 sm:$0xff]   ;;  %v2774_v3 = vld [vmem:[%s3208_s9 + $0x160] ss:$16 sps:$4 sm:$0xff]  }
  0x44   : > { %v2772_v2 = vld [vmem:[%s3208_s9 + $0x364] ss:$16 sps:$4 sm:$0xff]   ;;  %v2775_v4 = vld [vmem:[%s3208_s9 + $0x360] ss:$16 sps:$4 sm:$0xff]  }
  0x45   : > { %1850 = vmatpush1.bf16.msra.mxu0 %v2738_v43  ;;  %v2776_v5 = vld [vmem:[%s3208_s9 + $0x144] ss:$16 sps:$4 sm:$0xff]   ;;  %v2780_v7 = vld [vmem:[%s3208_s9 + $0x140] ss:$16 sps:$4 sm:$0xff]  }
  0x46   : > { %1893 = vmatpush1.bf16.msra.mxu1 %v2739_v44  ;;  %1851 = vmatprep.subr.bf16.mxu0 %v2740_v45  ;;  %v2778_v6 = vld [vmem:[%s3208_s9 + $0x344] ss:$16 sps:$4 sm:$0xff]   ;;  %v2781_v8 = vld [vmem:[%s3208_s9 + $0x340] ss:$16 sps:$4 sm:$0xff]  }
  0x47   : > { %1894 = vmatprep.subr.bf16.mxu1 %v2742_v46  ;;  %v2782_v9 = vld [vmem:[%s3208_s9 + $0x124] ss:$16 sps:$4 sm:$0xff]   ;;  %v2786_v11 = vld [vmem:[%s3208_s9 + $0x120] ss:$16 sps:$4 sm:$0xff]   ;;  %v3312_v46 = vld [vmem:[%s3189_s30 + $0x18] sm:$0xff] }
  0x48   : > { %v2784_v10 = vld [vmem:[%s3208_s9 + $0x324] ss:$16 sps:$4 sm:$0xff]   ;;  %v2787_v14 = vld [vmem:[%s3208_s9 + $0x320] ss:$16 sps:$4 sm:$0xff]  }
  0x49   : > { %1852 = vmatpush1.bf16.msra.mxu0 %v2744_v47  ;;  %v2788_v17 = vld [vmem:[%s3208_s9 + $0x104] ss:$16 sps:$4 sm:$0xff]   ;;  %v2792_v19 = vld [vmem:[%s3208_s9 + $0x100] ss:$16 sps:$4 sm:$0xff]  }
  0x4a   : > { %1895 = vmatpush1.bf16.msra.mxu1 %v2745_v48  ;;  %1853 = vmatprep.subr.bf16.mxu0 %v2746_v49  ;;  %v2790_v18 = vld [vmem:[%s3208_s9 + $0x304] ss:$16 sps:$4 sm:$0xff]   ;;  %v2793_v20 = vld [vmem:[%s3208_s9 + $0x300] ss:$16 sps:$4 sm:$0xff]  }
  0x4b   : > { %1896 = vmatprep.subr.bf16.mxu1 %v2748_v50  ;;  %v2796_v21 = vld [vmem:[%s3208_s9 + $0x4e4] ss:$16 sps:$4 sm:$0xff]   ;;  %v2794_v25 = vld [vmem:[%s3208_s9 + $0x4e0] ss:$16 sps:$4 sm:$0xff]  }
  0x4c   : > { %v2799_v22 = vld [vmem:[%s3208_s9 + $0x6e4] ss:$16 sps:$4 sm:$0xff]   ;;  %v2797_v26 = vld [vmem:[%s3208_s9 + $0x6e0] ss:$16 sps:$4 sm:$0xff]  }
  0x4d   : > { %1854 = vmatpush2.bf16.msra.mxu0 %v2750_v51  ;;  %v3279_v23 = vld [vmem:[%s3189_s30 + $0x10] sm:$0xff]  ;;  %v3319_v51 = vld [vmem:[%s3189_s30 + $0x38] sm:$0xff] }
  0x4e   : > { %1897 = vmatpush2.bf16.msra.mxu1 %v2751_v52  ;;  %1855 = vmatprep.subr.bf16.mxu0 %v2752_v53  ;;  %v3282_v24 = vld [vmem:[%s3189_s30 + $0x30] sm:$0xff]  ;;  %v3323_v52 = vcombine.high %v3312_v46, %v3319_v51 }
  0x4f   : > { %1898 = vmatprep.subr.bf16.mxu1 %v2754_v54  ;;  %v2802_v27 = vld [vmem:[%s3208_s9 + $0x4c4] ss:$16 sps:$4 sm:$0xff]   ;;  %v3290_v29 = vcombine.high %v3279_v23, %v3282_v24  ;;  %v2800_v30 = vld [vmem:[%s3208_s9 + $0x4c0] ss:$16 sps:$4 sm:$0xff]  }
  0x50   : > { %v2805_v28 = vld [vmem:[%s3208_s9 + $0x6c4] ss:$16 sps:$4 sm:$0xff]   ;;  %v2803_v31 = vld [vmem:[%s3208_s9 + $0x6c0] ss:$16 sps:$4 sm:$0xff]  }
  0x51   : > { %1856 = vmatpush2.bf16.msra.mxu0 %v2756_v55  ;;  %v2808_v32 = vld [vmem:[%s3208_s9 + $0x4a4] ss:$16 sps:$4 sm:$0xff]   ;;  %v2806_v34 = vld [vmem:[%s3208_s9 + $0x4a0] ss:$16 sps:$4 sm:$0xff]  }
  0x52   : > { %1899 = vmatpush2.bf16.msra.mxu1 %v2757_v56  ;;  %1857 = vmatprep.subr.bf16.mxu0 %v2758_v57  ;;  %v2811_v33 = vld [vmem:[%s3208_s9 + $0x6a4] ss:$16 sps:$4 sm:$0xff]   ;;  %v2809_v35 = vld [vmem:[%s3208_s9 + $0x6a0] ss:$16 sps:$4 sm:$0xff]  }
  0x53   : > { %1900 = vmatprep.subr.bf16.mxu1 %v2760_v58  ;;  %v2814_v36 = vld [vmem:[%s3208_s9 + $0x484] ss:$16 sps:$4 sm:$0xff]   ;;  %v2812_v38 = vld [vmem:[%s3208_s9 + $0x480] ss:$16 sps:$4 sm:$0xff]  }
  0x54   : > { %v2817_v37 = vld [vmem:[%s3208_s9 + $0x684] ss:$16 sps:$4 sm:$0xff]   ;;  %v2815_v39 = vld [vmem:[%s3208_s9 + $0x680] ss:$16 sps:$4 sm:$0xff]  }
  0x55   : > { %1858 = vmatpush2.bf16.msra.mxu0 %v2762_v59  ;;  %v2820_v40 = vld [vmem:[%s3208_s9 + $0x464] ss:$16 sps:$4 sm:$0xff]   ;;  %v2818_v42 = vld [vmem:[%s3208_s9 + $0x460] ss:$16 sps:$4 sm:$0xff]  }
  0x56   : > { %1901 = vmatpush2.bf16.msra.mxu1 %v2763_v60  ;;  %1859 = vmatprep.subr.bf16.mxu0 %v2764_v61  ;;  %v2823_v41 = vld [vmem:[%s3208_s9 + $0x664] ss:$16 sps:$4 sm:$0xff]   ;;  %v2821_v43 = vld [vmem:[%s3208_s9 + $0x660] ss:$16 sps:$4 sm:$0xff]  }
  0x57   : > { %1902 = vmatprep.subr.bf16.mxu1 %v2766_v62  ;;  %v2826_v44 = vld [vmem:[%s3208_s9 + $0x444] ss:$16 sps:$4 sm:$0xff]   ;;  %v2824_v47 = vld [vmem:[%s3208_s9 + $0x440] ss:$16 sps:$4 sm:$0xff]  }
  0x58   : > { %v2829_v45 = vld [vmem:[%s3208_s9 + $0x644] ss:$16 sps:$4 sm:$0xff]   ;;  %v2827_v48 = vld [vmem:[%s3208_s9 + $0x640] ss:$16 sps:$4 sm:$0xff]  }
  0x59   : > { %1860 = vmatpush2.bf16.msra.mxu0 %v2768_v63  ;;  %v2832_v49 = vld [vmem:[%s3208_s9 + $0x424] ss:$16 sps:$4 sm:$0xff]   ;;  %v2830_v53 = vld [vmem:[%s3208_s9 + $0x420] ss:$16 sps:$4 sm:$0xff]  }
  0x5a   : > { %1903 = vmatpush2.bf16.msra.mxu1 %v2769_v0  ;;  %1861 = vmatprep.subr.bf16.mxu0 %v2770_v1  ;;  %v2835_v50 = vld [vmem:[%s3208_s9 + $0x624] ss:$16 sps:$4 sm:$0xff]   ;;  %v2833_v54 = vld [vmem:[%s3208_s9 + $0x620] ss:$16 sps:$4 sm:$0xff]  }
  0x5b   : > { %1904 = vmatprep.subr.bf16.mxu1 %v2772_v2  ;;  %v2838_v55 = vld [vmem:[%s3208_s9 + $0x404] ss:$16 sps:$4 sm:$0xff]   ;;  %v2836_v57 = vld [vmem:[%s3208_s9 + $0x400] ss:$16 sps:$4 sm:$0xff]  }
  0x5c   : > { %v2841_v56 = vld [vmem:[%s3208_s9 + $0x604] ss:$16 sps:$4 sm:$0xff]   ;;  %v2839_v58 = vld [vmem:[%s3208_s9 + $0x600] ss:$16 sps:$4 sm:$0xff]  }
  0x5d   : > { %1862 = vmatpush2.bf16.msra.mxu0 %v2774_v3  ;;  %v2844_v59 = vld [vmem:[%s3208_s9 + $0x5e4] ss:$16 sps:$4 sm:$0xff]   ;;  %v2842_v61 = vld [vmem:[%s3208_s9 + $0x5e0] ss:$16 sps:$4 sm:$0xff]  }
  0x5e   : > { %1905 = vmatpush2.bf16.msra.mxu1 %v2775_v4  ;;  %1863 = vmatprep.subr.bf16.mxu0 %v2776_v5  ;;  %v2847_v60 = vld [vmem:[%s3208_s9 + $0x7e4] ss:$16 sps:$4 sm:$0xff]   ;;  %v2845_v62 = vld [vmem:[%s3208_s9 + $0x7e0] ss:$16 sps:$4 sm:$0xff]  }
  0x5f   : > { %1906 = vmatprep.subr.bf16.mxu1 %v2778_v6  ;;  %v2850_v63 = vld [vmem:[%s3208_s9 + $0x5c4] ss:$16 sps:$4 sm:$0xff]   ;;  %v2848_v1 = vld [vmem:[%s3208_s9 + $0x5c0] ss:$16 sps:$4 sm:$0xff]  }
  0x60   : > { %v2853_v0 = vld [vmem:[%s3208_s9 + $0x7c4] ss:$16 sps:$4 sm:$0xff]   ;;  %v2851_v2 = vld [vmem:[%s3208_s9 + $0x7c0] ss:$16 sps:$4 sm:$0xff]  }
  0x61   : > { %1864 = vmatpush2.bf16.msra.mxu0 %v2780_v7  ;;  %v2856_v3 = vld [vmem:[%s3208_s9 + $0x5a4] ss:$16 sps:$4 sm:$0xff]   ;;  %v2854_v5 = vld [vmem:[%s3208_s9 + $0x5a0] ss:$16 sps:$4 sm:$0xff]  }
  0x62   : > { %1907 = vmatpush2.bf16.msra.mxu1 %v2781_v8  ;;  %1865 = vmatprep.subr.bf16.mxu0 %v2782_v9  ;;  %v2859_v4 = vld [vmem:[%s3208_s9 + $0x7a4] ss:$16 sps:$4 sm:$0xff]   ;;  %v2857_v6 = vld [vmem:[%s3208_s9 + $0x7a0] ss:$16 sps:$4 sm:$0xff]  }
  0x63   : > { %1908 = vmatprep.subr.bf16.mxu1 %v2784_v10  ;;  %v2862_v7 = vld [vmem:[%s3208_s9 + $0x584] ss:$16 sps:$4 sm:$0xff]   ;;  %v2860_v9 = vld [vmem:[%s3208_s9 + $0x580] ss:$16 sps:$4 sm:$0xff]  }
  0x64   : > { %v2865_v8 = vld [vmem:[%s3208_s9 + $0x784] ss:$16 sps:$4 sm:$0xff]   ;;  %v2863_v10 = vld [vmem:[%s3208_s9 + $0x780] ss:$16 sps:$4 sm:$0xff]  }
  0x65   : > { %1866 = vmatpush2.bf16.msra.mxu0 %v2786_v11  ;;  %v2868_v11 = vld [vmem:[%s3208_s9 + $0x564] ss:$16 sps:$4 sm:$0xff]  }
  0x66   : > { %1909 = vmatpush2.bf16.msra.mxu1 %v2787_v14  ;;  %1867 = vmatprep.subr.bf16.mxu0 %v2788_v17  ;;  %v2871_v14 = vld [vmem:[%s3208_s9 + $0x764] ss:$16 sps:$4 sm:$0xff]   ;;  %v2866_v17 = vld [vmem:[%s3208_s9 + $0x560] ss:$16 sps:$4 sm:$0xff]  }
  0x67   : > { %1910 = vmatprep.subr.bf16.mxu1 %v2790_v18  ;;  %v2869_v18 = vld [vmem:[%s3208_s9 + $0x760] ss:$16 sps:$4 sm:$0xff]  }
  0x69   : > { %1868 = vmatpush2.bf16.msra.mxu0 %v2792_v19  ;;  %v2874_v19 = vld [vmem:[%s3208_s9 + $0x544] ss:$16 sps:$4 sm:$0xff]  }
  0x6a   : > { %1911 = vmatpush2.bf16.msra.mxu1 %v2793_v20  ;;  %1923 = vmatprep.subr.bf16.mxu0 %v2796_v21  ;;  %v2877_v20 = vld [vmem:[%s3208_s9 + $0x744] ss:$16 sps:$4 sm:$0xff]   ;;  %v2872_v21 = vld [vmem:[%s3208_s9 + $0x540] ss:$16 sps:$4 sm:$0xff]  }
  0x6b   : > { %1966 = vmatprep.subr.bf16.mxu1 %v2799_v22  ;;  %v2875_v22 = vld [vmem:[%s3208_s9 + $0x740] ss:$16 sps:$4 sm:$0xff]  }
  0x6c   : > { %1870 = vmatmul.mubr.bf16.vlgmr.msra.gmra.mxu0 %v3196_v12 }
  0x6d   : > { %1913 = vmatmul.mubr.bf16.vlgmr.msra.gmra.mxu1 %v3201_v15  ;;  %1924 = vmatpush1.bf16.msra.mxu0 %v2794_v25  ;;  %v2880_v25 = vld [vmem:[%s3208_s9 + $0x524] ss:$16 sps:$4 sm:$0xff]  }
  0x6e   : > { %1967 = vmatpush1.bf16.msra.mxu1 %v2797_v26  ;;  %1925 = vmatprep.subr.bf16.mxu0 %v2802_v27  ;;  %v2883_v26 = vld [vmem:[%s3208_s9 + $0x724] ss:$16 sps:$4 sm:$0xff]   ;;  %v2878_v27 = vld [vmem:[%s3208_s9 + $0x520] ss:$16 sps:$4 sm:$0xff]  }
  0x6f   : > { %1968 = vmatprep.subr.bf16.mxu1 %v2805_v28  ;;  %1955 = vmatprep.mubr.bf16.mxu0 %v3290_v29  ;;  %v2881_v28 = vld [vmem:[%s3208_s9 + $0x720] ss:$16 sps:$4 sm:$0xff]  }
  0x70   : > { %1998 = vmatprep.mubr.bf16.mxu1 %v3323_v52 }
  0x71   : > { %1926 = vmatpush1.bf16.msra.mxu0 %v2800_v30  ;;  %v2886_v30 = vld [vmem:[%s3208_s9 + $0x504] ss:$16 sps:$4 sm:$0xff]  }
  0x72   : > { %1969 = vmatpush1.bf16.msra.mxu1 %v2803_v31  ;;  %1927 = vmatprep.subr.bf16.mxu0 %v2808_v32  ;;  %v2889_v31 = vld [vmem:[%s3208_s9 + $0x704] ss:$16 sps:$4 sm:$0xff]   ;;  %v2884_v32 = vld [vmem:[%s3208_s9 + $0x500] ss:$16 sps:$4 sm:$0xff]  }
  0x73   : > { %1970 = vmatprep.subr.bf16.mxu1 %v2811_v33  ;;  %v2887_v33 = vld [vmem:[%s3208_s9 + $0x700] ss:$16 sps:$4 sm:$0xff]  }
  0x75   : > { %1928 = vmatpush1.bf16.msra.mxu0 %v2806_v34  ;;  %v2892_v34 = vld [vmem:[%s3208_s9 + $0xec] ss:$16 sps:$4 sm:$0xff]  }
  0x76   : > { %1971 = vmatpush1.bf16.msra.mxu1 %v2809_v35  ;;  %1929 = vmatprep.subr.bf16.mxu0 %v2814_v36  ;;  %v2895_v35 = vld [vmem:[%s3208_s9 + $0x2ec] ss:$16 sps:$4 sm:$0xff]   ;;  %v3368_v36 = vcombine.low %v3279_v23, %v3282_v24  ;;  %v2896_v23 = vld [vmem:[%s3208_s9 + $0xc8] ss:$16 sps:$4 sm:$0xff]  }
  0x77   : > { %1972 = vmatprep.subr.bf16.mxu1 %v2817_v37  ;;  %v3372_v37 = vcombine.low %v3312_v46, %v3319_v51  ;;  %v2899_v24 = vld [vmem:[%s3208_s9 + $0x2c8] ss:$16 sps:$4 sm:$0xff]   ;;  %v2910_v46 = vld [vmem:[%s3208_s9 + $0x8c] ss:$16 sps:$4 sm:$0xff]  }
  0x78   : > { %v2917_v51 = vld [vmem:[%s3208_s9 + $0x268] ss:$16 sps:$4 sm:$0xff]  }
  0x79   : > { %1930 = vmatpush1.bf16.msra.mxu0 %v2812_v38  ;;  %v2890_v38 = vld [vmem:[%s3208_s9 + $0xe8] ss:$16 sps:$4 sm:$0xff]  }
  0x7a   : > { %1973 = vmatpush1.bf16.msra.mxu1 %v2815_v39  ;;  %1931 = vmatprep.subr.bf16.mxu0 %v2820_v40  ;;  %v2893_v39 = vld [vmem:[%s3208_s9 + $0x2e8] ss:$16 sps:$4 sm:$0xff]   ;;  %v2898_v40 = vld [vmem:[%s3208_s9 + $0xcc] ss:$16 sps:$4 sm:$0xff]  }
  0x7b   : > { %1974 = vmatprep.subr.bf16.mxu1 %v2823_v41  ;;  %v2901_v41 = vld [vmem:[%s3208_s9 + $0x2cc] ss:$16 sps:$4 sm:$0xff]  }
  0x7d   : > { %1932 = vmatpush1.bf16.msra.mxu0 %v2818_v42  ;;  %v2904_v42 = vld [vmem:[%s3208_s9 + $0xac] ss:$16 sps:$4 sm:$0xff]  }
  0x7e   : > { %1975 = vmatpush1.bf16.msra.mxu1 %v2821_v43  ;;  %1933 = vmatprep.subr.bf16.mxu0 %v2826_v44  ;;  %v2907_v43 = vld [vmem:[%s3208_s9 + $0x2ac] ss:$16 sps:$4 sm:$0xff]   ;;  %v2902_v44 = vld [vmem:[%s3208_s9 + $0xa8] ss:$16 sps:$4 sm:$0xff]  }
  0x7f   : > { %1976 = vmatprep.subr.bf16.mxu1 %v2829_v45  ;;  %v2905_v45 = vld [vmem:[%s3208_s9 + $0x2a8] ss:$16 sps:$4 sm:$0xff]  }
  0x81   : > { %1934 = vmatpush1.bf16.msra.mxu0 %v2824_v47  ;;  %v2913_v47 = vld [vmem:[%s3208_s9 + $0x28c] ss:$16 sps:$4 sm:$0xff]  }
  0x82   : > { %1977 = vmatpush1.bf16.msra.mxu1 %v2827_v48  ;;  %1935 = vmatprep.subr.bf16.mxu0 %v2832_v49  ;;  %v2908_v48 = vld [vmem:[%s3208_s9 + $0x88] ss:$16 sps:$4 sm:$0xff]   ;;  %v2919_v49 = vld [vmem:[%s3208_s9 + $0x26c] ss:$16 sps:$4 sm:$0xff]  }
  0x83   : > { %1978 = vmatprep.subr.bf16.mxu1 %v2835_v50  ;;  %v2914_v50 = vld [vmem:[%s3208_s9 + $0x68] ss:$16 sps:$4 sm:$0xff]  }
  0x85   : > { %1936 = vmatpush1.bf16.msra.mxu0 %v2830_v53  ;;  %v2922_v53 = vld [vmem:[%s3208_s9 + $0x4c] ss:$16 sps:$4 sm:$0xff]  }
  0x86   : > { %1979 = vmatpush1.bf16.msra.mxu1 %v2833_v54  ;;  %1937 = vmatprep.subr.bf16.mxu0 %v2838_v55  ;;  %v2925_v54 = vld [vmem:[%s3208_s9 + $0x24c] ss:$16 sps:$4 sm:$0xff]   ;;  %v2920_v55 = vld [vmem:[%s3208_s9 + $0x48] ss:$16 sps:$4 sm:$0xff]  }
  0x87   : > { %1980 = vmatprep.subr.bf16.mxu1 %v2841_v56  ;;  %v2923_v56 = vld [vmem:[%s3208_s9 + $0x248] ss:$16 sps:$4 sm:$0xff]  }
  0x89   : > { %1938 = vmatpush1.bf16.msra.mxu0 %v2836_v57  ;;  %v2928_v57 = vld [vmem:[%s3208_s9 + $0x2c] ss:$16 sps:$4 sm:$0xff]  }
  0x8a   : > { %1981 = vmatpush1.bf16.msra.mxu1 %v2839_v58  ;;  %1939 = vmatprep.subr.bf16.mxu0 %v2844_v59  ;;  %v2931_v58 = vld [vmem:[%s3208_s9 + $0x22c] ss:$16 sps:$4 sm:$0xff]   ;;  %v2926_v59 = vld [vmem:[%s3208_s9 + $0x28] ss:$16 sps:$4 sm:$0xff]  }
  0x8b   : > { %1982 = vmatprep.subr.bf16.mxu1 %v2847_v60  ;;  %v2929_v60 = vld [vmem:[%s3208_s9 + $0x228] ss:$16 sps:$4 sm:$0xff]  }
  0x8d   : > { %1940 = vmatpush2.bf16.msra.mxu0 %v2842_v61  ;;  %v2934_v61 = vld [vmem:[%s3208_s9 + $0xc] ss:$16 sps:$4 sm:$0xff]  }
  0x8e   : > { %1983 = vmatpush2.bf16.msra.mxu1 %v2845_v62  ;;  %1941 = vmatprep.subr.bf16.mxu0 %v2850_v63  ;;  %v2937_v62 = vld [vmem:[%s3208_s9 + $0x20c] ss:$16 sps:$4 sm:$0xff]   ;;  %v2932_v63 = vld [vmem:[%s3208_s9 + $0x8] ss:$16 sps:$4 sm:$0xff]  }
  0x8f   : > { %1984 = vmatprep.subr.bf16.mxu1 %v2853_v0  ;;  %v2935_v0 = vld [vmem:[%s3208_s9 + $0x208] ss:$16 sps:$4 sm:$0xff]  }
  0x91   : > { %1942 = vmatpush2.bf16.msra.mxu0 %v2848_v1  ;;  %v2940_v1 = vld [vmem:[%s3208_s9 + $0x1ec] ss:$16 sps:$4 sm:$0xff]  }
  0x92   : > { %1985 = vmatpush2.bf16.msra.mxu1 %v2851_v2  ;;  %1943 = vmatprep.subr.bf16.mxu0 %v2856_v3  ;;  %v2943_v2 = vld [vmem:[%s3208_s9 + $0x3ec] ss:$16 sps:$4 sm:$0xff]   ;;  %v2938_v3 = vld [vmem:[%s3208_s9 + $0x1e8] ss:$16 sps:$4 sm:$0xff]  }
  0x93   : > { %1986 = vmatprep.subr.bf16.mxu1 %v2859_v4  ;;  %v2941_v4 = vld [vmem:[%s3208_s9 + $0x3e8] ss:$16 sps:$4 sm:$0xff]  }
  0x95   : > { %1944 = vmatpush2.bf16.msra.mxu0 %v2854_v5  ;;  %v2946_v5 = vld [vmem:[%s3208_s9 + $0x1cc] ss:$16 sps:$4 sm:$0xff]  }
  0x96   : > { %1987 = vmatpush2.bf16.msra.mxu1 %v2857_v6  ;;  %1945 = vmatprep.subr.bf16.mxu0 %v2862_v7  ;;  %v2949_v6 = vld [vmem:[%s3208_s9 + $0x3cc] ss:$16 sps:$4 sm:$0xff]   ;;  %v2944_v7 = vld [vmem:[%s3208_s9 + $0x1c8] ss:$16 sps:$4 sm:$0xff]  }
  0x97   : > { %1988 = vmatprep.subr.bf16.mxu1 %v2865_v8  ;;  %v2947_v8 = vld [vmem:[%s3208_s9 + $0x3c8] ss:$16 sps:$4 sm:$0xff]  }
  0x99   : > { %1946 = vmatpush2.bf16.msra.mxu0 %v2860_v9  ;;  %v2952_v9 = vld [vmem:[%s3208_s9 + $0x1ac] ss:$16 sps:$4 sm:$0xff]  }
  0x9a   : > { %1989 = vmatpush2.bf16.msra.mxu1 %v2863_v10  ;;  %1947 = vmatprep.subr.bf16.mxu0 %v2868_v11  ;;  %v2955_v10 = vld [vmem:[%s3208_s9 + $0x3ac] ss:$16 sps:$4 sm:$0xff]   ;;  %v2950_v11 = vld [vmem:[%s3208_s9 + $0x1a8] ss:$16 sps:$4 sm:$0xff]  }
  0x9b   : > { %1990 = vmatprep.subr.bf16.mxu1 %v2871_v14  ;;  %v2953_v14 = vld [vmem:[%s3208_s9 + $0x3a8] ss:$16 sps:$4 sm:$0xff]  }
  0x9d   : > { %1948 = vmatpush2.bf16.msra.mxu0 %v2866_v17  ;;  %v2958_v17 = vld [vmem:[%s3208_s9 + $0x18c] ss:$16 sps:$4 sm:$0xff]  }
  0x9e   : > { %1991 = vmatpush2.bf16.msra.mxu1 %v2869_v18  ;;  %1949 = vmatprep.subr.bf16.mxu0 %v2874_v19  ;;  %v2961_v18 = vld [vmem:[%s3208_s9 + $0x38c] ss:$16 sps:$4 sm:$0xff]   ;;  %v2956_v19 = vld [vmem:[%s3208_s9 + $0x188] ss:$16 sps:$4 sm:$0xff]  }
  0x9f   : > { %1992 = vmatprep.subr.bf16.mxu1 %v2877_v20  ;;  %v2959_v20 = vld [vmem:[%s3208_s9 + $0x388] ss:$16 sps:$4 sm:$0xff]  }
  0xa1   : > { %1950 = vmatpush2.bf16.msra.mxu0 %v2872_v21  ;;  %v2964_v21 = vld [vmem:[%s3208_s9 + $0x16c] ss:$16 sps:$4 sm:$0xff]  }
  0xa2   : > { %1993 = vmatpush2.bf16.msra.mxu1 %v2875_v22  ;;  %1951 = vmatprep.subr.bf16.mxu0 %v2880_v25  ;;  %v2967_v22 = vld [vmem:[%s3208_s9 + $0x36c] ss:$16 sps:$4 sm:$0xff]   ;;  %v2962_v25 = vld [vmem:[%s3208_s9 + $0x168] ss:$16 sps:$4 sm:$0xff]  }
  0xa3   : > { %1994 = vmatprep.subr.bf16.mxu1 %v2883_v26  ;;  %v2965_v26 = vld [vmem:[%s3208_s9 + $0x368] ss:$16 sps:$4 sm:$0xff]  }
  0xa5   : > { %1952 = vmatpush2.bf16.msra.mxu0 %v2878_v27  ;;  %v2970_v27 = vld [vmem:[%s3208_s9 + $0x14c] ss:$16 sps:$4 sm:$0xff]  }
  0xa6   : > { %1995 = vmatpush2.bf16.msra.mxu1 %v2881_v28  ;;  %1953 = vmatprep.subr.bf16.mxu0 %v2886_v30  ;;  %v2973_v28 = vld [vmem:[%s3208_s9 + $0x34c] ss:$16 sps:$4 sm:$0xff]   ;;  %v2968_v30 = vld [vmem:[%s3208_s9 + $0x148] ss:$16 sps:$4 sm:$0xff]  }
  0xa7   : > { %1996 = vmatprep.subr.bf16.mxu1 %v2889_v31  ;;  %v2971_v31 = vld [vmem:[%s3208_s9 + $0x348] ss:$16 sps:$4 sm:$0xff]  }
  0xa9   : > { %1954 = vmatpush2.bf16.msra.mxu0 %v2884_v32  ;;  %v2976_v32 = vld [vmem:[%s3208_s9 + $0x12c] ss:$16 sps:$4 sm:$0xff]  }
  0xaa   : > { %1997 = vmatpush2.bf16.msra.mxu1 %v2887_v33  ;;  %2009 = vmatprep.subr.bf16.mxu0 %v2892_v34  ;;  %v2979_v33 = vld [vmem:[%s3208_s9 + $0x32c] ss:$16 sps:$4 sm:$0xff]   ;;  %v2974_v34 = vld [vmem:[%s3208_s9 + $0x128] ss:$16 sps:$4 sm:$0xff]  }
  0xab   : > { %2052 = vmatprep.subr.bf16.mxu1 %v2895_v35  ;;  %v2977_v35 = vld [vmem:[%s3208_s9 + $0x328] ss:$16 sps:$4 sm:$0xff]  }
  0xac   : > { %1956 = vmatmul.mubr.bf16.vlgmr.msra.gmra.mxu0 %v3368_v36 }
  0xad   : > { %1999 = vmatmul.mubr.bf16.vlgmr.msra.gmra.mxu1 %v3372_v37  ;;  %2010 = vmatpush1.bf16.msra.mxu0 %v2890_v38  ;;  %v2982_v38 = vld [vmem:[%s3208_s9 + $0x10c] ss:$16 sps:$4 sm:$0xff]  }
  0xae   : > { %2053 = vmatpush1.bf16.msra.mxu1 %v2893_v39  ;;  %2011 = vmatprep.subr.bf16.mxu0 %v2898_v40  ;;  %v2985_v39 = vld [vmem:[%s3208_s9 + $0x30c] ss:$16 sps:$4 sm:$0xff]   ;;  %v2980_v40 = vld [vmem:[%s3208_s9 + $0x108] ss:$16 sps:$4 sm:$0xff]  }
  0xaf   : > { %2054 = vmatprep.subr.bf16.mxu1 %v2901_v41  ;;  %2041 = vmatprep.mubr.bf16.mxu0 %v3198_v13  ;;  %v2911_v13 = vld [vmem:[%s3208_s9 + $0x288] ss:$16 sps:$4 sm:$0xff]  }
  0xb0   : > { %2084 = vmatprep.mubr.bf16.mxu1 %v3203_v16  ;;  %v2916_v16 = vld [vmem:[%s3208_s9 + $0x6c] ss:$16 sps:$4 sm:$0xff]   ;;  %v2983_v41 = vld [vmem:[%s3208_s9 + $0x308] ss:$16 sps:$4 sm:$0xff]  }
  0xb1   : > { %2012 = vmatpush1.bf16.msra.mxu0 %v2896_v23  ;;  %v2988_v23 = vld [vmem:[%s3208_s9 + $0x4ec] ss:$16 sps:$4 sm:$0xff]  }
  0xb2   : > { %2055 = vmatpush1.bf16.msra.mxu1 %v2899_v24  ;;  %2013 = vmatprep.subr.bf16.mxu0 %v2904_v42  ;;  %v2991_v24 = vld [vmem:[%s3208_s9 + $0x6ec] ss:$16 sps:$4 sm:$0xff]   ;;  %v2986_v42 = vld [vmem:[%s3208_s9 + $0x4e8] ss:$16 sps:$4 sm:$0xff]  }
  0xb3   : > { %2056 = vmatprep.subr.bf16.mxu1 %v2907_v43  ;;  %v2989_v43 = vld [vmem:[%s3208_s9 + $0x6e8] ss:$16 sps:$4 sm:$0xff]  }
  0xb5   : > { %2014 = vmatpush1.bf16.msra.mxu0 %v2902_v44  ;;  %v2994_v44 = vld [vmem:[%s3208_s9 + $0x4cc] ss:$16 sps:$4 sm:$0xff]  }
  0xb6   : > { %2057 = vmatpush1.bf16.msra.mxu1 %v2905_v45  ;;  %2015 = vmatprep.subr.bf16.mxu0 %v2910_v46  ;;  %v2997_v45 = vld [vmem:[%s3208_s9 + $0x6cc] ss:$16 sps:$4 sm:$0xff]   ;;  %v2992_v46 = vld [vmem:[%s3208_s9 + $0x4c8] ss:$16 sps:$4 sm:$0xff]  }
  0xb7   : > { %2058 = vmatprep.subr.bf16.mxu1 %v2913_v47  ;;  %v2995_v47 = vld [vmem:[%s3208_s9 + $0x6c8] ss:$16 sps:$4 sm:$0xff]  }
  0xb9   : > { %2016 = vmatpush1.bf16.msra.mxu0 %v2908_v48  ;;  %v3000_v48 = vld [vmem:[%s3208_s9 + $0x4ac] ss:$16 sps:$4 sm:$0xff]  }
  0xba   : > { %2059 = vmatpush1.bf16.msra.mxu1 %v2911_v13  ;;  %2017 = vmatprep.subr.bf16.mxu0 %v2916_v16  ;;  %v3003_v13 = vld [vmem:[%s3208_s9 + $0x6ac] ss:$16 sps:$4 sm:$0xff]  }
  0xbb   : > { %2060 = vmatprep.subr.bf16.mxu1 %v2919_v49  ;;  %v3006_v16 = vld [vmem:[%s3208_s9 + $0x48c] ss:$16 sps:$4 sm:$0xff]  }
  0xbc   : > { %v3009_v49 = vld [vmem:[%s3208_s9 + $0x68c] ss:$16 sps:$4 sm:$0xff]  }
  0xbd   : > { %2018 = vmatpush1.bf16.msra.mxu0 %v2914_v50  ;;  %v3004_v50 = vld [vmem:[%s3208_s9 + $0x488] ss:$16 sps:$4 sm:$0xff]  }
  0xbe   : > { %2061 = vmatpush1.bf16.msra.mxu1 %v2917_v51  ;;  %2019 = vmatprep.subr.bf16.mxu0 %v2922_v53  ;;  %v3015_v51 = vld [vmem:[%s3208_s9 + $0x66c] ss:$16 sps:$4 sm:$0xff]   ;;  %v3010_v53 = vld [vmem:[%s3208_s9 + $0x468] ss:$16 sps:$4 sm:$0xff]  }
  0xbf   : > { %2062 = vmatprep.subr.bf16.mxu1 %v2925_v54  ;;  %v3013_v54 = vld [vmem:[%s3208_s9 + $0x668] ss:$16 sps:$4 sm:$0xff]  }
  0xc1   : > { %2020 = vmatpush1.bf16.msra.mxu0 %v2920_v55  ;;  %v3018_v55 = vld [vmem:[%s3208_s9 + $0x44c] ss:$16 sps:$4 sm:$0xff]  }
  0xc2   : > { %2063 = vmatpush1.bf16.msra.mxu1 %v2923_v56  ;;  %2021 = vmatprep.subr.bf16.mxu0 %v2928_v57  ;;  %v3021_v56 = vld [vmem:[%s3208_s9 + $0x64c] ss:$16 sps:$4 sm:$0xff]   ;;  %v3016_v57 = vld [vmem:[%s3208_s9 + $0x448] ss:$16 sps:$4 sm:$0xff]  }
  0xc3   : > { %2064 = vmatprep.subr.bf16.mxu1 %v2931_v58  ;;  %v3019_v58 = vld [vmem:[%s3208_s9 + $0x648] ss:$16 sps:$4 sm:$0xff]  }
  0xc5   : > { %2022 = vmatpush1.bf16.msra.mxu0 %v2926_v59  ;;  %v3024_v59 = vld [vmem:[%s3208_s9 + $0x42c] ss:$16 sps:$4 sm:$0xff]  }
  0xc6   : > { %2065 = vmatpush1.bf16.msra.mxu1 %v2929_v60  ;;  %2023 = vmatprep.subr.bf16.mxu0 %v2934_v61  ;;  %v3027_v60 = vld [vmem:[%s3208_s9 + $0x62c] ss:$16 sps:$4 sm:$0xff]   ;;  %v3022_v61 = vld [vmem:[%s3208_s9 + $0x428] ss:$16 sps:$4 sm:$0xff]  }
  0xc7   : > { %2066 = vmatprep.subr.bf16.mxu1 %v2937_v62  ;;  %v3025_v62 = vld [vmem:[%s3208_s9 + $0x628] ss:$16 sps:$4 sm:$0xff]  }
  0xc9   : > { %2024 = vmatpush1.bf16.msra.mxu0 %v2932_v63  ;;  %v3030_v63 = vld [vmem:[%s3208_s9 + $0x40c] ss:$16 sps:$4 sm:$0xff]  }
  0xca   : > { %2067 = vmatpush1.bf16.msra.mxu1 %v2935_v0  ;;  %2025 = vmatprep.subr.bf16.mxu0 %v2940_v1  ;;  %v3033_v0 = vld [vmem:[%s3208_s9 + $0x60c] ss:$16 sps:$4 sm:$0xff]   ;;  %v3028_v1 = vld [vmem:[%s3208_s9 + $0x408] ss:$16 sps:$4 sm:$0xff]  }
  0xcb   : > { %2068 = vmatprep.subr.bf16.mxu1 %v2943_v2  ;;  %v3031_v2 = vld [vmem:[%s3208_s9 + $0x608] ss:$16 sps:$4 sm:$0xff]  }
  0xcd   : > { %2026 = vmatpush2.bf16.msra.mxu0 %v2938_v3  ;;  %v3036_v3 = vld [vmem:[%s3208_s9 + $0x5ec] ss:$16 sps:$4 sm:$0xff]  }
  0xce   : > { %2069 = vmatpush2.bf16.msra.mxu1 %v2941_v4  ;;  %2027 = vmatprep.subr.bf16.mxu0 %v2946_v5  ;;  %v3039_v4 = vld [vmem:[%s3208_s9 + $0x7ec] ss:$16 sps:$4 sm:$0xff]   ;;  %v3034_v5 = vld [vmem:[%s3208_s9 + $0x5e8] ss:$16 sps:$4 sm:$0xff]  }
  0xcf   : > { %2070 = vmatprep.subr.bf16.mxu1 %v2949_v6  ;;  %v3037_v6 = vld [vmem:[%s3208_s9 + $0x7e8] ss:$16 sps:$4 sm:$0xff]  }
  0xd1   : > { %2028 = vmatpush2.bf16.msra.mxu0 %v2944_v7  ;;  %v3042_v7 = vld [vmem:[%s3208_s9 + $0x5cc] ss:$16 sps:$4 sm:$0xff]  }
  0xd2   : > { %2071 = vmatpush2.bf16.msra.mxu1 %v2947_v8  ;;  %2029 = vmatprep.subr.bf16.mxu0 %v2952_v9  ;;  %v3045_v8 = vld [vmem:[%s3208_s9 + $0x7cc] ss:$16 sps:$4 sm:$0xff]   ;;  %v3040_v9 = vld [vmem:[%s3208_s9 + $0x5c8] ss:$16 sps:$4 sm:$0xff]  }
  0xd3   : > { %2072 = vmatprep.subr.bf16.mxu1 %v2955_v10  ;;  %v3043_v10 = vld [vmem:[%s3208_s9 + $0x7c8] ss:$16 sps:$4 sm:$0xff]  }
  0xd5   : > { %2030 = vmatpush2.bf16.msra.mxu0 %v2950_v11  ;;  %v3048_v11 = vld [vmem:[%s3208_s9 + $0x5ac] ss:$16 sps:$4 sm:$0xff]  }
  0xd6   : > { %2073 = vmatpush2.bf16.msra.mxu1 %v2953_v14  ;;  %2031 = vmatprep.subr.bf16.mxu0 %v2958_v17  ;;  %v3051_v14 = vld [vmem:[%s3208_s9 + $0x7ac] ss:$16 sps:$4 sm:$0xff]   ;;  %v3046_v17 = vld [vmem:[%s3208_s9 + $0x5a8] ss:$16 sps:$4 sm:$0xff]  }
  0xd7   : > { %2074 = vmatprep.subr.bf16.mxu1 %v2961_v18  ;;  %v3049_v18 = vld [vmem:[%s3208_s9 + $0x7a8] ss:$16 sps:$4 sm:$0xff]  }
  0xd9   : > { %2032 = vmatpush2.bf16.msra.mxu0 %v2956_v19  ;;  %v3054_v19 = vld [vmem:[%s3208_s9 + $0x58c] ss:$16 sps:$4 sm:$0xff]  }
  0xda   : > { %2075 = vmatpush2.bf16.msra.mxu1 %v2959_v20  ;;  %2033 = vmatprep.subr.bf16.mxu0 %v2964_v21  ;;  %v3057_v20 = vld [vmem:[%s3208_s9 + $0x78c] ss:$16 sps:$4 sm:$0xff]   ;;  %v3052_v21 = vld [vmem:[%s3208_s9 + $0x588] ss:$16 sps:$4 sm:$0xff]  }
  0xdb   : > { %2076 = vmatprep.subr.bf16.mxu1 %v2967_v22  ;;  %v3055_v22 = vld [vmem:[%s3208_s9 + $0x788] ss:$16 sps:$4 sm:$0xff]  }
  0xdd   : > { %2034 = vmatpush2.bf16.msra.mxu0 %v2962_v25  ;;  %v3060_v25 = vld [vmem:[%s3208_s9 + $0x56c] ss:$16 sps:$4 sm:$0xff]  }
  0xde   : > { %2077 = vmatpush2.bf16.msra.mxu1 %v2965_v26  ;;  %2035 = vmatprep.subr.bf16.mxu0 %v2970_v27  ;;  %v3063_v26 = vld [vmem:[%s3208_s9 + $0x76c] ss:$16 sps:$4 sm:$0xff]   ;;  %v3058_v27 = vld [vmem:[%s3208_s9 + $0x568] ss:$16 sps:$4 sm:$0xff]  }
  0xdf   : > { %2078 = vmatprep.subr.bf16.mxu1 %v2973_v28  ;;  %v3061_v28 = vld [vmem:[%s3208_s9 + $0x768] ss:$16 sps:$4 sm:$0xff]  }
  0xe1   : > { %2036 = vmatpush2.bf16.msra.mxu0 %v2968_v30  ;;  %v3066_v30 = vld [vmem:[%s3208_s9 + $0x54c] ss:$16 sps:$4 sm:$0xff]  }
  0xe2   : > { %2079 = vmatpush2.bf16.msra.mxu1 %v2971_v31  ;;  %2037 = vmatprep.subr.bf16.mxu0 %v2976_v32  ;;  %v3069_v31 = vld [vmem:[%s3208_s9 + $0x74c] ss:$16 sps:$4 sm:$0xff]   ;;  %v3064_v32 = vld [vmem:[%s3208_s9 + $0x548] ss:$16 sps:$4 sm:$0xff]  }
  0xe3   : > { %2080 = vmatprep.subr.bf16.mxu1 %v2979_v33  ;;  %v3067_v33 = vld [vmem:[%s3208_s9 + $0x748] ss:$16 sps:$4 sm:$0xff]  }
  0xe5   : > { %2038 = vmatpush2.bf16.msra.mxu0 %v2974_v34  ;;  %v3072_v34 = vld [vmem:[%s3208_s9 + $0x52c] ss:$16 sps:$4 sm:$0xff]  }
  0xe6   : > { %2081 = vmatpush2.bf16.msra.mxu1 %v2977_v35  ;;  %2039 = vmatprep.subr.bf16.mxu0 %v2982_v38  ;;  %v3075_v35 = vld [vmem:[%s3208_s9 + $0x72c] ss:$16 sps:$4 sm:$0xff]   ;;  %v3070_v38 = vld [vmem:[%s3208_s9 + $0x528] ss:$16 sps:$4 sm:$0xff]  }
  0xe7   : > { %2082 = vmatprep.subr.bf16.mxu1 %v2985_v39  ;;  %v3073_v39 = vld [vmem:[%s3208_s9 + $0x728] ss:$16 sps:$4 sm:$0xff]  }
  0xe9   : > { %2040 = vmatpush2.bf16.msra.mxu0 %v2980_v40  ;;  %v3078_v40 = vld [vmem:[%s3208_s9 + $0x50c] ss:$16 sps:$4 sm:$0xff]  }
  0xea   : > { %2083 = vmatpush2.bf16.msra.mxu1 %v2983_v41  ;;  %2095 = vmatprep.subr.bf16.mxu0 %v2988_v23  ;;  %v3081_v41 = vld [vmem:[%s3208_s9 + $0x70c] ss:$16 sps:$4 sm:$0xff]   ;;  %v3076_v23 = vld [vmem:[%s3208_s9 + $0x508] ss:$16 sps:$4 sm:$0xff]  }
  0xeb   : > { %2138 = vmatprep.subr.bf16.mxu1 %v2991_v24  ;;  %v3079_v24 = vld [vmem:[%s3208_s9 + $0x708] ss:$16 sps:$4 sm:$0xff]  }
  0xec   : > { %2042 = vmatmul.mubr.bf16.vlgmr.msra.gmra.mxu0 %v3196_v12  ;;  %v2998_v12 = vld [vmem:[%s3208_s9 + $0x4a8] ss:$16 sps:$4 sm:$0xff]  }
  0xed   : > { %2085 = vmatmul.mubr.bf16.vlgmr.msra.gmra.mxu1 %v3201_v15  ;;  %2096 = vmatpush1.bf16.msra.mxu0 %v2986_v42  ;;  %v3001_v15 = vld [vmem:[%s3208_s9 + $0x6a8] ss:$16 sps:$4 sm:$0xff]  }
  0xee   : > { %2139 = vmatpush1.bf16.msra.mxu1 %v2989_v43  ;;  %2097 = vmatprep.subr.bf16.mxu0 %v2994_v44 }
  0xef   : > { %2140 = vmatprep.subr.bf16.mxu1 %v2997_v45  ;;  %2127 = vmatprep.mubr.bf16.mxu0 %v3290_v29  ;;  %v3007_v29 = vld [vmem:[%s3208_s9 + $0x688] ss:$16 sps:$4 sm:$0xff]  }
  0xf0   : > { %2170 = vmatprep.mubr.bf16.mxu1 %v3323_v52  ;;  %v3012_v52 = vld [vmem:[%s3208_s9 + $0x46c] ss:$16 sps:$4 sm:$0xff]  }
  0xf1   : > { %2098 = vmatpush1.bf16.msra.mxu0 %v2992_v46 }
  0xf2   : > { %2141 = vmatpush1.bf16.msra.mxu1 %v2995_v47  ;;  %2099 = vmatprep.subr.bf16.mxu0 %v3000_v48 }
  0xf3   : > { %2142 = vmatprep.subr.bf16.mxu1 %v3003_v13 }
  0xf5   : > { %2100 = vmatpush1.bf16.msra.mxu0 %v2998_v12 }
  0xf6   : > { %2143 = vmatpush1.bf16.msra.mxu1 %v3001_v15  ;;  %2101 = vmatprep.subr.bf16.mxu0 %v3006_v16 }
  0xf7   : > { %2144 = vmatprep.subr.bf16.mxu1 %v3009_v49 }
  0xf9   : > { %2102 = vmatpush1.bf16.msra.mxu0 %v3004_v50 }
  0xfa   : > { %2145 = vmatpush1.bf16.msra.mxu1 %v3007_v29  ;;  %2103 = vmatprep.subr.bf16.mxu0 %v3012_v52  ;;  %v240_v29 = vld [vmem:[#allocation2 + $0x30] sm:$0xff] }
  0xfb   : > { %2146 = vmatprep.subr.bf16.mxu1 %v3015_v51 }
  0xfd   : > { %2104 = vmatpush1.bf16.msra.mxu0 %v3010_v53 }
  0xfe   : > { %2147 = vmatpush1.bf16.msra.mxu1 %v3013_v54  ;;  %2105 = vmatprep.subr.bf16.mxu0 %v3018_v55 }
  0xff   : > { %2148 = vmatprep.subr.bf16.mxu1 %v3021_v56 }
 0x101   : > { %2106 = vmatpush1.bf16.msra.mxu0 %v3016_v57 }
 0x102   : > { %2149 = vmatpush1.bf16.msra.mxu1 %v3019_v58  ;;  %2107 = vmatprep.subr.bf16.mxu0 %v3024_v59 }
 0x103   : > { %2150 = vmatprep.subr.bf16.mxu1 %v3027_v60 }
 0x105   : > { %2108 = vmatpush1.bf16.msra.mxu0 %v3022_v61  ;;  %v244_v61 = vld [vmem:[#allocation2 + $0x8] sm:$0xff] }
 0x106   : > { %2151 = vmatpush1.bf16.msra.mxu1 %v3025_v62  ;;  %2109 = vmatprep.subr.bf16.mxu0 %v3030_v63 }
 0x107   : > { %2152 = vmatprep.subr.bf16.mxu1 %v3033_v0 }
 0x109   : > { %2110 = vmatpush1.bf16.msra.mxu0 %v3028_v1 }
 0x10a   : > { %2153 = vmatpush1.bf16.msra.mxu1 %v3031_v2  ;;  %2111 = vmatprep.subr.bf16.mxu0 %v3036_v3  ;;  %v245_v2 = vld [vmem:[#allocation2 + $0x20] sm:$0xff] }
 0x10b   : > { %2154 = vmatprep.subr.bf16.mxu1 %v3039_v4 }
 0x10d   : > { %2112 = vmatpush2.bf16.msra.mxu0 %v3034_v5 }
 0x10e   : > { %2155 = vmatpush2.bf16.msra.mxu1 %v3037_v6  ;;  %2113 = vmatprep.subr.bf16.mxu0 %v3042_v7 }
 0x10f   : > { %2156 = vmatprep.subr.bf16.mxu1 %v3045_v8 }
 0x111   : > { %2114 = vmatpush2.bf16.msra.mxu0 %v3040_v9 }
 0x112   : > { %2157 = vmatpush2.bf16.msra.mxu1 %v3043_v10  ;;  %2115 = vmatprep.subr.bf16.mxu0 %v3048_v11 }
 0x113   : > { %2158 = vmatprep.subr.bf16.mxu1 %v3051_v14 }
 0x115   : > { %2116 = vmatpush2.bf16.msra.mxu0 %v3046_v17 }
 0x116   : > { %2159 = vmatpush2.bf16.msra.mxu1 %v3049_v18  ;;  %2117 = vmatprep.subr.bf16.mxu0 %v3054_v19 }
 0x117   : > { %2160 = vmatprep.subr.bf16.mxu1 %v3057_v20 }
 0x119   : > { %2118 = vmatpush2.bf16.msra.mxu0 %v3052_v21 }
 0x11a   : > { %2161 = vmatpush2.bf16.msra.mxu1 %v3055_v22  ;;  %2119 = vmatprep.subr.bf16.mxu0 %v3060_v25 }
 0x11b   : > { %2162 = vmatprep.subr.bf16.mxu1 %v3063_v26  ;;  %v242_v26 = vld [vmem:[#allocation2 + $0x18] sm:$0xff] }
 0x11d   : > { %2120 = vmatpush2.bf16.msra.mxu0 %v3058_v27 }
 0x11e   : > { %2163 = vmatpush2.bf16.msra.mxu1 %v3061_v28  ;;  %2121 = vmatprep.subr.bf16.mxu0 %v3066_v30 }
 0x11f   : > { %2164 = vmatprep.subr.bf16.mxu1 %v3069_v31 }
 0x121   : > { %2122 = vmatpush2.bf16.msra.mxu0 %v3064_v32 }
 0x122   : > { %2165 = vmatpush2.bf16.msra.mxu1 %v3067_v33  ;;  %2123 = vmatprep.subr.bf16.mxu0 %v3072_v34  ;;  %v243_v33 = vld [vmem:[#allocation2 + $0x10] sm:$0xff] }
 0x123   : > { %2166 = vmatprep.subr.bf16.mxu1 %v3075_v35 }
 0x125   : > { %2124 = vmatpush2.bf16.msra.mxu0 %v3070_v38 }
 0x126   : > { %2167 = vmatpush2.bf16.msra.mxu1 %v3073_v39  ;;  %2125 = vmatprep.subr.bf16.mxu0 %v3078_v40 }
 0x127   : > { %2168 = vmatprep.subr.bf16.mxu1 %v3081_v41 }
 0x129   : > { %2126 = vmatpush2.bf16.msra.mxu0 %v3076_v23  ;;  %v246_v23 = vld [vmem:[#allocation2 + $0x28] sm:$0xff] }
 0x12a   : > { %2169 = vmatpush2.bf16.msra.mxu1 %v3079_v24 }
 0x12c   : > { %2128 = vmatmul.mubr.bf16.vlgmr.msra.gmra.mxu0 %v3368_v36  ;;  %v1871_v42 = vpop.f32.mrf.mxu0 }
 0x12d   : > { %2171 = vmatmul.mubr.bf16.vlgmr.msra.gmra.mxu1 %v3372_v37  ;;  %v1914_v43 = vpop.f32.mrf.mxu1  ;;  %v241_v37 = vld [vmem:[#allocation2] sm:$0xff] }
 0x12e   : > { %v1873_v44 = vpop.f32.mrf.mxu0  ;;  %v1915_v12 = vadd.f32 %v1914_v43, %v1871_v42 }
 0x12f   : > { %v1916_v45 = vpop.f32.mrf.mxu1 }
 0x130   : > { %v1875_v46 = vpop.f32.mrf.mxu0  ;;  %v1917_v49 = vadd.f32 %v1916_v45, %v1873_v44  ;;  %v247_v45 = vld [vmem:[#allocation2 + $0x38] sm:$0xff] }
 0x131   : > { %v1918_v47 = vpop.f32.mrf.mxu1 }
 0x132   : > { %v1877_v48 = vpop.f32.mrf.mxu0  ;;  %v1919_v53 = vadd.f32 %v1918_v47, %v1875_v46 }
 0x133   : > { %v1920_v13 = vpop.f32.mrf.mxu1 }
 0x134   : > { %v1921_v57 = vadd.f32 %v1920_v13, %v1877_v48 }
 0x16c   : > { %v1957_v15 = vpop.f32.mrf.mxu0 }
 0x16d   : > { %v2000_v16 = vpop.f32.mrf.mxu1  ;;  %v1958_v50 = vadd.f32 %v1957_v15, %v1915_v12 }
 0x16e   : > { %v1959_v52 = vpop.f32.mrf.mxu0 }
 0x16f   : > { %v2002_v51 = vpop.f32.mrf.mxu1  ;;  %v2001_v36 = vadd.f32 %v2000_v16, %v1958_v50  ;;  %v1960_v54 = vadd.f32 %v1959_v52, %v1917_v49 }
 0x170   : > { %v1961_v55 = vpop.f32.mrf.mxu0 }
 0x171   : > { %v2004_v56 = vpop.f32.mrf.mxu1  ;;  %v2181_v58 = vadd.f32 %v2001_v36, %v240_v29  ;;  %v2003_v59 = vadd.f32 %v2002_v51, %v1960_v54  ;;  %v1962_v60 = vadd.f32 %v1961_v55, %v1919_v53 }
 0x172   : > { %v1963_v62 = vpop.f32.mrf.mxu0 }
 0x173   : > { %2189 = vst [vmem:[#allocation2 + $0x30] sm:$0xff] %v2181_v58  ;;  %v2182_v63 = vadd.f32 %v2003_v59, %v241_v37  ;;  %v2005_v0 = vadd.f32 %v2004_v56, %v1962_v60  ;;  %v1964_v1 = vadd.f32 %v1963_v62, %v1921_v57  ;;  %v2006_v3 = vpop.f32.mrf.mxu1 }
 0x175   : > { %2190 = vst [vmem:[#allocation2] sm:$0xff] %v2182_v63  ;;  %v2185_v4 = vadd.f32 %v2005_v0, %v244_v61  ;;  %v2007_v5 = vadd.f32 %v2006_v3, %v1964_v1 }
 0x177   : > { %2193 = vst [vmem:[#allocation2 + $0x8] sm:$0xff] %v2185_v4  ;;  %v2186_v6 = vadd.f32 %v2007_v5, %v245_v2 }
 0x179   : > { %2194 = vst [vmem:[#allocation2 + $0x20] sm:$0xff] %v2186_v6 }
 0x1ac   : > { %v2043_v7 = vpop.f32.mrf.mxu0 }
 0x1ad   : > { %v2086_v8 = vpop.f32.mrf.mxu1 }
 0x1ae   : > { %v2045_v9 = vpop.f32.mrf.mxu0  ;;  %v2087_v19 = vadd.f32 %v2086_v8, %v2043_v7 }
 0x1af   : > { %v2088_v10 = vpop.f32.mrf.mxu1 }
 0x1b0   : > { %v2047_v11 = vpop.f32.mrf.mxu0  ;;  %v2089_v22 = vadd.f32 %v2088_v10, %v2045_v9 }
 0x1b1   : > { %v2090_v14 = vpop.f32.mrf.mxu1 }
 0x1b2   : > { %v2049_v17 = vpop.f32.mrf.mxu0  ;;  %v2091_v30 = vadd.f32 %v2090_v14, %v2047_v11 }
 0x1b3   : > { %v2092_v18 = vpop.f32.mrf.mxu1 }
 0x1b4   : > { %v2093_v38 = vadd.f32 %v2092_v18, %v2049_v17 }
 0x1ec   : > { %v2129_v20 = vpop.f32.mrf.mxu0 }
 0x1ed   : > { %v2172_v21 = vpop.f32.mrf.mxu1  ;;  %v2130_v25 = vadd.f32 %v2129_v20, %v2087_v19 }
 0x1ee   : > { %v2131_v27 = vpop.f32.mrf.mxu0 }
 0x1ef   : > { %v2174_v28 = vpop.f32.mrf.mxu1  ;;  %v2173_v31 = vadd.f32 %v2172_v21, %v2130_v25  ;;  %v2132_v32 = vadd.f32 %v2131_v27, %v2089_v22 }
 0x1f0   : > { %v2133_v34 = vpop.f32.mrf.mxu0 }
 0x1f1   : > { %v2176_v35 = vpop.f32.mrf.mxu1  ;;  %v2183_v39 = vadd.f32 %v2173_v31, %v242_v26  ;;  %v2175_v40 = vadd.f32 %v2174_v28, %v2132_v32  ;;  %v2134_v41 = vadd.f32 %v2133_v34, %v2091_v30 }
 0x1f2   : > { %v2135_v24 = vpop.f32.mrf.mxu0 }
 0x1f3   : > { %2191 = vst [vmem:[#allocation2 + $0x18] sm:$0xff] %v2183_v39  ;;  %v2184_v42 = vadd.f32 %v2175_v40, %v243_v33  ;;  %v2177_v43 = vadd.f32 %v2176_v35, %v2134_v41  ;;  %v2136_v44 = vadd.f32 %v2135_v24, %v2093_v38  ;;  %v2178_v46 = vpop.f32.mrf.mxu1 }
 0x1f5   : > { %2192 = vst [vmem:[#allocation2 + $0x10] sm:$0xff] %v2184_v42  ;;  %v2187_v47 = vadd.f32 %v2177_v43, %v246_v23  ;;  %v2179_v48 = vadd.f32 %v2178_v46, %v2136_v44  ;;  %2200 = sbr.rel (%p2642_p10) target bundleno = 527 (0x20f), region = 63 }
 0x1f7   : > { %2195 = vst [vmem:[#allocation2 + $0x28] sm:$0xff] %v2187_v47  ;;  %v2188_v13 = vadd.f32 %v2179_v48, %v247_v45 }
 0x1f9   : > { %2196 = vst [vmem:[#allocation2 + $0x38] sm:$0xff] %v2188_v13 }
 0x1fa   : > { %v2211_v12 = vlaneseq  ;;  %v2209_v16 = vld [vmem:[%s3543_s2] sm:$0xf]  ;;  %v2201_v49 = vld [vmem:[#allocation2 + $0x30] sm:$0xff]  ;;  %v2203_v36 = vld [vmem:[#allocation2 + $0x18] sm:$0xff] }
 0x1fb   : > { %v2202_v50 = vld [vmem:[#allocation2] sm:$0xff]  ;;  %v2205_v37 = vld [vmem:[#allocation2 + $0x8] sm:$0xff] }
 0x1fc   : > { %v2212_v15 = vshrl.u32 %v2211_v12, 7  ;;  %v2204_v54 = vld [vmem:[#allocation2 + $0x10] sm:$0xff]  ;;  %v2206_v59 = vld [vmem:[#allocation2 + $0x20] sm:$0xff] }
 0x1fe   : > { %v2213_v29 = vsub.s32 0, %v2212_v15  ;;  %v2217_v52 = vsub.s32 1, %v2212_v15  ;;  %v2221_v51 = vsub.s32 2, %v2212_v15  ;;  %v2225_v53 = vsub.s32 3, %v2212_v15  ;;  %v2207_v60 = vld [vmem:[#allocation2 + $0x28] sm:$0xff] }
 0x200   : > { %v2214_v55 = vrot.slane %v2209_v16, %v2213_v29  ;;  %v2218_v56 = vrot.slane %v2209_v16, %v2217_v52  ;;  %v2222_v57 = vrot.slane %v2209_v16, %v2221_v51  ;;  %v2226_v58 = vrot.slane %v2209_v16, %v2225_v53  ;;  %v2208_v61 = vld [vmem:[#allocation2 + $0x38] sm:$0xff] }
 0x202   : > { %v2231_v62 = vadd.f32 %v2214_v55, %v2201_v49  ;;  %v2232_v63 = vadd.f32 %v2218_v56, %v2202_v50  ;;  %v2233_v0 = vadd.f32 %v2222_v57, %v2203_v36  ;;  %v2234_v1 = vadd.f32 %v2226_v58, %v2204_v54 }
 0x203   : > { %v2235_v2 = vadd.f32 %v2214_v55, %v2205_v37  ;;  %v2236_v3 = vadd.f32 %v2218_v56, %v2206_v59  ;;  %v2237_v4 = vadd.f32 %v2222_v57, %v2207_v60  ;;  %v2238_v5 = vadd.f32 %v2226_v58, %v2208_v61 }
 0x204   : > { %vm2239_vm0 = vcmp.ge.f32.partialorder %v2231_v62, 0.0  ;;  %vm2240_vm1 = vcmp.ge.f32.partialorder %v2232_v63, 0.0  ;;  %v2247_v6 = vmul.f32 0.2, %v2231_v62  ;;  %v2248_v7 = vmul.f32 0.2, %v2232_v63 }
 0x205   : > { %vm2241_vm2 = vcmp.ge.f32.partialorder %v2233_v0, 0.0  ;;  %vm2242_vm3 = vcmp.ge.f32.partialorder %v2234_v1, 0.0  ;;  %v2249_v8 = vmul.f32 0.2, %v2233_v0  ;;  %v2250_v9 = vmul.f32 0.2, %v2234_v1 }
 0x206   : > { %v2255_v10 = vsel %vm2239_vm0, %v2231_v62, %v2247_v6  ;;  %v2256_v11 = vsel %vm2240_vm1, %v2232_v63, %v2248_v7  ;;  %vm2243_vm4 = vcmp.ge.f32.partialorder %v2235_v2, 0.0  ;;  %vm2244_vm5 = vcmp.ge.f32.partialorder %v2236_v3, 0.0 }
 0x207   : > { %v2653_v14 = vpack.c.bf16 %v2256_v11, %v2255_v10  ;;  %v2257_v17 = vsel %vm2241_vm2, %v2233_v0, %v2249_v8  ;;  %v2258_v18 = vsel %vm2242_vm3, %v2234_v1, %v2250_v9  ;;  %v2251_v19 = vmul.f32 0.2, %v2235_v2 }
 0x208   : > { %v2654_v20 = vpack.c.bf16 %v2258_v18, %v2257_v17  ;;  %v2252_v21 = vmul.f32 0.2, %v2236_v3  ;;  %vm2245_vm6 = vcmp.ge.f32.partialorder %v2237_v4, 0.0  ;;  %vm2246_vm7 = vcmp.ge.f32.partialorder %v2238_v5, 0.0 }
 0x209   : > { %2287 = vst [vmem:[%s3544_s3] sm:$0xff] %v2653_v14  ;;  %v2259_v22 = vsel %vm2243_vm4, %v2235_v2, %v2251_v19  ;;  %v2253_v25 = vmul.f32 0.2, %v2237_v4  ;;  %v2254_v26 = vmul.f32 0.2, %v2238_v5 }
 0x20a   : > { %2288 = vst [vmem:[%s3544_s3 + $0x8] sm:$0xff] %v2654_v20  ;;  %v2260_v27 = vsel %vm2244_vm5, %v2236_v3, %v2252_v21 }
 0x20b   : > { %v2655_v28 = vpack.c.bf16 %v2260_v27, %v2259_v22  ;;  %v2261_v30 = vsel %vm2245_vm6, %v2237_v4, %v2253_v25  ;;  %v2262_v31 = vsel %vm2246_vm7, %v2238_v5, %v2254_v26 }
 0x20c   : > { %v2656_v32 = vpack.c.bf16 %v2262_v31, %v2261_v30 }
 0x20d   : > { %2289 = vst [vmem:[%s3544_s3 + $0x10] sm:$0xff] %v2655_v28 }
 0x20e   : > { %2290 = vst [vmem:[%s3544_s3 + $0x18] sm:$0xff] %v2656_v32 }
 0x20f PF: > { %s13_s16 = sadd.s32 1, %s3120_s16   ;;  %s3545_s12 = smov %s3108_s13 }
 0x210   : > { %p10_p11 = scmp.ge.s32.totalorder %s13_s16, 6   ;;  %s3546_s13 = smov %s3178_s20 }
 0x211   : > { %s3547_s14 = smov %s3116_s15  ;;  %s3548_s15 = smov %s3550_s17 }
 0x212   :  { %12 = sbr.rel (!%p10_p11) target bundleno = 3 (0x3), region = 99 }

// kernel: discriminator_forward.9
= control target key start
LH: loop header
LB: loop body
LE: loop exit
PB: predicated region body
PF: predicated region fallthrough
CT: control target
= control target key end

     0   :  { %s1401_s12 = smov 0   ;;  %s1403_s13 = smov 0   ;;  %s1585_s0 = inlined_call_operand.vmem [shape: bf16[16,8192], index: 0, kind: input, shape index: {}]   ;;  %s1586_s1 = inlined_call_operand.vmem [shape: bf16[8192,128], index: 1, kind: input, shape index: {}]   ;;  %s1587_s2 = inlined_call_operand.vmem [shape: f32[1,128], index: 2, kind: input, shape index: {}]   ;;  %s1588_s3 = inlined_call_operand.vmem [shape: f32[16,128], index: 3, kind: output, shape index: {}]  }
   0x1   :  { %s1405_s14 = smov 0   ;;  %s1407_s15 = smov 0  }
   0x2   :  { %s1409_s16 = smov 0  }
   0x3 LB: > { %s22_s17 = sadd.s32 1, %s1374_s15  ;;  %p41_p1 = scmp.ne.s32.totalorder %s1366_s13, %s1362_s12  ;;  %s1378_s16 = sphi %s1409_s16, %s13_s16   ;;  %s1374_s15 = sphi %s1407_s15, %s1592_s15   ;;  %s1370_s14 = sphi %s1405_s14, %s1591_s14   ;;  %s1366_s13 = sphi %s1403_s13, %s1590_s13   ;;  %s1362_s12 = sphi %s1401_s12, %s1589_s12  }
   0x4   : > { %p23_p0 = scmp.ge.s32.totalorder %s22_s17, 8  ;;  %p42_p2 = scmp.eq.s32.totalorder %s1378_s16, 0 }
   0x5   : > { %s34_s19 = sadd.s32 1, %s1366_s13  ;;  %p1059_p5 = scmp.ge.s32.totalorder %s1378_s16, 8 }
   0x6   : > { %s1594_s17 = smov (%p23_p0, %s22_s17), 0  ;;  %p43_p3 = por %p42_p2, %p41_p1 }
   0x7   : > { %s30_s18 = ssub.s32 %s1374_s15, %s1594_s17  ;;  %141 = sbr.rel (%p1059_p5) target bundleno = 20 (0x14), region = 24 }
   0x8   : > { %p32_p4 = scmp.eq.s32.totalorder %s30_s18, 0 }
   0xa   : > { %s1436_s20 = scalar_select %p32_p4, %s1366_s13, %s34_s19  }
   0xc   : > { %144 = sbr.rel (!%p43_p3) target bundleno = 20 (0x14), region = 28  ;;  %s146_s21 = sand.u32 (%p43_p3), 1, %s1366_s13  }
   0xd   : > { %s1146_s22 = sshll.u32 (%p43_p3), %s1374_s15, 5  ;;  %s1060_s23 = sshll.u32 (%p43_p3), %s146_s21, 6 }
   0xe   : > { %s154_s26 = scalar_lea.vmem (%p43_p3), %s1585_s0, %s1146_s22  ;;  %s148_s27 = scalar_lea.vmem (%p43_p3), [#allocation3], %s1060_s23 }
   0xf   : > { %v167_v0 = vld [vmem:[%s154_s26] sm:$0xff] (%p43_p3)  ;;  %v169_v1 = vld [vmem:[%s154_s26 + $0x8] sm:$0xff] (%p43_p3)  ;;  %v171_v2 = vld [vmem:[%s154_s26 + $0x10] sm:$0xff] (%p43_p3) }
  0x10   : > { %168 = vst [vmem:[%s148_s27] sm:$0xff] (%p43_p3), %v167_v0  ;;  %170 = vst [vmem:[%s148_s27 + $0x8] sm:$0xff] (%p43_p3), %v169_v1  ;;  %v173_v3 = vld [vmem:[%s154_s26 + $0x18] sm:$0xff] (%p43_p3)  ;;  %v175_v4 = vld [vmem:[%s154_s26 + $0x100] sm:$0xff] (%p43_p3) }
  0x11   : > { %172 = vst [vmem:[%s148_s27 + $0x10] sm:$0xff] %v171_v2  ;;  %v177_v5 = vld [vmem:[%s154_s26 + $0x108] sm:$0xff]  ;;  %174 = vst [vmem:[%s148_s27 + $0x18] sm:$0xff] %v173_v3  ;;  %v179_v6 = vld [vmem:[%s154_s26 + $0x110] sm:$0xff] }
  0x12   : > { %176 = vst [vmem:[%s148_s27 + $0x20] sm:$0xff] %v175_v4  ;;  %178 = vst [vmem:[%s148_s27 + $0x28] sm:$0xff] %v177_v5  ;;  %v181_v7 = vld [vmem:[%s154_s26 + $0x118] sm:$0xff] }
  0x13   : > { %180 = vst [vmem:[%s148_s27 + $0x30] sm:$0xff] %v179_v6  ;;  %182 = vst [vmem:[%s148_s27 + $0x38] sm:$0xff] %v181_v7 }
  0x14 PF: > { %p1063_p6 = scmp.ge.s32.totalorder %s1378_s16, 1  ;;  %p187_p7 = scmp.lt.s32.totalorder %s1378_s16, 9 }
  0x16   : > { %p188_p8 = pnand %p1063_p6, %p187_p7 }
  0x17   : > { %s194_s28 = sand.u32 (!%p188_p8), 1, %s1362_s12   ;;  %p1065_p9 = scmp.ne.s32.totalorder (!%p188_p8), %s1370_s14, 0 }
  0x18   : > { %191 = sbr.rel (%p188_p8) target bundleno = 324 (0x144), region = 51  ;;  %s1064_s29 = sshll.u32 (!%p188_p8), %s194_s28, 6 }
  0x19   : > { %s1447_s30 = scalar_lea.vmem (!%p188_p8), [#allocation3], %s1064_s29 }
  0x1d   : > { %229 = sbr.rel (%p1065_p9) target bundleno = 36 (0x24), region = 59 }
  0x22   : > { %v1380_v8 = vmov 0.0  }
  0x23   : > { %230 = vst [vmem:[#allocation2] sm:$0xff] %v1380_v8  ;;  %231 = vst [vmem:[#allocation2 + $0x8] sm:$0xff] %v1380_v8 }
  0x24 PF: > { %s1066_s4 = sshll.u32 %s1370_s14, 10  ;;  %v1452_v9 = vld [vmem:[%s1447_s30] sm:$0xff]  ;;  %v1458_v11 = vld [vmem:[%s1447_s30 + $0x8] sm:$0xff]  ;;  %v1502_v44 = vld [vmem:[%s1447_s30 + $0x10] sm:$0xff]  ;;  %p1140_p10 = scmp.ne.s32.totalorder %s1370_s14, 7 }
  0x25   : > { %v1455_v10 = vld [vmem:[%s1447_s30 + $0x20] sm:$0xff]  ;;  %s243_s5 = sshra.s32 %s1066_s4, 3  ;;  %v1463_v13 = vld [vmem:[%s1447_s30 + $0x28] sm:$0xff]  ;;  %v1505_v45 = vld [vmem:[%s1447_s30 + $0x30] sm:$0xff] }
  0x26   : > { %v1069_v12 = vcombine.high %v1452_v9, %v1455_v10  ;;  %s1067_s6 = sshll.u32 %s243_s5, 2  ;;  %v1071_v14 = vcombine.high %v1458_v11, %v1463_v13  ;;  %v1509_v47 = vld [vmem:[%s1447_s30 + $0x18] sm:$0xff]  ;;  %v1068_v51 = vcombine.low %v1452_v9, %v1455_v10  ;;  %v1070_v52 = vcombine.low %v1458_v11, %v1463_v13 }
  0x27   : > { %s1470_s9 = scalar_lea.vmem %s1586_s1, %s1067_s6  ;;  %v1512_v48 = vld [vmem:[%s1447_s30 + $0x38] sm:$0xff]  ;;  %v1073_v55 = vcombine.high %v1502_v44, %v1505_v45 }
  0x28   : > { %831 = vmatprep.mubr.bf16.mxu0 %v1069_v12  ;;  %v1276_v15 = vld [vmem:[%s1470_s9 + $0x78] sm:$0xff]   ;;  %872 = vmatprep.mubr.bf16.mxu1 %v1071_v14  ;;  %v1280_v19 = vld [vmem:[%s1470_s9 + $0x70] sm:$0xff]   ;;  %v1284_v23 = vld [vmem:[%s1470_s9 + $0x68] sm:$0xff]   ;;  %v1075_v57 = vcombine.high %v1509_v47, %v1512_v48 }
  0x29   : > { %v1277_v16 = vld [vmem:[%s1470_s9 + $0xf8] sm:$0xff]   ;;  %1147 = vmatprep.subr.bf16.mxu0 %v1276_v15  ;;  %v1281_v20 = vld [vmem:[%s1470_s9 + $0xf0] sm:$0xff]   ;;  %v1285_v24 = vld [vmem:[%s1470_s9 + $0xe8] sm:$0xff]  }
  0x2a   : > { %v1278_v17 = vld [vmem:[%s1470_s9 + $0x38] sm:$0xff]   ;;  %1169 = vmatprep.subr.bf16.mxu1 %v1277_v16  ;;  %v1282_v21 = vld [vmem:[%s1470_s9 + $0x30] sm:$0xff]   ;;  %v1286_v25 = vld [vmem:[%s1470_s9 + $0x28] sm:$0xff]  }
  0x2b   : > { %v1279_v18 = vld [vmem:[%s1470_s9 + $0xb8] sm:$0xff]   ;;  %1148 = vmatpush3.bf16.msra.mxu0 %v1278_v17  ;;  %v1283_v22 = vld [vmem:[%s1470_s9 + $0xb0] sm:$0xff]   ;;  %v1287_v26 = vld [vmem:[%s1470_s9 + $0xa8] sm:$0xff]  }
  0x2c   : > { %1170 = vmatpush3.bf16.msra.mxu1 %v1279_v18  ;;  %1149 = vmatprep.subr.bf16.mxu0 %v1280_v19  ;;  %v1288_v27 = vld [vmem:[%s1470_s9 + $0x60] sm:$0xff]   ;;  %v1292_v31 = vld [vmem:[%s1470_s9 + $0x58] sm:$0xff]   ;;  %v1296_v35 = vld [vmem:[%s1470_s9 + $0x50] sm:$0xff]  }
  0x2d   : > { %1171 = vmatprep.subr.bf16.mxu1 %v1281_v20  ;;  %v1289_v28 = vld [vmem:[%s1470_s9 + $0xe0] sm:$0xff]   ;;  %v1293_v32 = vld [vmem:[%s1470_s9 + $0xd8] sm:$0xff]   ;;  %v1297_v36 = vld [vmem:[%s1470_s9 + $0xd0] sm:$0xff]  }
  0x2e   : > { %v1290_v29 = vld [vmem:[%s1470_s9 + $0x20] sm:$0xff]   ;;  %v1294_v33 = vld [vmem:[%s1470_s9 + $0x18] sm:$0xff]   ;;  %v1298_v37 = vld [vmem:[%s1470_s9 + $0x10] sm:$0xff]  }
  0x2f   : > { %1150 = vmatpush3.bf16.msra.mxu0 %v1282_v21  ;;  %v1291_v30 = vld [vmem:[%s1470_s9 + $0xa0] sm:$0xff]   ;;  %v1295_v34 = vld [vmem:[%s1470_s9 + $0x98] sm:$0xff]   ;;  %v1299_v38 = vld [vmem:[%s1470_s9 + $0x90] sm:$0xff]  }
  0x30   : > { %1172 = vmatpush3.bf16.msra.mxu1 %v1283_v22  ;;  %1151 = vmatprep.subr.bf16.mxu0 %v1284_v23  ;;  %v1300_v39 = vld [vmem:[%s1470_s9 + $0x48] sm:$0xff]   ;;  %v1304_v43 = vld [vmem:[%s1470_s9 + $0x40] sm:$0xff]   ;;  %v1308_v53 = vld [vmem:[%s1470_s9 + $0x178] sm:$0xff]   ;;  %v1072_v23 = vcombine.low %v1502_v44, %v1505_v45 }
  0x31   : > { %1173 = vmatprep.subr.bf16.mxu1 %v1285_v24  ;;  %v1301_v40 = vld [vmem:[%s1470_s9 + $0xc8] sm:$0xff]   ;;  %v1305_v46 = vld [vmem:[%s1470_s9 + $0xc0] sm:$0xff]   ;;  %v1309_v54 = vld [vmem:[%s1470_s9 + $0x1f8] sm:$0xff]   ;;  %v1074_v24 = vcombine.low %v1509_v47, %v1512_v48 }
  0x32   : > { %v1302_v41 = vld [vmem:[%s1470_s9 + $0x8] sm:$0xff]   ;;  %v1306_v49 = vld [vmem:[%s1470_s9] sm:$0xff]   ;;  %v1310_v56 = vld [vmem:[%s1470_s9 + $0x138] sm:$0xff]  }
  0x33   : > { %1152 = vmatpush3.bf16.msra.mxu0 %v1286_v25  ;;  %v1303_v42 = vld [vmem:[%s1470_s9 + $0x88] sm:$0xff]   ;;  %v1307_v50 = vld [vmem:[%s1470_s9 + $0x80] sm:$0xff]   ;;  %v1311_v58 = vld [vmem:[%s1470_s9 + $0x1b8] sm:$0xff]  }
  0x34   : > { %1174 = vmatpush3.bf16.msra.mxu1 %v1287_v26  ;;  %1153 = vmatprep.subr.bf16.mxu0 %v1288_v27  ;;  %v1312_v59 = vld [vmem:[%s1470_s9 + $0x170] sm:$0xff]   ;;  %v1316_v63 = vld [vmem:[%s1470_s9 + $0x168] sm:$0xff]   ;;  %v1320_v3 = vld [vmem:[%s1470_s9 + $0x160] sm:$0xff]  }
  0x35   : > { %1175 = vmatprep.subr.bf16.mxu1 %v1289_v28  ;;  %v1313_v60 = vld [vmem:[%s1470_s9 + $0x1f0] sm:$0xff]   ;;  %v1317_v0 = vld [vmem:[%s1470_s9 + $0x1e8] sm:$0xff]   ;;  %v1321_v4 = vld [vmem:[%s1470_s9 + $0x1e0] sm:$0xff]  }
  0x36   : > { %v1314_v61 = vld [vmem:[%s1470_s9 + $0x130] sm:$0xff]   ;;  %v1318_v1 = vld [vmem:[%s1470_s9 + $0x128] sm:$0xff]   ;;  %v1322_v5 = vld [vmem:[%s1470_s9 + $0x120] sm:$0xff]  }
  0x37   : > { %1154 = vmatpush3.bf16.msra.mxu0 %v1290_v29  ;;  %v1315_v62 = vld [vmem:[%s1470_s9 + $0x1b0] sm:$0xff]   ;;  %v1319_v2 = vld [vmem:[%s1470_s9 + $0x1a8] sm:$0xff]   ;;  %v1323_v6 = vld [vmem:[%s1470_s9 + $0x1a0] sm:$0xff]  }
  0x38   : > { %1176 = vmatpush3.bf16.msra.mxu1 %v1291_v30  ;;  %1155 = vmatprep.subr.bf16.mxu0 %v1292_v31  ;;  %v1324_v7 = vld [vmem:[%s1470_s9 + $0x158] sm:$0xff]   ;;  %v1328_v11 = vld [vmem:[%s1470_s9 + $0x150] sm:$0xff]   ;;  %v1332_v15 = vld [vmem:[%s1470_s9 + $0x148] sm:$0xff]  }
  0x39   : > { %1177 = vmatprep.subr.bf16.mxu1 %v1293_v32  ;;  %v1325_v8 = vld [vmem:[%s1470_s9 + $0x1d8] sm:$0xff]   ;;  %v1329_v12 = vld [vmem:[%s1470_s9 + $0x1d0] sm:$0xff]   ;;  %v1333_v16 = vld [vmem:[%s1470_s9 + $0x1c8] sm:$0xff]  }
  0x3a   : > { %v1326_v9 = vld [vmem:[%s1470_s9 + $0x118] sm:$0xff]   ;;  %v1330_v13 = vld [vmem:[%s1470_s9 + $0x110] sm:$0xff]   ;;  %v1334_v17 = vld [vmem:[%s1470_s9 + $0x108] sm:$0xff]  }
  0x3b   : > { %1156 = vmatpush3.bf16.msra.mxu0 %v1294_v33  ;;  %v1327_v10 = vld [vmem:[%s1470_s9 + $0x198] sm:$0xff]   ;;  %v1331_v14 = vld [vmem:[%s1470_s9 + $0x190] sm:$0xff]   ;;  %v1335_v18 = vld [vmem:[%s1470_s9 + $0x188] sm:$0xff]  }
  0x3c   : > { %1178 = vmatpush3.bf16.msra.mxu1 %v1295_v34  ;;  %1157 = vmatprep.subr.bf16.mxu0 %v1296_v35  ;;  %v1336_v19 = vld [vmem:[%s1470_s9 + $0x140] sm:$0xff]  }
  0x3d   : > { %1179 = vmatprep.subr.bf16.mxu1 %v1297_v36  ;;  %v1337_v20 = vld [vmem:[%s1470_s9 + $0x1c0] sm:$0xff]  }
  0x3e   : > { %v1338_v21 = vld [vmem:[%s1470_s9 + $0x100] sm:$0xff]  }
  0x3f   : > { %1158 = vmatpush3.bf16.msra.mxu0 %v1298_v37  ;;  %v1339_v22 = vld [vmem:[%s1470_s9 + $0x180] sm:$0xff]  }
  0x40   : > { %1180 = vmatpush3.bf16.msra.mxu1 %v1299_v38  ;;  %1159 = vmatprep.subr.bf16.mxu0 %v1300_v39  ;;  %v233_v47 = vld [vmem:[#allocation2] sm:$0xff] }
  0x41   : > { %1181 = vmatprep.subr.bf16.mxu1 %v1301_v40 }
  0x43   : > { %1160 = vmatpush3.bf16.msra.mxu0 %v1302_v41 }
  0x44   : > { %1182 = vmatpush3.bf16.msra.mxu1 %v1303_v42  ;;  %1161 = vmatprep.subr.bf16.mxu0 %v1304_v43 }
  0x45   : > { %1183 = vmatprep.subr.bf16.mxu1 %v1305_v46 }
  0x47   : > { %1162 = vmatpush3.bf16.msra.mxu0 %v1306_v49 }
  0x48   : > { %1184 = vmatpush3.bf16.msra.mxu1 %v1307_v50  ;;  %1191 = vmatprep.subr.bf16.mxu0 %v1308_v53 }
  0x49   : > { %1213 = vmatprep.subr.bf16.mxu1 %v1309_v54 }
  0x4a   : > { %832 = vmatmul.mubr.bf16.vlgmr.msra.gmra.mxu0 %v1068_v51 }
  0x4b   : > { %873 = vmatmul.mubr.bf16.vlgmr.msra.gmra.mxu1 %v1070_v52  ;;  %1192 = vmatpush3.bf16.msra.mxu0 %v1310_v56  ;;  %v234_v56 = vld [vmem:[#allocation2 + $0x8] sm:$0xff] }
  0x4c   : > { %1214 = vmatpush3.bf16.msra.mxu1 %v1311_v58  ;;  %913 = vmatprep.mubr.bf16.mxu0 %v1073_v55 }
  0x4d   : > { %1193 = vmatprep.subr.bf16.mxu0 %v1312_v59  ;;  %954 = vmatprep.mubr.bf16.mxu1 %v1075_v57 }
  0x4e   : > { %1215 = vmatprep.subr.bf16.mxu1 %v1313_v60 }
  0x4f   : > { %1194 = vmatpush3.bf16.msra.mxu0 %v1314_v61 }
  0x50   : > { %1216 = vmatpush3.bf16.msra.mxu1 %v1315_v62  ;;  %1195 = vmatprep.subr.bf16.mxu0 %v1316_v63 }
  0x51   : > { %1217 = vmatprep.subr.bf16.mxu1 %v1317_v0 }
  0x53   : > { %1196 = vmatpush3.bf16.msra.mxu0 %v1318_v1 }
  0x54   : > { %1218 = vmatpush3.bf16.msra.mxu1 %v1319_v2  ;;  %1197 = vmatprep.subr.bf16.mxu0 %v1320_v3 }
  0x55   : > { %1219 = vmatprep.subr.bf16.mxu1 %v1321_v4 }
  0x57   : > { %1198 = vmatpush3.bf16.msra.mxu0 %v1322_v5 }
  0x58   : > { %1220 = vmatpush3.bf16.msra.mxu1 %v1323_v6  ;;  %1199 = vmatprep.subr.bf16.mxu0 %v1324_v7 }
  0x59   : > { %1221 = vmatprep.subr.bf16.mxu1 %v1325_v8 }
  0x5b   : > { %1200 = vmatpush3.bf16.msra.mxu0 %v1326_v9 }
  0x5c   : > { %1222 = vmatpush3.bf16.msra.mxu1 %v1327_v10  ;;  %1201 = vmatprep.subr.bf16.mxu0 %v1328_v11 }
  0x5d   : > { %1223 = vmatprep.subr.bf16.mxu1 %v1329_v12 }
  0x5f   : > { %1202 = vmatpush3.bf16.msra.mxu0 %v1330_v13 }
  0x60   : > { %1224 = vmatpush3.bf16.msra.mxu1 %v1331_v14  ;;  %1203 = vmatprep.subr.bf16.mxu0 %v1332_v15 }
  0x61   : > { %1225 = vmatprep.subr.bf16.mxu1 %v1333_v16 }
  0x63   : > { %1204 = vmatpush3.bf16.msra.mxu0 %v1334_v17 }
  0x64   : > { %1226 = vmatpush3.bf16.msra.mxu1 %v1335_v18  ;;  %1205 = vmatprep.subr.bf16.mxu0 %v1336_v19 }
  0x65   : > { %1227 = vmatprep.subr.bf16.mxu1 %v1337_v20 }
  0x67   : > { %1206 = vmatpush3.bf16.msra.mxu0 %v1338_v21 }
  0x68   : > { %1228 = vmatpush3.bf16.msra.mxu1 %v1339_v22 }
  0x6a   : > { %914 = vmatmul.mubr.bf16.vlgmr.msra.gmra.mxu0 %v1072_v23 }
  0x6b   : > { %955 = vmatmul.mubr.bf16.vlgmr.msra.gmra.mxu1 %v1074_v24 }
 0x10a   : > { %v1163_v25 = vpop.f32.mrf.mxu0 }
 0x10b   : > { %v1185_v26 = vpop.f32.mrf.mxu1 }
 0x10c   : > { %v1164_v27 = vpop.f32.mrf.mxu0 }
 0x10d   : > { %v1186_v28 = vpop.f32.mrf.mxu1  ;;  %v1165_v32 = vadd.f32 %v1164_v27, %v1163_v25 }
 0x10e   : > { %v1166_v29 = vpop.f32.mrf.mxu0  ;;  %v1187_v33 = vadd.f32 %v1186_v28, %v1185_v26 }
 0x10f   : > { %v1188_v30 = vpop.f32.mrf.mxu1 }
 0x110   : > { %v1167_v31 = vpop.f32.mrf.mxu0  ;;  %v875_v38 = vadd.f32 %v1187_v33, %v1165_v32 }
 0x111   : > { %v1189_v34 = vpop.f32.mrf.mxu1  ;;  %v1168_v39 = vadd.f32 %v1167_v31, %v1166_v29 }
 0x112   : > { %v1190_v40 = vadd.f32 %v1189_v34, %v1188_v30 }
 0x114   : > { %v878_v49 = vadd.f32 %v1190_v40, %v1168_v39 }
 0x12a   : > { %v1207_v35 = vpop.f32.mrf.mxu0 }
 0x12b   : > { %v1229_v36 = vpop.f32.mrf.mxu1 }
 0x12c   : > { %v1208_v37 = vpop.f32.mrf.mxu0 }
 0x12d   : > { %v1209_v41 = vadd.f32 %v1208_v37, %v1207_v35  ;;  %v1230_v42 = vpop.f32.mrf.mxu1 }
 0x12e   : > { %v1210_v43 = vpop.f32.mrf.mxu0  ;;  %v1231_v45 = vadd.f32 %v1230_v42, %v1229_v36 }
 0x12f   : > { %v916_v44 = vadd.f32 %v1209_v41, %v875_v38  ;;  %v1232_v46 = vpop.f32.mrf.mxu1 }
 0x130   : > { %v1211_v48 = vpop.f32.mrf.mxu0 }
 0x131   : > { %v957_v50 = vadd.f32 %v1231_v45, %v916_v44  ;;  %v1212_v51 = vadd.f32 %v1211_v48, %v1210_v43  ;;  %v1233_v52 = vpop.f32.mrf.mxu1 }
 0x132   : > { %v1234_v55 = vadd.f32 %v1233_v52, %v1232_v46 }
 0x133   : > { %v963_v53 = vadd.f32 %v957_v50, %v233_v47  ;;  %v919_v54 = vadd.f32 %v1212_v51, %v878_v49 }
 0x135   : > { %965 = vst [vmem:[#allocation2] sm:$0xff] %v963_v53  ;;  %v960_v57 = vadd.f32 %v1234_v55, %v919_v54  ;;  %970 = sbr.rel (%p1140_p10) target bundleno = 324 (0x144), region = 63 }
 0x137   : > { %v964_v58 = vadd.f32 %v960_v57, %v234_v56 }
 0x139   : > { %966 = vst [vmem:[#allocation2 + $0x8] sm:$0xff] %v964_v58 }
 0x13a   : > { %v1141_v60 = vld [vmem:[%s1587_s2] ss:$0 sm:$0xff] }
 0x13c   : > { %v971_v59 = vld [vmem:[#allocation2] sm:$0xff] }
 0x13d   : > { %v980_v62 = vadd.f32 %v1141_v60, %v971_v59 }
 0x13f   : > { %982 = vst [vmem:[%s1588_s3] sm:$0xff] %v980_v62 }
 0x140   : > { %v972_v61 = vld [vmem:[#allocation2 + $0x8] sm:$0xff] }
 0x141   : > { %v981_v63 = vadd.f32 %v1141_v60, %v972_v61 }
 0x143   : > { %983 = vst [vmem:[%s1588_s3 + $0x8] sm:$0xff] %v981_v63 }
 0x144 PF: > { %s13_s16 = sadd.s32 1, %s1378_s16   ;;  %s1589_s12 = smov %s1366_s13 }
 0x145   : > { %p10_p11 = scmp.ge.s32.totalorder %s13_s16, 10   ;;  %s1590_s13 = smov %s1436_s20 }
 0x146   : > { %s1591_s14 = smov %s1374_s15  ;;  %s1592_s15 = smov %s1594_s17 }
 0x147   :  { %12 = sbr.rel (!%p10_p11) target bundleno = 3 (0x3), region = 99 }

</bundles_post_ra>
